<compile_context>
chip_gen: v5e
topology: v5e:2x2
jax: 0.10.0
libtpu: 0.0.40
codegen_flags: <defaults>
</compile_context>

<pallas_src>
import functools
import math

import jax
import jax.numpy as jnp
from jax import lax
from jax.experimental import pallas as pl
from jax.experimental.pallas import tpu as pltpu


def head_kernel(x_ref, w_ref, o_ref, *, compute_dtype):
    # x_ref: (1, T, C) in the caller's dtype, w_ref: (C, 3H) = [Wq | Wk | Wv]
    # in compute_dtype, o_ref: (1, T, H).
    T = x_ref.shape[1]
    C = x_ref.shape[2]
    H = o_ref.shape[2]

    # Cast x in-kernel: the DMA reads x once at its native dtype and no separate
    # XLA cast op (extra HBM read+write) is emitted upstream.
    x = x_ref[0].astype(compute_dtype)                                # (T, C)

    # Fused QKV projection: one wide, lane-dense MXU matmul, f32 accumulation.
    qkv = jnp.dot(x, w_ref[...], preferred_element_type=jnp.float32)  # (T, 3H)

    scale = jnp.float32(1.0 / math.sqrt(C))
    # Scale q (T,H) instead of the (T,T) score matrix.
    q = (qkv[:, :H] * scale).astype(compute_dtype)                    # (T, H)
    k = qkv[:, H:2 * H].astype(compute_dtype)                         # (T, H)
    v = qkv[:, 2 * H:].astype(compute_dtype)                          # (T, H)

    # Scores without materializing k.T: contract the H axis of both operands.
    s = lax.dot_general(
        q, k,
        dimension_numbers=(((1,), (1,)), ((), ())),
        preferred_element_type=jnp.float32,
    )                                                                 # (T, T)

    # Causal mask: keep col <= row.
    row_ids = lax.broadcasted_iota(jnp.int32, (T, 1), 0)
    col_ids = lax.broadcasted_iota(jnp.int32, (1, T), 1)
    s = jnp.where(col_ids <= row_ids, s, -jnp.inf)

    # Numerically-stable softmax in f32; normalization via EUP reciprocal.
    s = s - jnp.max(s, axis=-1, keepdims=True)
    e = jnp.exp(s)
    denom = jnp.sum(e, axis=-1, keepdims=True)
    p = e * pl.reciprocal(denom, approx=True)

    out = jnp.dot(p.astype(compute_dtype), v, preferred_element_type=jnp.float32)
    o_ref[0] = out.astype(o_ref.dtype)


def head_forward(x, w_key, w_query, w_value, *,
                 compute_dtype=jnp.bfloat16, out_dtype=None):
    """x: (B, T, C). Weights in PyTorch nn.Linear layout: (H, C).

    compute_dtype: dtype fed to the MXU matmuls (default bf16; accumulation and
    softmax are always f32 inside the kernel).  out_dtype defaults to x.dtype.
    """
    B, T, C = x.shape
    H = w_key.shape[0]
    if out_dtype is None:
        out_dtype = x.dtype

    # Single full-T query block: the (T,T) f32 score tile must fit VMEM with
    # room to spare (true for T up to a couple of thousand on all generations).
    assert T * T * 4 <= 16 * 1024 * 1024, \
        "T too large for the single-block kernel; use a flash-style variant"

    # Fused, pre-transposed QKV weight: (C, 3H) with column blocks [q | k | v].
    # NOTE: in a real model this repack should be done once at init, not per call.
    w_qkv = jnp.concatenate([w_query, w_key, w_value], axis=0).T.astype(compute_dtype)

    kernel = functools.partial(head_kernel, compute_dtype=compute_dtype)

    return pl.pallas_call(
        kernel,
        out_shape=jax.ShapeDtypeStruct((B, T, H), out_dtype),
        grid_spec=pltpu.PrefetchScalarGridSpec(
            num_scalar_prefetch=0,
            grid=(B,),
            in_specs=[
                pl.BlockSpec((1, T, C), lambda b: (b, 0, 0)),
                pl.BlockSpec((C, 3 * H), lambda b: (0, 0)),
            ],
            out_specs=pl.BlockSpec((1, T, H), lambda b: (b, 0, 0)),
        ),
        compiler_params=pltpu.CompilerParams(
            # Every grid step is an independent batch element -> fully parallel;
            # shards across both v7x TensorCores whenever B >= 2.
            dimension_semantics=("parallel",),
            vmem_limit_bytes=32 * 1024 * 1024,
        ),
    )(x, w_qkv)


def head_reference(x, w_key, w_query, w_value):
    """Pure-JAX reference mirroring the PyTorch forward (eval mode)."""
    B, T, C = x.shape
    k = x @ w_key.T
    q = x @ w_query.T
    v = x @ w_value.T
    wei = (q @ jnp.swapaxes(k, -2, -1)) * (C ** -0.5)
    mask = jnp.tril(jnp.ones((T, T), dtype=bool))
    wei = jnp.where(mask, wei, -jnp.inf)
    wei = jax.nn.softmax(wei, axis=-1)
    return wei @ v


if __name__ == "__main__":
    # Shapes consistent with the module: C = n_embd = 384, T = block_size = 256.
    # head_size = 128 keeps every last dim lane-dense (multiple of 128).
    B, T, C, H = 2, 256, 384, 128

    key = jax.random.PRNGKey(0)
    kx, kk, kq, kv = jax.random.split(key, 4)

    x = jax.random.normal(kx, (B, T, C), dtype=jnp.float32)
    # nn.Linear(n_embd, head_size, bias=False) weight layout: (H, C).
    w_key = jax.random.normal(kk, (H, C), dtype=jnp.float32) * (C ** -0.5)
    w_query = jax.random.normal(kq, (H, C), dtype=jnp.float32) * (C ** -0.5)
    w_value = jax.random.normal(kv, (H, C), dtype=jnp.float32) * (C ** -0.5)

    ref = head_reference(x, w_key, w_query, w_value)

    # Default path: bf16 MXU compute, f32 softmax / accumulation, f32 output.
    out_bf16 = jax.block_until_ready(head_forward(x, w_key, w_query, w_value))
    assert out_bf16.shape == (B, T, H)
    assert jnp.allclose(out_bf16, ref, atol=1e-1, rtol=1e-1), \
        "bf16-compute mismatch vs reference"

    # Full-f32 compute path (tolerance accommodates the EUP approximate
    # reciprocal used for softmax normalization).
    out_f32 = jax.block_until_ready(
        head_forward(x, w_key, w_query, w_value, compute_dtype=jnp.float32))
    assert out_f32.shape == (B, T, H)
    assert jnp.allclose(out_f32, ref, atol=1e-2, rtol=1e-2), \
        "f32-compute mismatch vs reference"

    print("KERNEL_OK")
</pallas_src>

<mosaic_0001>
module attributes {stable_mosaic.version = 11 : i64} {
  func.func @head_kernel(%arg0: i32, %arg1: memref<1x256x384xf32, #tpu.memory_space<vmem>>, %arg2: memref<384x384xbf16, #tpu.memory_space<vmem>>, %arg3: memref<1x256x128xf32, #tpu.memory_space<vmem>>) attributes {dimension_semantics = [#tpu.dimension_semantics<parallel>], iteration_bounds = array<i64: 2>, scalar_prefetch = 0 : i64, scratch_operands = 0 : i64, tpu.core_type = #tpu.core_type<tc>, window_params = [{transform_indices = @transform_0, window_bounds = array<i64: 1, 256, 384>}, {pipeline_mode = #tpu.pipeline_mode<synchronous>, transform_indices = @transform_1, window_bounds = array<i64: 384, 384>}, {transform_indices = @transform_2, window_bounds = array<i64: 1, 256, 128>}]} {
    %c0 = arith.constant 0 : index
    %c0_0 = arith.constant 0 : index
    %c0_1 = arith.constant 0 : index
    %0 = vector.load %arg1[%c0, %c0_0, %c0_1] : memref<1x256x384xf32, #tpu.memory_space<vmem>>, vector<1x256x384xf32>
    %1 = vector.shape_cast %0 : vector<1x256x384xf32> to vector<256x384xf32>
    %2 = arith.truncf %1 : vector<256x384xf32> to vector<256x384xbf16>
    %c0_2 = arith.constant 0 : index
    %c0_3 = arith.constant 0 : index
    %3 = vector.load %arg2[%c0_2, %c0_3] : memref<384x384xbf16, #tpu.memory_space<vmem>>, vector<384x384xbf16>
    %cst = arith.constant dense<0.000000e+00> : vector<256x384xf32>
    %4 = tpu.matmul %2, %3, %cst {dimension_numbers = #tpu.dot_dimension_numbers<[1], [0], [0], [1], [0, 0, 1, 1], [], []>} : vector<256x384xbf16>, vector<384x384xbf16>, vector<256x384xf32> -> vector<256x384xf32>
    %5 = vector.extract_strided_slice %4 {offsets = [0, 0], sizes = [256, 128], strides = [1, 1]} : vector<256x384xf32> to vector<256x128xf32>
    %cst_4 = arith.constant 0.0510310382 : f32
    %6 = vector.broadcast %cst_4 : f32 to vector<256x128xf32>
    %7 = arith.mulf %5, %6 : vector<256x128xf32>
    %8 = arith.truncf %7 : vector<256x128xf32> to vector<256x128xbf16>
    %9 = vector.extract_strided_slice %4 {offsets = [0, 128], sizes = [256, 128], strides = [1, 1]} : vector<256x384xf32> to vector<256x128xf32>
    %10 = arith.truncf %9 : vector<256x128xf32> to vector<256x128xbf16>
    %11 = vector.extract_strided_slice %4 {offsets = [0, 256], sizes = [256, 128], strides = [1, 1]} : vector<256x384xf32> to vector<256x128xf32>
    %12 = arith.truncf %11 : vector<256x128xf32> to vector<256x128xbf16>
    %cst_5 = arith.constant dense<0.000000e+00> : vector<256x256xf32>
    %13 = tpu.matmul %8, %10, %cst_5 {dimension_numbers = #tpu.dot_dimension_numbers<[1], [1], [0], [0], [0, 0, 1, 0], [], []>} : vector<256x128xbf16>, vector<256x128xbf16>, vector<256x256xf32> -> vector<256x256xf32>
    %14 = tpu.iota {dimensions = array<i32: 0>} : vector<256x1xi32>
    %15 = tpu.iota {dimensions = array<i32: 1>} : vector<1x256xi32>
    %16 = vector.broadcast %15 : vector<1x256xi32> to vector<256x256xi32>
    %17 = vector.broadcast %14 : vector<256x1xi32> to vector<256x256xi32>
    %18 = arith.cmpi sle, %16, %17 : vector<256x256xi32>
    %cst_6 = arith.constant 0xFF800000 : f32
    %19 = vector.broadcast %cst_6 : f32 to vector<256x256xf32>
    %20 = arith.select %18, %13, %19 : vector<256x256xi1>, vector<256x256xf32>
    %cst_7 = arith.constant dense<0xFF800000> : vector<256xf32>
    %21 = vector.multi_reduction <maximumf>, %20, %cst_7 [1] : vector<256x256xf32> to vector<256xf32>
    %22 = vector.shape_cast %21 : vector<256xf32> to vector<256x1xf32>
    %23 = vector.broadcast %22 : vector<256x1xf32> to vector<256x256xf32>
    %24 = arith.subf %20, %23 : vector<256x256xf32>
    %25 = math.exp %24 : vector<256x256xf32>
    %cst_8 = arith.constant dense<0.000000e+00> : vector<256xf32>
    %26 = vector.multi_reduction <add>, %25, %cst_8 [1] : vector<256x256xf32> to vector<256xf32>
    %27 = vector.shape_cast %26 : vector<256xf32> to vector<256x1xf32>
    %28 = tpu.reciprocal %27 {approx = true} : vector<256x1xf32> -> vector<256x1xf32>
    %29 = vector.broadcast %28 : vector<256x1xf32> to vector<256x256xf32>
    %30 = arith.mulf %25, %29 : vector<256x256xf32>
    %31 = arith.truncf %30 : vector<256x256xf32> to vector<256x256xbf16>
    %cst_9 = arith.constant dense<0.000000e+00> : vector<256x128xf32>
    %32 = tpu.matmul %31, %12, %cst_9 {dimension_numbers = #tpu.dot_dimension_numbers<[1], [0], [0], [1], [0, 0, 1, 1], [], []>} : vector<256x256xbf16>, vector<256x128xbf16>, vector<256x128xf32> -> vector<256x128xf32>
    %c0_10 = arith.constant 0 : index
    %c0_11 = arith.constant 0 : index
    %c0_12 = arith.constant 0 : index
    %33 = vector.load %arg3[%c0_10, %c0_11, %c0_12] : memref<1x256x128xf32, #tpu.memory_space<vmem>>, vector<1x256x128xf32>
    %34 = vector.shape_cast %33 : vector<1x256x128xf32> to vector<256x128xf32>
    %35 = vector.shape_cast %32 : vector<256x128xf32> to vector<1x256x128xf32>
    tpu.vector_store %arg3[%c0_10, %c0_11, %c0_12], %35 {strides = array<i32>} : memref<1x256x128xf32, #tpu.memory_space<vmem>>, vector<1x256x128xf32>,
    return
  }
  func.func @transform_0(%arg0: i32) -> (i32, i32, i32) {
    %c0_i32 = arith.constant 0 : i32
    %c0_i32_0 = arith.constant 0 : i32
    %c0_i32_1 = arith.constant 0 : i32
    return %arg0, %c0_i32, %c0_i32_0 : i32, i32, i32
  }
  func.func @transform_1(%arg0: i32) -> (i32, i32) {
    %c0_i32 = arith.constant 0 : i32
    %c0_i32_0 = arith.constant 0 : i32
    %c0_i32_1 = arith.constant 0 : i32
    return %c0_i32, %c0_i32_0 : i32, i32
  }
  func.func @transform_2(%arg0: i32) -> (i32, i32, i32) {
    %c0_i32 = arith.constant 0 : i32
    %c0_i32_0 = arith.constant 0 : i32
    %c0_i32_1 = arith.constant 0 : i32
    return %arg0, %c0_i32, %c0_i32_0 : i32, i32, i32
  }
}

</mosaic_0001>

<bundles_post_ra>
// kernel: tpu_custom_call.1
= control target key start
LH: loop header
LB: loop body
LE: loop exit
PB: predicated region body
PF: predicated region fallthrough
CT: control target
= control target key end

     0   :  { %7 = vsyncpa [#allocation3], 0  ;;  %s5287_s0 = inlined_call_operand.hbm [shape: f32[2,256,384], index: 0, kind: input, shape index: {}]   ;;  %s5288_s1 = inlined_call_operand.hbm [shape: bf16[384,384], index: 1, kind: input, shape index: {}]   ;;  %s5289_s2 = inlined_call_operand.hbm [shape: f32[2,256,128], index: 2, kind: output, shape index: {}]  }
   0x1   :  { %9 = vsyncpa [#allocation3 + $0x1], 0 }
   0x2   :  { %10 = vsyncpa [#allocation6], 0 }
   0x3   :  { %11 = vsyncpa [#allocation4], 0 }
   0x4   :  { %13 = vsyncpa [#allocation4 + $0x1], 0  ;;  %s3659_s9 = smov 0   ;;  %s3661_s10 = smov 0  }
   0x5   :  { %s3663_s11 = smov 0   ;;  %s3665_s12 = smov 0  }
   0x6 LB: > { %s3680_s13 = sadd.s32 4294967295, %s3635_s12   ;;  %s2849_s14 = sadd.s32 4294967294, %s3635_s12   ;;  %s3635_s12 = sphi %s3665_s12, %s5624_s12   ;;  %s3631_s11 = sphi %s3663_s11, %s5623_s11   ;;  %s3627_s10 = sphi %s3661_s10, %s5622_s10   ;;  %s3623_s9 = sphi %s3659_s9, %s5621_s9  }
   0x7   : > { %p39_p0 = scmp.ne.s32.totalorder %s3627_s10, %s3623_s9  ;;  %p40_p1 = scmp.eq.s32.totalorder %s3680_s13, 0 }
   0x8   : > { %p84_p2 = scmp.eq.s32.totalorder %s3680_s13, 1  ;;  %p90_p3 = scmp.eq.s32.totalorder %s2849_s14, 1 }
   0x9   : > { %p3689_p4 = por %p40_p1, %p39_p0  ;;  %p2850_p5 = scmp.ge.s32.totalorder %s3635_s12, 1 }
   0xa   : > { %p3694_p6 = por %p90_p3, %p39_p0  ;;  %p97_p7 = scmp.lt.s32.totalorder %s3635_s12, 3 }
   0xb   : > { %s108_s19 = sshll.u32 %s5288_s1, 4  ;;  %s3637_s21 = smov [#allocation5]   ;;  %s109_s19 = int_to_ptr.hbm [resolvable:$true] %s108_s19 }
   0xc   : > { %p3702_p8 = pnand %p2850_p5, %p97_p7  ;;  %s110_s22 = sshll.u32 %s3637_s21, 4  ;;  %s111_s22 = int_to_ptr.vmem [resolvable:$true] %s110_s22 }
   0xd   : > { %s3712_s23 = sadd.s32 1, %s3635_s12   ;;  %s3638_s24 = smov 192  }
   0xe   : > { %p3258_p9 = pneg %p3702_p8  ;;  %s3639_s25 = smov 12  }
   0xf   : > { %s23_s26 = ssub.s32 %s3635_s12, %s3712_s23  ;;  %s26_s27 = sadd.s32 1, %s3631_s11 }
  0x10   : > { %p3259_p10 = pnand %p3258_p9, %p40_p1  ;;  %p24_p12 = scmp.eq.s32.totalorder %s23_s26, 0 }
  0x11   : > { %p33_p13 = scmp.ne.s32.totalorder %s3631_s11, %s3627_s10  ;;  %p34_p0 = scmp.eq.s32.totalorder %s3635_s12, 0 }
  0x12   : > { %3261 = dma.hbm_to_vmem [thread:$0]  (!%p3259_p10), %s109_s19, 9216, %s111_s22, [#allocation6], %s3638_s24, %s3638_s24, %s3639_s25  }
  0x13   : > { %p3271_p3 = scmp.lt.s32.totalorder %s3635_s12, 2  ;;  %p35_p5 = por %p34_p0, %p33_p13 }
  0x14   : > { %s3722_s28 = scalar_select %p24_p12, %s3631_s11, %s26_s27  }
  0x15   : > { %p3726_p7 = por %p84_p2, %p33_p13  ;;  %s124_s30 = sand.u32 1, %s3631_s11  }
  0x16   : > { %s3248_s3 = smul.u32 768, %s3635_s12  ;;  %p3735_p9 = pnand %p3271_p3, %p35_p5 }
  0x17   : > { %s3247_s4 = smul.u32 768, %s124_s30  ;;  %s125_s19 = scalar_lea.sflag [#allocation3], %s124_s30 }
  0x18   : > { %s133_s7 = scalar_lea.hbm %s5287_s0, %s3248_s3  ;;  %p3539_p10 = pneg %p3735_p9 }
  0x19   : > { %s134_s14 = sshll.u32 %s133_s7, 4  ;;  %s128_s17 = scalar_lea.vmem [#allocation2], %s3247_s4  ;;  %s135_s14 = int_to_ptr.hbm [resolvable:$true] %s134_s14 }
  0x1a   : > { %s136_s18 = sshll.u32 %s128_s17, 4  ;;  %s3535_s21 = sshra.s32 %s135_s14, 4  ;;  %s137_s18 = int_to_ptr.vmem [resolvable:$true] %s136_s18  ;;  %s3536_s21 = int_to_ptr.hbm [resolvable:$true] %s3535_s21 }
  0x1b   : > { %s3537_s22 = scalar_lea.hbm %s3536_s21, 768  ;;  %s3542_s26 = scalar_lea.hbm %s5287_s0, 1536 }
  0x1c   : > { %p3538_p2 = scmp.ne.s32.totalorder %s3536_s21, %s3537_s22  ;;  %p3543_p0 = scmp.lt.s32.totalorder %s3536_s21, %s5287_s0 }
  0x1d   : > { %p3544_p3 = scmp.lt.s32.totalorder %s3542_s26, %s3537_s22 }
  0x1e   : > { %p3540_p12 = pnand %p3539_p10, %p3538_p2 }
  0x1f   : > { %p3545_p5 = por %p3544_p3, %p3543_p0 }
  0x20   : > { %p3541_p13 = pneg %p3540_p12 }
  0x22   : > { %p3546_p11 = pnand %p3545_p5, %p3541_p13 }
  0x24   : > { %3549 = shalt.err (!%p3546_p11)
}
  0x25   : > { %s3640_s30 = smov 384   ;;  %s3641_s4 = smov 24  }
  0x26   : > { %3265 = dma.hbm_to_vmem [thread:$0]  (!%p3735_p9), %s135_s14, 12288, %s137_s18, %s125_s19, %s3640_s30, %s3640_s30, %s3641_s4  }
  0x27   : > { %148 = sbr.rel (%p3702_p8) target bundleno = 1698 (0x6a2), region = 28 }
  0x2c   : > { %s3752_s5 = sand.u32 1, %s3627_s10  }
  0x2d   : > { %s3249_s6 = smul.u32 768, %s3752_s5  ;;  %s151_s7 = scalar_lea.sflag [#allocation3], %s3752_s5 }
  0x2f   : > { %s3756_s17 = scalar_lea.vmem [#allocation2], %s3249_s6 }
  0x30   : > { %3610 = dma.done.wait (%p3689_p4), %s151_s7, 12288  }
  0x31   : > { %3612 = vsyncadd (%p3689_p4), %s151_s7, 4294955008 }
  0x32   : > { %3614 = dma.done.wait (%p40_p1), [#allocation6], 9216  }
  0x33   : > { %3616 = vsyncadd (%p40_p1), [#allocation6], 4294958080  ;;  %v2943_v0 = vld [vmem:[#allocation5 + $0xa8] sm:$0xf]  ;;  %v3172_v1 = vld [vmem:[#allocation5 + $0xb0] sm:$0xf0] }
  0x34   : > { %v2931_v2 = vld [vmem:[#allocation5 + $0x90] sm:$0xf]  ;;  %v2944_v3 = vor.u32 %v3172_v1, %v2943_v0  ;;  %v3169_v4 = vld [vmem:[#allocation5 + $0x98] sm:$0xf0]  ;;  %v2919_v6 = vld [vmem:[#allocation5 + $0x78] sm:$0xf] }
  0x35   : > { %v2932_v5 = vor.u32 %v3169_v4, %v2931_v2  ;;  %v3166_v7 = vld [vmem:[#allocation5 + $0x80] sm:$0xf0]  ;;  %v2907_v9 = vld [vmem:[#allocation5 + $0x60] sm:$0xf]  ;;  %v3163_v10 = vld [vmem:[#allocation5 + $0x68] sm:$0xf0] }
  0x36   : > { %3223 = vmatpush.bf16.msra.mxu1 %v2944_v3  ;;  %3224 = vmatpush.bf16.msra.mxu2 %v2944_v3  ;;  %v2920_v8 = vor.u32 %v3166_v7, %v2919_v6  ;;  %v2908_v11 = vor.u32 %v3163_v10, %v2907_v9  ;;  %v2895_v12 = vld [vmem:[#allocation5 + $0x48] sm:$0xf]  ;;  %v3160_v13 = vld [vmem:[#allocation5 + $0x50] sm:$0xf0]  ;;  %v2883_v15 = vld [vmem:[#allocation5 + $0x30] sm:$0xf] }
  0x37   : > { %805 = vmatpush.bf16.msra.mxu0 %v2944_v3  ;;  %3225 = vmatpush.bf16.msra.mxu3 %v2944_v3  ;;  %v2896_v14 = vor.u32 %v3160_v13, %v2895_v12  ;;  %v3157_v16 = vld [vmem:[#allocation5 + $0x38] sm:$0xf0]  ;;  %v2871_v18 = vld [vmem:[#allocation5 + $0x18] sm:$0xf]  ;;  %v3154_v19 = vld [vmem:[#allocation5 + $0x20] sm:$0xf0] }
  0x38   : > { %v2884_v17 = vor.u32 %v3157_v16, %v2883_v15  ;;  %v2872_v20 = vor.u32 %v3154_v19, %v2871_v18  ;;  %v2859_v21 = vld [vmem:[#allocation5] sm:$0xf]  ;;  %v3151_v22 = vld [vmem:[#allocation5 + $0x8] sm:$0xf0]  ;;  %v208_v25 = vld [vmem:[%s3756_s17 + $0xd8] sm:$0xff]  ;;  %s2856_s15 = sshll.u32 %s3752_s5, 8 }
  0x39   : > { %v205_v23 = vld [vmem:[%s3756_s17 + $0xc0] sm:$0xff]  ;;  %v2860_v24 = vor.u32 %v3151_v22, %v2859_v21  ;;  %v232_v27 = vld [vmem:[%s3756_s17 + $0x198] sm:$0xff]  ;;  %v3039_v30 = vld [vmem:[#allocation5 + $0x168] sm:$0xf]  ;;  %s5016_s20 = scalar_lea.vmem [#allocation7], %s2856_s15  ;;  %s3222_s8 = sshll.u32 %s3680_s13, 8 }
  0x3a   : > { %3226 = vmatpush.bf16.msra.mxu1 %v2932_v5  ;;  %3227 = vmatpush.bf16.msra.mxu2 %v2932_v5  ;;  %v229_v26 = vld [vmem:[%s3756_s17 + $0x180] sm:$0xff]  ;;  %v3770_v28 = vpack.c.bf16 %v208_v25, %v205_v23  ;;  %v3196_v31 = vld [vmem:[#allocation5 + $0x170] sm:$0xf0]  ;;  %v3135_v32 = vld [vmem:[#allocation5 + $0x228] sm:$0xf]  ;;  %s2762_s19 = scalar_lea.hbm %s5289_s2, %s3222_s8  ;;  %s2763_s21 = sshll.u32 %s5016_s20, 4  ;;  %s2764_s21 = int_to_ptr.vmem [resolvable:$true] %s2763_s21 }
  0x3b   : > { %806 = vmatpush.bf16.msra.mxu0 %v2932_v5  ;;  %3228 = vmatpush.bf16.msra.mxu3 %v2932_v5  ;;  %v3772_v29 = vpack.c.bf16 %v232_v27, %v229_v26  ;;  %v3040_v33 = vor.u32 %v3196_v31, %v3039_v30  ;;  %v3220_v34 = vld [vmem:[#allocation5 + $0x230] sm:$0xf0]  ;;  %v3027_v36 = vld [vmem:[#allocation5 + $0x150] sm:$0xf]  ;;  %v3193_v37 = vld [vmem:[#allocation5 + $0x158] sm:$0xf0] }
  0x3c   : > { %v3136_v35 = vor.u32 %v3220_v34, %v3135_v32  ;;  %v3123_v38 = vld [vmem:[#allocation5 + $0x210] sm:$0xf]  ;;  %v3028_v39 = vor.u32 %v3193_v37, %v3027_v36  ;;  %v3217_v40 = vld [vmem:[#allocation5 + $0x218] sm:$0xf0]  ;;  %v3015_v42 = vld [vmem:[#allocation5 + $0x138] sm:$0xf] }
  0x3d   : > { %5353 = vst [vmem:[#allocation11_spill] sm:$0xff] %v3772_v29  ;;  %v3124_v41 = vor.u32 %v3217_v40, %v3123_v38  ;;  %v3190_v43 = vld [vmem:[#allocation5 + $0x140] sm:$0xf0]  ;;  %v3111_v44 = vld [vmem:[#allocation5 + $0x1f8] sm:$0xf]  ;;  %v211_v55 = vld [vmem:[%s3756_s17 + $0xf0] sm:$0xff] }
  0x3e   : > { %3229 = vmatpush.bf16.msra.mxu1 %v2920_v8  ;;  %3230 = vmatpush.bf16.msra.mxu2 %v2920_v8  ;;  %v3214_v45 = vld [vmem:[#allocation5 + $0x200] sm:$0xf0]  ;;  %v3016_v47 = vor.u32 %v3190_v43, %v3015_v42  ;;  %v256_v48 = vld [vmem:[%s3756_s17 + $0x258] sm:$0xff]  ;;  %v3003_v50 = vld [vmem:[#allocation5 + $0x120] sm:$0xf]  ;;  %s2765_s22 = sshll.u32 %s2762_s19, 4  ;;  %s2766_s22 = int_to_ptr.hbm [resolvable:$true] %s2765_s22 }
  0x3f   : > { %807 = vmatpush.bf16.msra.mxu0 %v2920_v8  ;;  %3231 = vmatpush.bf16.msra.mxu3 %v2920_v8  ;;  %v253_v46 = vld [vmem:[%s3756_s17 + $0x240] sm:$0xff]  ;;  %v3112_v49 = vor.u32 %v3214_v45, %v3111_v44  ;;  %v3187_v51 = vld [vmem:[#allocation5 + $0x128] sm:$0xf0]  ;;  %v235_v57 = vld [vmem:[%s3756_s17 + $0x1b0] sm:$0xff]  ;;  %s2751_s24 = scalar_lea.sflag [#allocation4], %s3752_s5  ;;  %s3579_s25 = sshra.s32 %s2766_s22, 4  ;;  %s3580_s25 = int_to_ptr.hbm [resolvable:$true] %s3579_s25 }
  0x40   : > { %v3778_v52 = vpack.c.bf16 %v256_v48, %v253_v46  ;;  %v3099_v53 = vld [vmem:[#allocation5 + $0x1e0] sm:$0xf]  ;;  %v3211_v54 = vld [vmem:[#allocation5 + $0x1e8] sm:$0xf0]  ;;  %v3004_v59 = vor.u32 %v3187_v51, %v3003_v50  ;;  %v184_v62 = vld [vmem:[%s3756_s17 + $0x18] sm:$0xff]  ;;  %s3581_s13 = scalar_lea.hbm %s3580_s25, 256  ;;  %p3586_p11 = scmp.lt.s32.totalorder %s3580_s25, %s5289_s2 }
  0x41   : > { %v214_v56 = vld [vmem:[%s3756_s17 + $0x108] sm:$0xff]  ;;  %v3100_v60 = vor.u32 %v3211_v54, %v3099_v53  ;;  %v181_v61 = vld [vmem:[%s3756_s17] sm:$0xff]  ;;  %v3184_v3 = vld [vmem:[#allocation5 + $0x110] sm:$0xf0]  ;;  %p3582_p1 = scmp.ne.s32.totalorder %s3580_s25, %s3581_s13  ;;  %s3585_s3 = scalar_lea.hbm %s5289_s2, 512 }
  0x42   : > { %3232 = vmatpush.bf16.msra.mxu1 %v2908_v11  ;;  %3233 = vmatpush.bf16.msra.mxu2 %v2908_v11  ;;  %5354 = vst [vmem:[#allocation12_spill] sm:$0xff] %v3778_v52  ;;  %v238_v58 = vld [vmem:[%s3756_s17 + $0x1c8] sm:$0xff]  ;;  %v3787_v63 = vpack.c.bf16 %v184_v62, %v181_v61  ;;  %v3789_v0 = vpack.c.bf16 %v214_v56, %v211_v55  ;;  %v3208_v6 = vld [vmem:[#allocation5 + $0x1d0] sm:$0xf0]  ;;  %v2979_v8 = vld [vmem:[#allocation5 + $0xf0] sm:$0xf]  ;;  %p3587_p9 = scmp.lt.s32.totalorder %s3585_s3, %s3581_s13 }
  0x43   : > { %808 = vmatpush.bf16.msra.mxu0 %v2908_v11  ;;  %3234 = vmatpush.bf16.msra.mxu3 %v2908_v11  ;;  %v3791_v1 = vpack.c.bf16 %v238_v58, %v235_v57  ;;  %v2991_v2 = vld [vmem:[#allocation5 + $0x108] sm:$0xf]  ;;  %v3181_v9 = vld [vmem:[#allocation5 + $0xf8] sm:$0xf0]  ;;  %v3075_v10 = vld [vmem:[#allocation5 + $0x1b0] sm:$0xf]  ;;  %p3583_p4 = pnand %p3582_p1, %p3726_p7 }
  0x44   : > { %5355 = vst [vmem:[#allocation13_spill] sm:$0xff] %v3789_v0  ;;  %v3087_v4 = vld [vmem:[#allocation5 + $0x1c8] sm:$0xf]  ;;  %v2992_v5 = vor.u32 %v3184_v3, %v2991_v2  ;;  %v2980_v11 = vor.u32 %v3181_v9, %v2979_v8  ;;  %v3205_v12 = vld [vmem:[#allocation5 + $0x1b8] sm:$0xf0]  ;;  %v259_v18 = vld [vmem:[%s3756_s17 + $0x270] sm:$0xff]  ;;  %p3588_p2 = por %p3587_p9, %p3586_p11 }
  0x45   : > { %5356 = vst [vmem:[#allocation14_spill] sm:$0xff] %v3791_v1  ;;  %v3088_v7 = vor.u32 %v3208_v6, %v3087_v4  ;;  %v3076_v13 = vor.u32 %v3205_v12, %v3075_v10  ;;  %v3178_v15 = vld [vmem:[#allocation5 + $0xe0] sm:$0xf0]  ;;  %v3063_v16 = vld [vmem:[#allocation5 + $0x198] sm:$0xf]  ;;  %v190_v36 = vld [vmem:[%s3756_s17 + $0x48] sm:$0xff]  ;;  %p3584_p8 = pneg %p3583_p4 }
  0x46   : > { %3235 = vmatpush.bf16.msra.mxu1 %v2896_v14  ;;  %3236 = vmatpush.bf16.msra.mxu2 %v2896_v14  ;;  %v2955_v22 = vld [vmem:[#allocation5 + $0xc0] sm:$0xf]  ;;  %v3175_v23 = vld [vmem:[#allocation5 + $0xc8] sm:$0xf0]  ;;  %v220_v30 = vld [vmem:[%s3756_s17 + $0x138] sm:$0xff] }
  0x47   : > { %809 = vmatpush.bf16.msra.mxu0 %v2896_v14  ;;  %3237 = vmatpush.bf16.msra.mxu3 %v2896_v14  ;;  %v2967_v14 = vld [vmem:[#allocation5 + $0xd8] sm:$0xf]  ;;  %v3051_v25 = vld [vmem:[#allocation5 + $0x180] sm:$0xf]  ;;  %v3199_v26 = vld [vmem:[#allocation5 + $0x188] sm:$0xf0]  ;;  %p3589_p10 = pnand %p3588_p2, %p3584_p8 }
  0x48   : > { %v2968_v19 = vor.u32 %v3178_v15, %v2967_v14  ;;  %v217_v27 = vld [vmem:[%s3756_s17 + $0x120] sm:$0xff]  ;;  %v244_v32 = vld [vmem:[%s3756_s17 + $0x1f8] sm:$0xff]  ;;  %v3052_v34 = vor.u32 %v3199_v26, %v3051_v25  ;;  %v3171_v42 = vld [vmem:[#allocation5 + $0xac] sm:$0xf] }
  0x49   : > { %v241_v31 = vld [vmem:[%s3756_s17 + $0x1e0] sm:$0xff]  ;;  %v3809_v38 = vpack.c.bf16 %v220_v30, %v217_v27  ;;  %v2945_v43 = vld [vmem:[#allocation5 + $0xb4] sm:$0xf0]  ;;  %v3168_v46 = vld [vmem:[#allocation5 + $0x94] sm:$0xf] }
  0x4a   : > { %3238 = vmatpush.bf16.msra.mxu1 %v2884_v17  ;;  %3239 = vmatpush.bf16.msra.mxu2 %v2884_v17  ;;  %v265_v40 = vld [vmem:[%s3756_s17 + $0x2a0] sm:$0xff]  ;;  %v2948_v45 = vor.u32 %v3171_v42, %v2945_v43  ;;  %v223_v48 = vld [vmem:[%s3756_s17 + $0x150] sm:$0xff]  ;;  %v226_v50 = vld [vmem:[%s3756_s17 + $0x168] sm:$0xff] }
  0x4b   : > { %810 = vmatpush.bf16.msra.mxu0 %v2884_v17  ;;  %3240 = vmatpush.bf16.msra.mxu3 %v2884_v17  ;;  %v3202_v17 = vld [vmem:[#allocation5 + $0x1a0] sm:$0xf0]  ;;  %5358 = vst [vmem:[#allocation16_spill] sm:$0xff] %v3809_v38  ;;  %v247_v51 = vld [vmem:[%s3756_s17 + $0x210] sm:$0xff]  ;;  %v250_v53 = vld [vmem:[%s3756_s17 + $0x228] sm:$0xff] }
  0x4c   : > { %v3064_v21 = vor.u32 %v3202_v17, %v3063_v16  ;;  %v193_v54 = vld [vmem:[%s3756_s17 + $0x60] sm:$0xff]  ;;  %v196_v55 = vld [vmem:[%s3756_s17 + $0x78] sm:$0xff]  ;;  %v2921_v58 = vld [vmem:[#allocation5 + $0x84] sm:$0xf0]  ;;  %v3831_v61 = vpack.c.bf16 %v250_v53, %v247_v51 }
  0x4d   : > { %v3827_v56 = vpack.c.bf16 %v196_v55, %v193_v54  ;;  %v3165_v57 = vld [vmem:[#allocation5 + $0x7c] sm:$0xf]  ;;  %v3041_v2 = vld [vmem:[#allocation5 + $0x174] sm:$0xf0]  ;;  %v3162_v4 = vld [vmem:[#allocation5 + $0x64] sm:$0xf] }
  0x4e   : > { %3241 = vmatpush.bf16.msra.mxu1 %v2872_v20  ;;  %3242 = vmatpush.bf16.msra.mxu2 %v2872_v20  ;;  %5362 = vst [vmem:[#allocation20_spill] sm:$0xff] %v3831_v61  ;;  %v2924_v62 = vor.u32 %v3165_v57, %v2921_v58  ;;  %v3192_v6 = vld [vmem:[#allocation5 + $0x154] sm:$0xf]  ;;  %v3029_v8 = vld [vmem:[#allocation5 + $0x15c] sm:$0xf0]  ;;  %v186_v30 = vld [vmem:[%s3756_s17 + $0x28] sm:$0xff] }
  0x4f   : > { %811 = vmatpush.bf16.msra.mxu0 %v2872_v20  ;;  %3243 = vmatpush.bf16.msra.mxu3 %v2872_v20  ;;  %v262_v20 = vld [vmem:[%s3756_s17 + $0x288] sm:$0xff]  ;;  %v3032_v9 = vor.u32 %v3192_v6, %v3029_v8  ;;  %v271_v10 = vld [vmem:[%s3756_s17 + $0x2d0] sm:$0xff]  ;;  %v3189_v14 = vld [vmem:[#allocation5 + $0x13c] sm:$0xf] }
  0x50   : > { %v3159_v12 = vld [vmem:[#allocation5 + $0x4c] sm:$0xf]  ;;  %v3017_v17 = vld [vmem:[#allocation5 + $0x144] sm:$0xf0]  ;;  %v3005_v25 = vld [vmem:[#allocation5 + $0x12c] sm:$0xf0] }
  0x51   : > { %v185_v26 = vld [vmem:[%s3756_s17 + $0x20] sm:$0xff]  ;;  %v183_v27 = vld [vmem:[%s3756_s17 + $0x10] sm:$0xff]  ;;  %v3177_v54 = vld [vmem:[#allocation5 + $0xdc] sm:$0xf] }
  0x52   : > { %3244 = vmatpush.bf16.msra.mxu1 %v2860_v24  ;;  %3245 = vmatpush.bf16.msra.mxu2 %v2860_v24  ;;  %v3851_v42 = vpack.c.bf16 %v186_v30, %v183_v27  ;;  %v2981_v51 = vld [vmem:[#allocation5 + $0xfc] sm:$0xf0]  ;;  %v2969_v55 = vld [vmem:[#allocation5 + $0xe4] sm:$0xf0]  ;;  %v3174_v58 = vld [vmem:[#allocation5 + $0xc4] sm:$0xf] }
  0x53   : > { %812 = vmatpush.bf16.msra.mxu0 %v2860_v24  ;;  %3246 = vmatpush.bf16.msra.mxu3 %v2860_v24  ;;  %v3798_v24 = vpack.c.bf16 %v262_v20, %v259_v18  ;;  %v3020_v18 = vor.u32 %v3189_v14, %v3017_v17  ;;  %v2885_v20 = vld [vmem:[#allocation5 + $0x3c] sm:$0xf0]  ;;  %v2972_v57 = vor.u32 %v3177_v54, %v2969_v55  ;;  %v194_v8 = vld [vmem:[%s3756_s17 + $0x68] sm:$0xff]  ;;  %v200_v14 = vld [vmem:[%s3756_s17 + $0x98] sm:$0xff] }
  0x54   : > { %v201_v17 = vld [vmem:[%s3756_s17 + $0xa0] sm:$0xff]  ;;  %v218_v55 = vld [vmem:[%s3756_s17 + $0x128] sm:$0xff] }
  0x55   : > { %833 = vmatmul.bf16.vlgmr.msra.gmra.mxu1 %v3770_v28  ;;  %853 = vmatmul.bf16.vlgmr.msra.gmra.mxu2 %v3772_v29  ;;  %5357 = vst [vmem:[#allocation15_spill] sm:$0xff] %v3798_v24 }
  0x56   : > { %894 = vmatpush.bf16.msrb.mxu1 %v3040_v33  ;;  %983 = vmatpush.bf16.msrb.mxu2 %v3136_v35  ;;  %v2956_v33 = vor.u32 %v3175_v23, %v2955_v22  ;;  %v187_v35 = vld [vmem:[%s3756_s17 + $0x30] sm:$0xff]  ;;  %v182_v22 = vld [vmem:[%s3756_s17 + $0x8] sm:$0xff] }
  0x57   : > { %873 = vmatmul.bf16.vlgmr.msra.gmra.mxu3 %v3778_v52  ;;  %813 = vmatmul.bf16.vlgmr.msra.gmra.mxu0 %v3787_v63  ;;  %v3807_v37 = vpack.c.bf16 %v190_v36, %v187_v35  ;;  %v3153_v35 = vld [vmem:[#allocation5 + $0x1c] sm:$0xf]  ;;  %v2873_v36 = vld [vmem:[#allocation5 + $0x24] sm:$0xf0] }
  0x58   : > { %1072 = vmatpush.bf16.msrb.mxu3 %v2948_v45  ;;  %v2876_v43 = vor.u32 %v3153_v35, %v2873_v36  ;;  %v2993_v45 = vld [vmem:[#allocation5 + $0x114] sm:$0xf0]  ;;  %v215_v35 = vld [vmem:[%s3756_s17 + $0x110] sm:$0xff]  ;;  %v213_v36 = vld [vmem:[%s3756_s17 + $0x100] sm:$0xff] }
  0x5a   : > { %895 = vmatpush.bf16.msrb.mxu1 %v3028_v39  ;;  %984 = vmatpush.bf16.msrb.mxu2 %v3124_v41  ;;  %v3811_v39 = vpack.c.bf16 %v244_v32, %v241_v31  ;;  %v268_v41 = vld [vmem:[%s3756_s17 + $0x2b8] sm:$0xff]  ;;  %v199_v32 = vld [vmem:[%s3756_s17 + $0x90] sm:$0xff] }
  0x5b   : > { %v3818_v44 = vpack.c.bf16 %v268_v41, %v265_v40  ;;  %v3183_v40 = vld [vmem:[#allocation5 + $0x10c] sm:$0xf]  ;;  %v3849_v41 = vpack.c.bf16 %v185_v26, %v182_v22  ;;  %v209_v22 = vld [vmem:[%s3756_s17 + $0xe0] sm:$0xff] }
  0x5c   : > { %5359 = vst [vmem:[#allocation17_spill] sm:$0xff] %v3811_v39 }
  0x5d   : > { %5360 = vst [vmem:[#allocation18_spill] sm:$0xff] %v3818_v44 }
  0x5e   : > { %896 = vmatpush.bf16.msrb.mxu1 %v3016_v47  ;;  %985 = vmatpush.bf16.msrb.mxu2 %v3112_v49  ;;  %v2933_v47 = vld [vmem:[#allocation5 + $0x9c] sm:$0xf0] }
  0x5f   : > { %v2936_v49 = vor.u32 %v3168_v46, %v2933_v47  ;;  %v2996_v46 = vor.u32 %v3183_v40, %v2993_v45  ;;  %v3150_v47 = vld [vmem:[#allocation5 + $0x4] sm:$0xf]  ;;  %v216_v40 = vld [vmem:[%s3756_s17 + $0x118] sm:$0xff] }
  0x61   : > { %1073 = vmatpush.bf16.msrb.mxu3 %v2936_v49  ;;  %v3180_v49 = vld [vmem:[#allocation5 + $0xf4] sm:$0xf] }
  0x62   : > { %897 = vmatpush.bf16.msrb.mxu1 %v3004_v59  ;;  %986 = vmatpush.bf16.msrb.mxu2 %v3100_v60  ;;  %v3195_v59 = vld [vmem:[#allocation5 + $0x16c] sm:$0xf]  ;;  %v3829_v60 = vpack.c.bf16 %v226_v50, %v223_v48  ;;  %v2861_v48 = vld [vmem:[#allocation5 + $0xc] sm:$0xf0]  ;;  %v2984_v53 = vor.u32 %v3180_v49, %v2981_v51 }
  0x63   : > { %v3044_v3 = vor.u32 %v3195_v59, %v3041_v2  ;;  %v2864_v50 = vor.u32 %v3150_v47, %v2861_v48  ;;  %v2957_v59 = vld [vmem:[#allocation5 + $0xcc] sm:$0xf0]  ;;  %v3921_v48 = vpack.c.bf16 %v216_v40, %v213_v36 }
  0x64   : > { %5361 = vst [vmem:[#allocation19_spill] sm:$0xff] %v3829_v60  ;;  %v2960_v2 = vor.u32 %v3174_v58, %v2957_v59  ;;  %v219_v58 = vld [vmem:[%s3756_s17 + $0x130] sm:$0xff]  ;;  %v222_v59 = vld [vmem:[%s3756_s17 + $0x148] sm:$0xff] }
  0x65   : > { %838 = vmatmul.bf16.gmra.mxu1 %v3789_v0  ;;  %858 = vmatmul.bf16.gmra.mxu2 %v3791_v1  ;;  %5364 = vst [vmem:[#allocation22_spill] sm:$0xff] %v3921_v48 }
  0x66   : > { %898 = vmatpush.bf16.msrb.mxu1 %v2992_v5  ;;  %987 = vmatpush.bf16.msrb.mxu2 %v3088_v7  ;;  %v2909_v5 = vld [vmem:[#allocation5 + $0x6c] sm:$0xf0] }
  0x67   : > { %878 = vmatmul.bf16.gmra.mxu3 %v3798_v24  ;;  %818 = vmatmul.bf16.gmra.mxu0 %v3807_v37  ;;  %v2912_v7 = vor.u32 %v3162_v4, %v2909_v5  ;;  %v189_v4 = vld [vmem:[%s3756_s17 + $0x40] sm:$0xff]  ;;  %v192_v5 = vld [vmem:[%s3756_s17 + $0x58] sm:$0xff] }
  0x68   : > { %1074 = vmatpush.bf16.msrb.mxu3 %v2924_v62  ;;  %1161 = vmatpush.bf16.msrb.mxu0 %v3044_v3  ;;  %v188_v62 = vld [vmem:[%s3756_s17 + $0x38] sm:$0xff]  ;;  %v191_v3 = vld [vmem:[%s3756_s17 + $0x50] sm:$0xff] }
  0x69   : > { %v3861_v6 = vpack.c.bf16 %v191_v3, %v188_v62 }
  0x6a   : > { %899 = vmatpush.bf16.msrb.mxu1 %v2980_v11  ;;  %988 = vmatpush.bf16.msrb.mxu2 %v3076_v13  ;;  %v274_v11 = vld [vmem:[%s3756_s17 + $0x2e8] sm:$0xff]  ;;  %v2897_v13 = vld [vmem:[#allocation5 + $0x54] sm:$0xf0] }
  0x6b   : > { %v3838_v15 = vpack.c.bf16 %v274_v11, %v271_v10  ;;  %v2900_v16 = vor.u32 %v3159_v12, %v2897_v13  ;;  %v195_v10 = vld [vmem:[%s3756_s17 + $0x70] sm:$0xff]  ;;  %v198_v11 = vld [vmem:[%s3756_s17 + $0x88] sm:$0xff] }
  0x6c   : > { %1075 = vmatpush.bf16.msrb.mxu3 %v2912_v7  ;;  %1162 = vmatpush.bf16.msrb.mxu0 %v3032_v9  ;;  %v3863_v7 = vpack.c.bf16 %v192_v5, %v189_v4  ;;  %v197_v9 = vld [vmem:[%s3756_s17 + $0x80] sm:$0xff]  ;;  %v3875_v13 = vpack.c.bf16 %v198_v11, %v195_v10  ;;  %v3947_v5 = vpack.c.bf16 %v222_v59, %v219_v58  ;;  %v230_v59 = vld [vmem:[%s3756_s17 + $0x188] sm:$0xff] }
  0x6d   : > { %v3873_v12 = vpack.c.bf16 %v197_v9, %v194_v8 }
  0x6e   : > { %900 = vmatpush.bf16.msrb.mxu1 %v2968_v19  ;;  %989 = vmatpush.bf16.msrb.mxu2 %v3064_v21  ;;  %v3156_v19 = vld [vmem:[#allocation5 + $0x34] sm:$0xf]  ;;  %v3186_v21 = vld [vmem:[#allocation5 + $0x124] sm:$0xf]  ;;  %5368 = vst [vmem:[#allocation26_spill] sm:$0xff] %v3947_v5 }
  0x6f   : > { %v2888_v23 = vor.u32 %v3156_v19, %v2885_v20  ;;  %v3008_v31 = vor.u32 %v3186_v21, %v3005_v25  ;;  %v206_v21 = vld [vmem:[%s3756_s17 + $0xc8] sm:$0xff] }
  0x70   : > { %1076 = vmatpush.bf16.msrb.mxu3 %v2900_v16  ;;  %1163 = vmatpush.bf16.msrb.mxu0 %v3020_v18  ;;  %v203_v16 = vld [vmem:[%s3756_s17 + $0xb0] sm:$0xff]  ;;  %v204_v18 = vld [vmem:[%s3756_s17 + $0xb8] sm:$0xff]  ;;  %v210_v25 = vld [vmem:[%s3756_s17 + $0xe8] sm:$0xff]  ;;  %v3897_v26 = vpack.c.bf16 %v209_v22, %v206_v21 }
  0x71   : > { %v3885_v19 = vpack.c.bf16 %v203_v16, %v200_v14  ;;  %v3887_v20 = vpack.c.bf16 %v204_v18, %v201_v17  ;;  %v224_v16 = vld [vmem:[%s3756_s17 + $0x158] sm:$0xff]  ;;  %v227_v17 = vld [vmem:[%s3756_s17 + $0x170] sm:$0xff]  ;;  %v225_v18 = vld [vmem:[%s3756_s17 + $0x160] sm:$0xff] }
  0x72   : > { %901 = vmatpush.bf16.msrb.mxu1 %v2956_v33  ;;  %990 = vmatpush.bf16.msrb.mxu2 %v3052_v34  ;;  %v202_v33 = vld [vmem:[%s3756_s17 + $0xa8] sm:$0xff]  ;;  %v228_v21 = vld [vmem:[%s3756_s17 + $0x178] sm:$0xff] }
  0x73   : > { %v3847_v34 = vpack.c.bf16 %v202_v33, %v199_v32  ;;  %v212_v33 = vld [vmem:[%s3756_s17 + $0xf8] sm:$0xff] }
  0x74   : > { %1077 = vmatpush.bf16.msrb.mxu3 %v2888_v23  ;;  %1164 = vmatpush.bf16.msrb.mxu0 %v3008_v31  ;;  %v207_v23 = vld [vmem:[%s3756_s17 + $0xd0] sm:$0xff]  ;;  %v3919_v47 = vpack.c.bf16 %v215_v35, %v212_v33  ;;  %v3973_v33 = vpack.c.bf16 %v227_v17, %v224_v16  ;;  %v3975_v35 = vpack.c.bf16 %v228_v21, %v225_v18  ;;  %v233_v16 = vld [vmem:[%s3756_s17 + $0x1a0] sm:$0xff]  ;;  %v234_v18 = vld [vmem:[%s3756_s17 + $0x1a8] sm:$0xff] }
  0x75   : > { %843 = vmatmul.bf16.gmra.mxu1 %v3809_v38  ;;  %863 = vmatmul.bf16.gmra.mxu2 %v3811_v39  ;;  %v3899_v27 = vpack.c.bf16 %v210_v25, %v207_v23  ;;  %v231_v17 = vld [vmem:[%s3756_s17 + $0x190] sm:$0xff] }
  0x76   : > { %5363 = vst [vmem:[#allocation21_spill] sm:$0xff] %v3919_v47 }
  0x77   : > { %883 = vmatmul.bf16.gmra.mxu3 %v3818_v44  ;;  %823 = vmatmul.bf16.gmra.mxu0 %v3827_v56  ;;  %5371 = vst [vmem:[#allocation29_spill] sm:$0xff] %v3973_v33 }
  0x78   : > { %1078 = vmatpush.bf16.msrb.mxu3 %v2876_v43  ;;  %1165 = vmatpush.bf16.msrb.mxu0 %v2996_v46  ;;  %5372 = vst [vmem:[#allocation30_spill] sm:$0xff] %v3975_v35 }
  0x7c   : > { %1079 = vmatpush.bf16.msrb.mxu3 %v2864_v50  ;;  %1166 = vmatpush.bf16.msrb.mxu0 %v2984_v53 }
  0x80   : > { %1167 = vmatpush.bf16.msrb.mxu0 %v2972_v57  ;;  %v221_v57 = vld [vmem:[%s3756_s17 + $0x140] sm:$0xff] }
  0x81   : > { %v3945_v4 = vpack.c.bf16 %v221_v57, %v218_v55 }
  0x83   : > { %5367 = vst [vmem:[#allocation25_spill] sm:$0xff] %v3945_v4 }
  0x84   : > { %1168 = vmatpush.bf16.msrb.mxu0 %v2960_v2 }
  0x85   : > { %848 = vmatmul.bf16.gmra.mxu1 %v3829_v60  ;;  %868 = vmatmul.bf16.gmra.mxu2 %v3831_v61 }
  0x87   : > { %888 = vmatmul.bf16.gmra.mxu3 %v3838_v15  ;;  %828 = vmatmul.bf16.gmra.mxu0 %v3847_v34 }
  0x95   : > { %902 = vmatmul.bf16.vlgmr.msrb.gmra.mxu1 %v3849_v41  ;;  %991 = vmatmul.bf16.vlgmr.msrb.gmra.mxu2 %v3851_v42 }
  0x97   : > { %1080 = vmatmul.bf16.vlgmr.msrb.gmra.mxu3 %v3787_v63  ;;  %1169 = vmatmul.bf16.vlgmr.msrb.gmra.mxu0 %v3849_v41 }
  0xa5   : > { %907 = vmatmul.bf16.gmra.mxu1 %v3861_v6  ;;  %996 = vmatmul.bf16.gmra.mxu2 %v3863_v7 }
  0xa7   : > { %1085 = vmatmul.bf16.gmra.mxu3 %v3807_v37  ;;  %1174 = vmatmul.bf16.gmra.mxu0 %v3861_v6 }
  0xb5   : > { %912 = vmatmul.bf16.gmra.mxu1 %v3873_v12  ;;  %1001 = vmatmul.bf16.gmra.mxu2 %v3875_v13 }
  0xb7   : > { %1090 = vmatmul.bf16.gmra.mxu3 %v3827_v56  ;;  %1179 = vmatmul.bf16.gmra.mxu0 %v3873_v12 }
  0xc5   : > { %917 = vmatmul.bf16.gmra.mxu1 %v3885_v19  ;;  %1006 = vmatmul.bf16.gmra.mxu2 %v3887_v20 }
  0xc7   : > { %1095 = vmatmul.bf16.gmra.mxu3 %v3847_v34  ;;  %1184 = vmatmul.bf16.gmra.mxu0 %v3885_v19 }
  0xd2   : > { %v3901_v30 = vpop.f32.mrf.mxu1 }
  0xd4   : > { %v814_v43 = vpop.f32.mrf.mxu0 }
  0xd5   : > { %922 = vmatmul.bf16.gmra.mxu1 %v3897_v26  ;;  %1011 = vmatmul.bf16.gmra.mxu2 %v3899_v27 }
  0xd7   : > { %1100 = vmatmul.bf16.gmra.mxu3 %v3770_v28  ;;  %1189 = vmatmul.bf16.gmra.mxu0 %v3897_v26 }
  0xd8   : > { %v3906_v31 = vpop.f32.mrf.mxu2 }
  0xda   : > { %v3908_v32 = vpop.f32.mrf.mxu1  ;;  %v3917_v46 = vpop.f32.mrf.mxu3 }
  0xdc   : > { %v816_v50 = vpop.f32.mrf.mxu0 }
  0xe0   : > { %v3915_v45 = vpop.f32.mrf.mxu2 }
  0xe2   : > { %v3923_v49 = vpop.f32.mrf.mxu1  ;;  %v3930_v53 = vpop.f32.mrf.mxu3 }
  0xe3   : > { %5365 = vst [vmem:[#allocation23_spill] sm:$0xff] %v3930_v53 }
  0xe4   : > { %v3939_v62 = vpop.f32.mrf.mxu0 }
  0xe5   : > { %927 = vmatmul.bf16.gmra.mxu1 %v3919_v47  ;;  %1016 = vmatmul.bf16.gmra.mxu2 %v3921_v48 }
  0xe7   : > { %1105 = vmatmul.bf16.gmra.mxu3 %v3789_v0  ;;  %1194 = vmatmul.bf16.gmra.mxu0 %v3919_v47  ;;  %v236_v0 = vld [vmem:[%s3756_s17 + $0x1b8] sm:$0xff] }
  0xe8   : > { %v3928_v51 = vpop.f32.mrf.mxu2 }
  0xea   : > { %v3932_v54 = vpop.f32.mrf.mxu1  ;;  %v3943_v3 = vpop.f32.mrf.mxu3 }
  0xeb   : > { %5366 = vst [vmem:[#allocation24_spill] sm:$0xff] %v3943_v3 }
  0xec   : > { %v3954_v9 = vpop.f32.mrf.mxu0 }
  0xf0   : > { %v3941_v2 = vpop.f32.mrf.mxu2 }
  0xf2   : > { %v3949_v8 = vpop.f32.mrf.mxu1  ;;  %v3958_v11 = vpop.f32.mrf.mxu3 }
  0xf3   : > { %5369 = vst [vmem:[#allocation27_spill] sm:$0xff] %v3958_v11 }
  0xf4   : > { %v3967_v22 = vpop.f32.mrf.mxu0 }
  0xf5   : > { %932 = vmatmul.bf16.gmra.mxu1 %v3945_v4  ;;  %1021 = vmatmul.bf16.gmra.mxu2 %v3947_v5 }
  0xf7   : > { %1110 = vmatmul.bf16.gmra.mxu3 %v3809_v38  ;;  %1199 = vmatmul.bf16.gmra.mxu0 %v3945_v4  ;;  %v4001_v38 = vpack.c.bf16 %v233_v16, %v230_v59 }
  0xf8   : > { %v3956_v10 = vpop.f32.mrf.mxu2 }
  0xf9   : > { %5375 = vst [vmem:[#allocation33_spill] sm:$0xff] %v4001_v38 }
  0xfa   : > { %v3960_v14 = vpop.f32.mrf.mxu1  ;;  %v3971_v25 = vpop.f32.mrf.mxu3 }
  0xfb   : > { %5370 = vst [vmem:[#allocation28_spill] sm:$0xff] %v3971_v25 }
  0xfc   : > { %v3982_v40 = vpop.f32.mrf.mxu0 }
 0x100   : > { %v3969_v23 = vpop.f32.mrf.mxu2 }
 0x102   : > { %v3977_v36 = vpop.f32.mrf.mxu1  ;;  %v3986_v57 = vpop.f32.mrf.mxu3 }
 0x103   : > { %5373 = vst [vmem:[#allocation31_spill] sm:$0xff] %v3986_v57  ;;  %v4003_v57 = vpack.c.bf16 %v234_v18, %v231_v17  ;;  %v239_v17 = vld [vmem:[%s3756_s17 + $0x1d0] sm:$0xff]  ;;  %v237_v18 = vld [vmem:[%s3756_s17 + $0x1c0] sm:$0xff] }
 0x104   : > { %v3995_v21 = vpop.f32.mrf.mxu0  ;;  %v4019_v48 = vpack.c.bf16 %v239_v17, %v236_v0 }
 0x105   : > { %937 = vmatmul.bf16.gmra.mxu1 %v3973_v33  ;;  %1026 = vmatmul.bf16.gmra.mxu2 %v3975_v35  ;;  %5376 = vst [vmem:[#allocation34_spill] sm:$0xff] %v4003_v57 }
 0x106   : > { %5377 = vst [vmem:[#allocation35_spill] sm:$0xff] %v4019_v48 }
 0x107   : > { %1115 = vmatmul.bf16.gmra.mxu3 %v3829_v60  ;;  %1204 = vmatmul.bf16.gmra.mxu0 %v3973_v33 }
 0x108   : > { %v3984_v55 = vpop.f32.mrf.mxu2 }
 0x10a   : > { %v3988_v58 = vpop.f32.mrf.mxu1  ;;  %v3999_v35 = vpop.f32.mrf.mxu3 }
 0x10b   : > { %5374 = vst [vmem:[#allocation32_spill] sm:$0xff] %v3999_v35 }
 0x10c   : > { %v4008_v60 = vpop.f32.mrf.mxu0 }
 0x110   : > { %v3997_v4 = vpop.f32.mrf.mxu2 }
 0x112   : > { %v903_v25 = vpop.f32.mrf.mxu1  ;;  %v4010_v47 = vpop.f32.mrf.mxu3 }
 0x113   : > { %v904_v5 = vadd.f32 %v903_v25, %v814_v43  ;;  %v240_v43 = vld [vmem:[%s3756_s17 + $0x1d8] sm:$0xff] }
 0x114   : > { %v4023_v53 = vpop.f32.mrf.mxu0 }
 0x115   : > { %942 = vmatmul.bf16.gmra.mxu1 %v4001_v38  ;;  %1031 = vmatmul.bf16.gmra.mxu2 %v4003_v57  ;;  %v4021_v57 = vpack.c.bf16 %v240_v43, %v237_v18  ;;  %v242_v43 = vld [vmem:[%s3756_s17 + $0x1e8] sm:$0xff] }
 0x117   : > { %1120 = vmatmul.bf16.gmra.mxu3 %v3772_v29  ;;  %5378 = vst [vmem:[#allocation36_spill] sm:$0xff] %v4021_v57  ;;  %1209 = vmatmul.bf16.gmra.mxu0 %v4001_v38 }
 0x118   : > { %v992_v11 = vpop.f32.mrf.mxu2 }
 0x119   : > { %v993_v35 = vadd.f32 %v992_v11, %v904_v5 }
 0x11a   : > { %v905_v59 = vpop.f32.mrf.mxu1  ;;  %v4017_v33 = vpop.f32.mrf.mxu3 }
 0x11b   : > { %v906_v16 = vadd.f32 %v905_v59, %v816_v50  ;;  %v1606_v50 = vmul.f32 0.05103104, %v993_v35 }
 0x11c   : > { %v4033_v18 = vpop.f32.mrf.mxu0 }
 0x11d   : > { %5381 = vst [vmem:[#allocation39_spill] sm:$0xff] %v4033_v18 }
 0x120   : > { %v994_v25 = vpop.f32.mrf.mxu2 }
 0x121   : > { %v995_v3 = vadd.f32 %v994_v25, %v906_v16  ;;  %v243_v25 = vld [vmem:[%s3756_s17 + $0x1f0] sm:$0xff] }
 0x122   : > { %v908_v5 = vpop.f32.mrf.mxu1  ;;  %v4031_v16 = vpop.f32.mrf.mxu3 }
 0x123   : > { %v1607_v11 = vmul.f32 0.05103104, %v995_v3  ;;  %v909_v59 = vadd.f32 %v908_v5, %v3939_v62  ;;  %5380 = vst [vmem:[#allocation38_spill] sm:$0xff] %v4031_v16  ;;  %v245_v62 = vld [vmem:[%s3756_s17 + $0x200] sm:$0xff]  ;;  %v246_v5 = vld [vmem:[%s3756_s17 + $0x208] sm:$0xff] }
 0x124   : > { %v4045_v38 = vpack.c.bf16 %v246_v5, %v243_v25 }
 0x125   : > { %v4027_v29 = vpack.c.bf16 %v1607_v11, %v1606_v50  ;;  %947 = vmatmul.bf16.gmra.mxu1 %v4019_v48  ;;  %1036 = vmatmul.bf16.gmra.mxu2 %v4021_v57  ;;  %v4043_v57 = vpack.c.bf16 %v245_v62, %v242_v43 }
 0x126   : > { %5383 = vst [vmem:[#allocation41_spill] sm:$0xff] %v4045_v38 }
 0x127   : > { %5379 = vst [vmem:[#allocation37_spill] sm:$0xff] %v4027_v29  ;;  %1125 = vmatmul.bf16.gmra.mxu3 %v3791_v1  ;;  %1214 = vmatmul.bf16.gmra.mxu0 %v4019_v48  ;;  %v249_v48 = vld [vmem:[%s3756_s17 + $0x220] sm:$0xff]  ;;  %v252_v1 = vld [vmem:[%s3756_s17 + $0x238] sm:$0xff] }
 0x128   : > { %v997_v0 = vpop.f32.mrf.mxu2  ;;  %5382 = vst [vmem:[#allocation40_spill] sm:$0xff] %v4043_v57 }
 0x129   : > { %v998_v17 = vadd.f32 %v997_v0, %v909_v59  ;;  %v4047_v59 = vpop.f32.mrf.mxu0 }
 0x12a   : > { %v910_v35 = vpop.f32.mrf.mxu1  ;;  %v4041_v11 = vpop.f32.mrf.mxu3  ;;  %5384 = vst [vmem:[#allocation42_spill] sm:$0xff] %v4047_v59 }
 0x12b   : > { %v911_v3 = vadd.f32 %v910_v35, %v3954_v9  ;;  %v1608_v18 = vmul.f32 0.05103104, %v998_v17  ;;  %v3219_v35 = vld [vmem:[#allocation5 + $0x22c] sm:$0xf] }
 0x130   : > { %v999_v50 = vpop.f32.mrf.mxu2 }
 0x131   : > { %v1000_v29 = vadd.f32 %v999_v50, %v911_v3  ;;  %v3137_v3 = vld [vmem:[#allocation5 + $0x234] sm:$0xf0] }
 0x132   : > { %v913_v0 = vpop.f32.mrf.mxu1  ;;  %v3140_v62 = vor.u32 %v3219_v35, %v3137_v3  ;;  %v4069_v3 = vpack.c.bf16 %v252_v1, %v249_v48 }
 0x133   : > { %v1609_v16 = vmul.f32 0.05103104, %v1000_v29  ;;  %v914_v9 = vadd.f32 %v913_v0, %v3967_v22  ;;  %v4055_v29 = vpop.f32.mrf.mxu3  ;;  %v4057_v22 = vpop.f32.mrf.mxu0  ;;  %v248_v0 = vld [vmem:[%s3756_s17 + $0x218] sm:$0xff] }
 0x134   : > { %1250 = vmatpush.bf16.msra.mxu1 %v3140_v62  ;;  %5387 = vst [vmem:[#allocation45_spill] sm:$0xff] %v4069_v3 }
 0x135   : > { %952 = vmatmul.bf16.gmra.mxu1 %v4043_v57  ;;  %1041 = vmatmul.bf16.gmra.mxu2 %v4045_v38  ;;  %v4053_v43 = vpack.c.bf16 %v1609_v16, %v1608_v18  ;;  %v251_v38 = vld [vmem:[%s3756_s17 + $0x230] sm:$0xff] }
 0x136   : > { %v4067_v35 = vpack.c.bf16 %v251_v38, %v248_v0 }
 0x137   : > { %5385 = vst [vmem:[#allocation43_spill] sm:$0xff] %v4053_v43  ;;  %1130 = vmatmul.bf16.gmra.mxu3 %v3811_v39  ;;  %1219 = vmatmul.bf16.gmra.mxu0 %v4043_v57  ;;  %v258_v43 = vld [vmem:[%s3756_s17 + $0x268] sm:$0xff] }
 0x138   : > { %v1002_v25 = vpop.f32.mrf.mxu2  ;;  %5386 = vst [vmem:[#allocation44_spill] sm:$0xff] %v4067_v35 }
 0x139   : > { %v1003_v17 = vadd.f32 %v1002_v25, %v914_v9 }
 0x13a   : > { %v915_v5 = vpop.f32.mrf.mxu1 }
 0x13b   : > { %v916_v50 = vadd.f32 %v915_v5, %v3982_v40  ;;  %v4065_v16 = vpop.f32.mrf.mxu3  ;;  %v4071_v9 = vpop.f32.mrf.mxu0  ;;  %v1610_v40 = vmul.f32 0.05103104, %v1003_v17 }
 0x140   : > { %v1004_v59 = vpop.f32.mrf.mxu2 }
 0x141   : > { %v1005_v18 = vadd.f32 %v1004_v59, %v916_v50 }
 0x142   : > { %v918_v62 = vpop.f32.mrf.mxu1 }
 0x143   : > { %v1611_v25 = vmul.f32 0.05103104, %v1005_v18  ;;  %v919_v5 = vadd.f32 %v918_v62, %v3995_v21  ;;  %v4079_v48 = vpop.f32.mrf.mxu3  ;;  %v4081_v50 = vpop.f32.mrf.mxu0  ;;  %v254_v18 = vld [vmem:[%s3756_s17 + $0x248] sm:$0xff]  ;;  %v257_v21 = vld [vmem:[%s3756_s17 + $0x260] sm:$0xff]  ;;  %v255_v62 = vld [vmem:[%s3756_s17 + $0x250] sm:$0xff] }
 0x144   : > { %5389 = vst [vmem:[#allocation47_spill] sm:$0xff] %v4081_v50 }
 0x145   : > { %957 = vmatmul.bf16.gmra.mxu1 %v4067_v35  ;;  %1046 = vmatmul.bf16.gmra.mxu2 %v4069_v3  ;;  %v4077_v38 = vpack.c.bf16 %v1611_v25, %v1610_v40  ;;  %v4091_v25 = vpack.c.bf16 %v257_v21, %v254_v18 }
 0x147   : > { %5388 = vst [vmem:[#allocation46_spill] sm:$0xff] %v4077_v38  ;;  %1135 = vmatmul.bf16.gmra.mxu3 %v3831_v61  ;;  %v4093_v38 = vpack.c.bf16 %v258_v43, %v255_v62  ;;  %1224 = vmatmul.bf16.gmra.mxu0 %v4067_v35  ;;  %v3213_v35 = vld [vmem:[#allocation5 + $0x1fc] sm:$0xf] }
 0x148   : > { %v1007_v1 = vpop.f32.mrf.mxu2 }
 0x149   : > { %v1008_v59 = vadd.f32 %v1007_v1, %v919_v5  ;;  %5391 = vst [vmem:[#allocation49_spill] sm:$0xff] %v4093_v38 }
 0x14a   : > { %v920_v17 = vpop.f32.mrf.mxu1 }
 0x14b   : > { %v921_v0 = vadd.f32 %v920_v17, %v4008_v60  ;;  %v4089_v39 = vpop.f32.mrf.mxu3  ;;  %v4095_v5 = vpop.f32.mrf.mxu0  ;;  %v1612_v3 = vmul.f32 0.05103104, %v1008_v59  ;;  %v3216_v60 = vld [vmem:[#allocation5 + $0x214] sm:$0xf]  ;;  %v3125_v17 = vld [vmem:[#allocation5 + $0x21c] sm:$0xf0] }
 0x14c   : > { %5390 = vst [vmem:[#allocation48_spill] sm:$0xff] %v4089_v39  ;;  %v3128_v43 = vor.u32 %v3216_v60, %v3125_v17  ;;  %v3101_v60 = vld [vmem:[#allocation5 + $0x1ec] sm:$0xf0] }
 0x14d   : > { %5392 = vst [vmem:[#allocation50_spill] sm:$0xff] %v4095_v5  ;;  %v260_v5 = vld [vmem:[%s3756_s17 + $0x278] sm:$0xff] }
 0x14e   : > { %1251 = vmatpush.bf16.msra.mxu1 %v3128_v43 }
 0x150   : > { %v1009_v57 = vpop.f32.mrf.mxu2 }
 0x151   : > { %v1010_v40 = vadd.f32 %v1009_v57, %v921_v0 }
 0x152   : > { %v923_v1 = vpop.f32.mrf.mxu1 }
 0x153   : > { %v1613_v50 = vmul.f32 0.05103104, %v1010_v40  ;;  %v924_v0 = vadd.f32 %v923_v1, %v3901_v30  ;;  %v4103_v59 = vpop.f32.mrf.mxu3  ;;  %v4105_v62 = vpop.f32.mrf.mxu0  ;;  %v3210_v1 = vld [vmem:[#allocation5 + $0x1e4] sm:$0xf] }
 0x154   : > { %5394 = vst [vmem:[#allocation52_spill] sm:$0xff] %v4103_v59  ;;  %v3104_v43 = vor.u32 %v3210_v1, %v3101_v60 }
 0x155   : > { %962 = vmatmul.bf16.gmra.mxu1 %v4091_v25  ;;  %1051 = vmatmul.bf16.gmra.mxu2 %v4093_v38  ;;  %v4100_v57 = vpack.c.bf16 %v1613_v50, %v1612_v3  ;;  %5395 = vst [vmem:[#allocation53_spill] sm:$0xff] %v4105_v62  ;;  %v3113_v38 = vld [vmem:[#allocation5 + $0x204] sm:$0xf0]  ;;  %v263_v3 = vld [vmem:[%s3756_s17 + $0x290] sm:$0xff]  ;;  %v261_v50 = vld [vmem:[%s3756_s17 + $0x280] sm:$0xff] }
 0x156   : > { %v3116_v61 = vor.u32 %v3213_v35, %v3113_v38  ;;  %v4115_v62 = vpack.c.bf16 %v263_v3, %v260_v5  ;;  %v3204_v3 = vld [vmem:[#allocation5 + $0x1b4] sm:$0xf] }
 0x157   : > { %5393 = vst [vmem:[#allocation51_spill] sm:$0xff] %v4100_v57  ;;  %1140 = vmatmul.bf16.gmra.mxu3 %v3778_v52  ;;  %v264_v57 = vld [vmem:[%s3756_s17 + $0x298] sm:$0xff]  ;;  %1229 = vmatmul.bf16.gmra.mxu0 %v4091_v25 }
 0x158   : > { %v1012_v18 = vpop.f32.mrf.mxu2  ;;  %1252 = vmatpush.bf16.msra.mxu1 %v3116_v61  ;;  %5397 = vst [vmem:[#allocation55_spill] sm:$0xff] %v4115_v62  ;;  %v4117_v59 = vpack.c.bf16 %v264_v57, %v261_v50  ;;  %v3207_v61 = vld [vmem:[#allocation5 + $0x1cc] sm:$0xf] }
 0x159   : > { %v1013_v21 = vadd.f32 %v1012_v18, %v924_v0 }
 0x15a   : > { %v925_v40 = vpop.f32.mrf.mxu1 }
 0x15b   : > { %v926_v30 = vadd.f32 %v925_v40, %v3908_v32  ;;  %v4113_v0 = vpop.f32.mrf.mxu3  ;;  %v4119_v35 = vpop.f32.mrf.mxu0  ;;  %v1614_v52 = vmul.f32 0.05103104, %v1013_v21  ;;  %v3089_v32 = vld [vmem:[#allocation5 + $0x1d4] sm:$0xf0]  ;;  %v3077_v21 = vld [vmem:[#allocation5 + $0x1bc] sm:$0xf0] }
 0x15c   : > { %5396 = vst [vmem:[#allocation54_spill] sm:$0xff] %v4113_v0  ;;  %1253 = vmatpush.bf16.msra.mxu1 %v3104_v43  ;;  %v3092_v40 = vor.u32 %v3207_v61, %v3089_v32  ;;  %v266_v61 = vld [vmem:[%s3756_s17 + $0x2a8] sm:$0xff] }
 0x15d   : > { %5398 = vst [vmem:[#allocation56_spill] sm:$0xff] %v4119_v35  ;;  %v270_v32 = vld [vmem:[%s3756_s17 + $0x2c8] sm:$0xff] }
 0x160   : > { %v1014_v17 = vpop.f32.mrf.mxu2  ;;  %1254 = vmatpush.bf16.msra.mxu1 %v3092_v40 }
 0x161   : > { %v1015_v18 = vadd.f32 %v1014_v17, %v926_v30  ;;  %v3080_v30 = vor.u32 %v3204_v3, %v3077_v21  ;;  %v3198_v3 = vld [vmem:[#allocation5 + $0x184] sm:$0xf]  ;;  %v3053_v21 = vld [vmem:[#allocation5 + $0x18c] sm:$0xf0] }
 0x162   : > { %v928_v38 = vpop.f32.mrf.mxu1 }
 0x163   : > { %v1615_v39 = vmul.f32 0.05103104, %v1015_v18  ;;  %v929_v57 = vadd.f32 %v928_v38, %v3923_v49  ;;  %v4127_v1 = vpop.f32.mrf.mxu3  ;;  %v4129_v17 = vpop.f32.mrf.mxu0  ;;  %v3201_v18 = vld [vmem:[#allocation5 + $0x19c] sm:$0xf]  ;;  %v269_v49 = vld [vmem:[%s3756_s17 + $0x2c0] sm:$0xff]  ;;  %v267_v38 = vld [vmem:[%s3756_s17 + $0x2b0] sm:$0xff] }
 0x164   : > { %5400 = vst [vmem:[#allocation58_spill] sm:$0xff] %v4127_v1  ;;  %1255 = vmatpush.bf16.msra.mxu1 %v3080_v30  ;;  %v4139_v30 = vpack.c.bf16 %v269_v49, %v266_v61  ;;  %v4141_v1 = vpack.c.bf16 %v270_v32, %v267_v38  ;;  %v3173_v61 = vld [vmem:[#allocation5 + $0xb8] sm:$0xf0]  ;;  %v3047_v38 = vld [vmem:[#allocation5 + $0x170] sm:$0xf] }
 0x165   : > { %967 = vmatmul.bf16.gmra.mxu1 %v4115_v62  ;;  %1056 = vmatmul.bf16.gmra.mxu2 %v4117_v59  ;;  %v4124_v5 = vpack.c.bf16 %v1615_v39, %v1614_v52  ;;  %5401 = vst [vmem:[#allocation59_spill] sm:$0xff] %v4129_v17  ;;  %v3065_v52 = vld [vmem:[#allocation5 + $0x1a4] sm:$0xf0] }
 0x166   : > { %v3068_v39 = vor.u32 %v3201_v18, %v3065_v52  ;;  %5403 = vst [vmem:[#allocation61_spill] sm:$0xff] %v4141_v1 }
 0x167   : > { %5399 = vst [vmem:[#allocation57_spill] sm:$0xff] %v4124_v5  ;;  %1145 = vmatmul.bf16.gmra.mxu3 %v3798_v24  ;;  %1234 = vmatmul.bf16.gmra.mxu0 %v4115_v62 }
 0x168   : > { %v1017_v50 = vpop.f32.mrf.mxu2  ;;  %1256 = vmatpush.bf16.msra.mxu1 %v3068_v39  ;;  %v2951_v39 = vld [vmem:[#allocation5 + $0xb0] sm:$0xf] }
 0x169   : > { %v1018_v60 = vadd.f32 %v1017_v50, %v929_v57  ;;  %v3056_v57 = vor.u32 %v3198_v3, %v3053_v21  ;;  %v3035_v21 = vld [vmem:[#allocation5 + $0x158] sm:$0xf] }
 0x16a   : > { %v930_v43 = vpop.f32.mrf.mxu1 }
 0x16b   : > { %v931_v40 = vadd.f32 %v930_v43, %v3932_v54  ;;  %v4137_v50 = vpop.f32.mrf.mxu3  ;;  %v4143_v18 = vpop.f32.mrf.mxu0  ;;  %v1616_v35 = vmul.f32 0.05103104, %v1018_v60 }
 0x16c   : > { %5402 = vst [vmem:[#allocation60_spill] sm:$0xff] %v4137_v50  ;;  %1257 = vmatpush.bf16.msra.mxu1 %v3056_v57  ;;  %v272_v57 = vld [vmem:[%s3756_s17 + $0x2d8] sm:$0xff] }
 0x16d   : > { %5404 = vst [vmem:[#allocation62_spill] sm:$0xff] %v4143_v18  ;;  %v2927_v18 = vld [vmem:[#allocation5 + $0x80] sm:$0xf] }
 0x170   : > { %v1019_v5 = vpop.f32.mrf.mxu2 }
 0x171   : > { %v1020_v17 = vadd.f32 %v1019_v5, %v931_v40  ;;  %v3197_v40 = vld [vmem:[#allocation5 + $0x178] sm:$0xf0] }
 0x172   : > { %v933_v52 = vpop.f32.mrf.mxu1 }
 0x173   : > { %v1617_v0 = vmul.f32 0.05103104, %v1020_v17  ;;  %v934_v5 = vadd.f32 %v933_v52, %v3949_v8  ;;  %v4151_v49 = vpop.f32.mrf.mxu3  ;;  %v2952_v17 = vor.u32 %v3173_v61, %v2951_v39  ;;  %v4153_v32 = vpop.f32.mrf.mxu0  ;;  %v3170_v8 = vld [vmem:[#allocation5 + $0xa0] sm:$0xf0] }
 0x174   : > { %5406 = vst [vmem:[#allocation64_spill] sm:$0xff] %v4151_v49  ;;  %v275_v49 = vld [vmem:[%s3756_s17 + $0x2f0] sm:$0xff] }
 0x175   : > { %972 = vmatmul.bf16.gmra.mxu1 %v4139_v30  ;;  %1061 = vmatmul.bf16.gmra.mxu2 %v4141_v1  ;;  %v4148_v54 = vpack.c.bf16 %v1617_v0, %v1616_v35  ;;  %5407 = vst [vmem:[#allocation65_spill] sm:$0xff] %v4153_v32  ;;  %v3048_v0 = vor.u32 %v3197_v40, %v3047_v38  ;;  %v2939_v35 = vld [vmem:[#allocation5 + $0x98] sm:$0xf]  ;;  %v3167_v38 = vld [vmem:[#allocation5 + $0x88] sm:$0xf0] }
 0x176   : > { %1339 = vmatpush.bf16.msra.mxu2 %v2952_v17  ;;  %v2940_v52 = vor.u32 %v3170_v8, %v2939_v35  ;;  %v3023_v40 = vld [vmem:[#allocation5 + $0x140] sm:$0xf]  ;;  %v4163_v50 = vpack.c.bf16 %v275_v49, %v272_v57  ;;  %v2928_v8 = vor.u32 %v3167_v38, %v2927_v18  ;;  %v3191_v1 = vld [vmem:[#allocation5 + $0x148] sm:$0xf0]  ;;  %v3011_v49 = vld [vmem:[#allocation5 + $0x128] sm:$0xf] }
 0x177   : > { %5405 = vst [vmem:[#allocation63_spill] sm:$0xff] %v4148_v54  ;;  %1428 = vmatpush.bf16.msra.mxu3 %v3048_v0  ;;  %v3194_v54 = vld [vmem:[#allocation5 + $0x160] sm:$0xf0]  ;;  %1239 = vmatmul.bf16.gmra.mxu0 %v4139_v30  ;;  %v3188_v57 = vld [vmem:[#allocation5 + $0x130] sm:$0xf0] }
 0x178   : > { %v1022_v43 = vpop.f32.mrf.mxu2  ;;  %1150 = vmatmul.bf16.gmra.mxu3 %v3818_v44  ;;  %v3036_v39 = vor.u32 %v3194_v54, %v3035_v21  ;;  %v3143_v54 = vld [vmem:[#allocation5 + $0x230] sm:$0xf]  ;;  %v3221_v21 = vld [vmem:[#allocation5 + $0x238] sm:$0xf0] }
 0x179   : > { %v1023_v60 = vadd.f32 %v1022_v43, %v934_v5  ;;  %v273_v5 = vld [vmem:[%s3756_s17 + $0x2e0] sm:$0xff]  ;;  %v276_v43 = vld [vmem:[%s3756_s17 + $0x2f8] sm:$0xff] }
 0x17a   : > { %v935_v3 = vpop.f32.mrf.mxu1  ;;  %1340 = vmatpush.bf16.msra.mxu2 %v2940_v52  ;;  %v4165_v35 = vpack.c.bf16 %v276_v43, %v273_v5  ;;  %v3144_v52 = vor.u32 %v3221_v21, %v3143_v54  ;;  %v3131_v5 = vld [vmem:[#allocation5 + $0x218] sm:$0xf]  ;;  %v3218_v43 = vld [vmem:[#allocation5 + $0x220] sm:$0xf0]  ;;  %v2999_v21 = vld [vmem:[#allocation5 + $0x110] sm:$0xf] }
 0x17b   : > { %v936_v61 = vadd.f32 %v935_v3, %v3960_v14  ;;  %v4161_v17 = vpop.f32.mrf.mxu3  ;;  %1429 = vmatpush.bf16.msra.mxu3 %v3036_v39  ;;  %v4167_v44 = vpop.f32.mrf.mxu0  ;;  %v3024_v3 = vor.u32 %v3191_v1, %v3023_v40  ;;  %v1618_v62 = vmul.f32 0.05103104, %v1023_v60  ;;  %v2915_v39 = vld [vmem:[#allocation5 + $0x68] sm:$0xf]  ;;  %v3012_v60 = vor.u32 %v3188_v57, %v3011_v49 }
 0x17c   : > { %1517 = vmatpush.bf16.msra.mxu0 %v3144_v52 }
 0x17e   : > { %1341 = vmatpush.bf16.msra.mxu2 %v2928_v8  ;;  %v3161_v8 = vld [vmem:[#allocation5 + $0x58] sm:$0xf0] }
 0x17f   : > { %1430 = vmatpush.bf16.msra.mxu3 %v3024_v3 }
 0x180   : > { %v1024_v32 = vpop.f32.mrf.mxu2 }
 0x181   : > { %v1025_v0 = vadd.f32 %v1024_v32, %v936_v61  ;;  %v3164_v32 = vld [vmem:[#allocation5 + $0x70] sm:$0xf0]  ;;  %v3132_v61 = vor.u32 %v3218_v43, %v3131_v5 }
 0x182   : > { %v938_v14 = vpop.f32.mrf.mxu1  ;;  %v2916_v18 = vor.u32 %v3164_v32, %v2915_v39  ;;  %v3185_v32 = vld [vmem:[#allocation5 + $0x118] sm:$0xf0] }
 0x183   : > { %v1619_v24 = vmul.f32 0.05103104, %v1025_v0  ;;  %v939_v38 = vadd.f32 %v938_v14, %v3977_v36  ;;  %v2903_v0 = vld [vmem:[#allocation5 + $0x50] sm:$0xf]  ;;  %v4175_v54 = vpop.f32.mrf.mxu3  ;;  %1431 = vmatpush.bf16.msra.mxu3 %v3012_v60  ;;  %1518 = vmatpush.bf16.msra.mxu0 %v3132_v61  ;;  %v4177_v39 = vpop.f32.mrf.mxu0  ;;  %v3000_v57 = vor.u32 %v3185_v32, %v2999_v21  ;;  %v2891_v36 = vld [vmem:[#allocation5 + $0x38] sm:$0xf] }
 0x184   : > { %1342 = vmatpush.bf16.msra.mxu2 %v2916_v18  ;;  %v2904_v52 = vor.u32 %v3161_v8, %v2903_v0  ;;  %5409 = vst [vmem:[#allocation67_spill] sm:$0xff] %v4177_v39  ;;  %v3158_v14 = vld [vmem:[#allocation5 + $0x40] sm:$0xf0]  ;;  %v2987_v18 = vld [vmem:[#allocation5 + $0xf8] sm:$0xf] }
 0x185   : > { %977 = vmatmul.bf16.gmra.mxu1 %v4163_v50  ;;  %1066 = vmatmul.bf16.gmra.mxu2 %v4165_v35  ;;  %v4172_v1 = vpack.c.bf16 %v1619_v24, %v1618_v62  ;;  %v3119_v24 = vld [vmem:[#allocation5 + $0x200] sm:$0xf]  ;;  %v3215_v62 = vld [vmem:[#allocation5 + $0x208] sm:$0xf0]  ;;  %v2892_v43 = vor.u32 %v3158_v14, %v2891_v36  ;;  %v3182_v60 = vld [vmem:[#allocation5 + $0x100] sm:$0xf0] }
 0x186   : > { %v3120_v5 = vor.u32 %v3215_v62, %v3119_v24  ;;  %v3107_v61 = vld [vmem:[#allocation5 + $0x1e8] sm:$0xf]  ;;  %v2879_v21 = vld [vmem:[#allocation5 + $0x20] sm:$0xf]  ;;  %v3155_v32 = vld [vmem:[#allocation5 + $0x28] sm:$0xf0] }
 0x187   : > { %5408 = vst [vmem:[#allocation66_spill] sm:$0xff] %v4172_v1  ;;  %1432 = vmatpush.bf16.msra.mxu3 %v3000_v57  ;;  %v2975_v24 = vld [vmem:[#allocation5 + $0xe0] sm:$0xf]  ;;  %v2880_v57 = vor.u32 %v3155_v32, %v2879_v21  ;;  %v3179_v36 = vld [vmem:[#allocation5 + $0xe8] sm:$0xf0]  ;;  %1244 = vmatmul.bf16.gmra.mxu0 %v4163_v50 }
 0x188   : > { %v1027_v40 = vpop.f32.mrf.mxu2  ;;  %1343 = vmatpush.bf16.msra.mxu2 %v2904_v52  ;;  %1519 = vmatpush.bf16.msra.mxu0 %v3120_v5  ;;  %v3095_v14 = vld [vmem:[#allocation5 + $0x1d0] sm:$0xf]  ;;  %v3209_v39 = vld [vmem:[#allocation5 + $0x1d8] sm:$0xf0]  ;;  %v3206_v21 = vld [vmem:[#allocation5 + $0x1c0] sm:$0xf0] }
 0x189   : > { %v1028_v3 = vadd.f32 %v1027_v40, %v939_v38  ;;  %1155 = vmatmul.bf16.gmra.mxu3 %v3838_v15  ;;  %v3212_v38 = vld [vmem:[#allocation5 + $0x1f0] sm:$0xf0]  ;;  %v2988_v40 = vor.u32 %v3182_v60, %v2987_v18  ;;  %v2976_v60 = vor.u32 %v3179_v36, %v2975_v24  ;;  %v3071_v36 = vld [vmem:[#allocation5 + $0x1a0] sm:$0xf] }
 0x18a   : > { %v940_v49 = vpop.f32.mrf.mxu1  ;;  %v3108_v0 = vor.u32 %v3212_v38, %v3107_v61  ;;  %v3096_v61 = vor.u32 %v3209_v39, %v3095_v14  ;;  %v3152_v38 = vld [vmem:[#allocation5 + $0x10] sm:$0xf0]  ;;  %v3203_v14 = vld [vmem:[#allocation5 + $0x1a8] sm:$0xf0] }
 0x18b   : > { %v941_v8 = vadd.f32 %v940_v49, %v3988_v58  ;;  %v4181_v52 = vpop.f32.mrf.mxu3  ;;  %1433 = vmatpush.bf16.msra.mxu3 %v2988_v40  ;;  %v4183_v5 = vpop.f32.mrf.mxu0  ;;  %v1620_v58 = vmul.f32 0.05103104, %v1028_v3  ;;  %v2963_v40 = vld [vmem:[#allocation5 + $0xc8] sm:$0xf] }
 0x18c   : > { %1344 = vmatpush.bf16.msra.mxu2 %v2892_v43  ;;  %1520 = vmatpush.bf16.msra.mxu0 %v3108_v0  ;;  %v2867_v43 = vld [vmem:[#allocation5 + $0x8] sm:$0xf]  ;;  %v3176_v0 = vld [vmem:[#allocation5 + $0xd0] sm:$0xf0] }
 0x18d   : > { %v2964_v24 = vor.u32 %v3176_v0, %v2963_v40 }
 0x18f   : > { %1434 = vmatpush.bf16.msra.mxu3 %v2976_v60 }
 0x190   : > { %v1029_v1 = vpop.f32.mrf.mxu2  ;;  %1345 = vmatpush.bf16.msra.mxu2 %v2880_v57  ;;  %1521 = vmatpush.bf16.msra.mxu0 %v3096_v61 }
 0x191   : > { %v1030_v62 = vadd.f32 %v1029_v1, %v941_v8  ;;  %v2868_v1 = vor.u32 %v3152_v38, %v2867_v43  ;;  %v3083_v8 = vld [vmem:[#allocation5 + $0x1b8] sm:$0xf]  ;;  %v3072_v43 = vor.u32 %v3203_v14, %v3071_v36 }
 0x192   : > { %v943_v18 = vpop.f32.mrf.mxu1  ;;  %v3084_v39 = vor.u32 %v3206_v21, %v3083_v8 }
 0x193   : > { %v1621_v49 = vmul.f32 0.05103104, %v1030_v62  ;;  %v944_v3 = vadd.f32 %v943_v18, %v3906_v31  ;;  %v4190_v57 = vpop.f32.mrf.mxu3  ;;  %1435 = vmatpush.bf16.msra.mxu3 %v2964_v24  ;;  %v4192_v61 = vpop.f32.mrf.mxu0 }
 0x194   : > { %1346 = vmatpush.bf16.msra.mxu2 %v2868_v1  ;;  %1522 = vmatpush.bf16.msra.mxu0 %v3084_v39 }
 0x195   : > { %1258 = vmatmul.bf16.vlgmr.msra.gmra.mxu1 %v3851_v42  ;;  %v4187_v32 = vpack.c.bf16 %v1621_v49, %v1620_v58  ;;  %v3059_v58 = vld [vmem:[#allocation5 + $0x188] sm:$0xf]  ;;  %v3200_v49 = vld [vmem:[#allocation5 + $0x190] sm:$0xf0] }
 0x196   : > { %v3060_v31 = vor.u32 %v3200_v49, %v3059_v58 }
 0x197   : > { %5410 = vst [vmem:[#allocation68_spill] sm:$0xff] %v4187_v32  ;;  %1347 = vmatmul.bf16.vlgmr.msra.gmra.mxu2 %v3787_v63 }
 0x198   : > { %v1032_v62 = vpop.f32.mrf.mxu2  ;;  %1523 = vmatpush.bf16.msra.mxu0 %v3072_v43 }
 0x199   : > { %v1033_v60 = vadd.f32 %v1032_v62, %v944_v3  ;;  %1436 = vmatmul.bf16.vlgmr.msra.gmra.mxu3 %v3849_v41 }
 0x19a   : > { %v945_v38 = vpop.f32.mrf.mxu1 }
 0x19b   : > { %v946_v18 = vadd.f32 %v945_v38, %v3915_v45  ;;  %v4197_v1 = vpop.f32.mrf.mxu3  ;;  %v4199_v8 = vpop.f32.mrf.mxu0  ;;  %v1622_v24 = vmul.f32 0.05103104, %v1033_v60 }
 0x19c   : > { %5411 = vst [vmem:[#allocation69_spill] sm:$0xff] %v4197_v1  ;;  %1524 = vmatpush.bf16.msra.mxu0 %v3060_v31  ;;  %v5469_v1 = vld [vmem:[#allocation11_spill] sm:$0xff] }
 0x19d   : > { %5412 = vst [vmem:[#allocation70_spill] sm:$0xff] %v4199_v8 }
 0x19f   : > { %1525 = vmatmul.bf16.vlgmr.msra.gmra.mxu0 %v3851_v42 }
 0x1a0   : > { %v1034_v40 = vpop.f32.mrf.mxu2 }
 0x1a1   : > { %v1035_v0 = vadd.f32 %v1034_v40, %v946_v18 }
 0x1a2   : > { %v948_v21 = vpop.f32.mrf.mxu1 }
 0x1a3   : > { %v1623_v39 = vmul.f32 0.05103104, %v1035_v0  ;;  %v949_v41 = vadd.f32 %v948_v21, %v3928_v51  ;;  %v4206_v45 = vpop.f32.mrf.mxu3  ;;  %v4208_v36 = vpop.f32.mrf.mxu0 }
 0x1a4   : > { %5414 = vst [vmem:[#allocation72_spill] sm:$0xff] %v4206_v45  ;;  %v5460_v45 = vld [vmem:[#allocation29_spill] sm:$0xff] }
 0x1a5   : > { %1263 = vmatmul.bf16.gmra.mxu1 %v3863_v7  ;;  %v4203_v63 = vpack.c.bf16 %v1623_v39, %v1622_v24  ;;  %5415 = vst [vmem:[#allocation73_spill] sm:$0xff] %v4208_v36 }
 0x1a7   : > { %5413 = vst [vmem:[#allocation71_spill] sm:$0xff] %v4203_v63  ;;  %1352 = vmatmul.bf16.gmra.mxu2 %v3807_v37 }
 0x1a8   : > { %v1037_v3 = vpop.f32.mrf.mxu2 }
 0x1a9   : > { %v1038_v62 = vadd.f32 %v1037_v3, %v949_v41  ;;  %1441 = vmatmul.bf16.gmra.mxu3 %v3861_v6 }
 0x1aa   : > { %v950_v14 = vpop.f32.mrf.mxu1 }
 0x1ab   : > { %v951_v60 = vadd.f32 %v950_v14, %v3941_v2  ;;  %v4213_v43 = vpop.f32.mrf.mxu3  ;;  %v4215_v58 = vpop.f32.mrf.mxu0  ;;  %v1624_v49 = vmul.f32 0.05103104, %v1038_v62 }
 0x1ac   : > { %5416 = vst [vmem:[#allocation74_spill] sm:$0xff] %v4213_v43  ;;  %v5489_v43 = vld [vmem:[#allocation17_spill] sm:$0xff] }
 0x1ad   : > { %5417 = vst [vmem:[#allocation75_spill] sm:$0xff] %v4215_v58 }
 0x1af   : > { %1530 = vmatmul.bf16.gmra.mxu0 %v3863_v7 }
 0x1b0   : > { %v1039_v42 = vpop.f32.mrf.mxu2 }
 0x1b1   : > { %v1040_v38 = vadd.f32 %v1039_v42, %v951_v60 }
 0x1b2   : > { %v953_v51 = vpop.f32.mrf.mxu1 }
 0x1b3   : > { %v1625_v31 = vmul.f32 0.05103104, %v1040_v38  ;;  %v954_v37 = vadd.f32 %v953_v51, %v3956_v10  ;;  %v4222_v40 = vpop.f32.mrf.mxu3  ;;  %v4224_v0 = vpop.f32.mrf.mxu0 }
 0x1b4   : > { %5419 = vst [vmem:[#allocation77_spill] sm:$0xff] %v4222_v40 }
 0x1b5   : > { %1268 = vmatmul.bf16.gmra.mxu1 %v3875_v13  ;;  %v4219_v18 = vpack.c.bf16 %v1625_v31, %v1624_v49  ;;  %5420 = vst [vmem:[#allocation78_spill] sm:$0xff] %v4224_v0 }
 0x1b7   : > { %5418 = vst [vmem:[#allocation76_spill] sm:$0xff] %v4219_v18  ;;  %1357 = vmatmul.bf16.gmra.mxu2 %v3827_v56 }
 0x1b8   : > { %v1042_v6 = vpop.f32.mrf.mxu2 }
 0x1b9   : > { %v1043_v2 = vadd.f32 %v1042_v6, %v954_v37  ;;  %1446 = vmatmul.bf16.gmra.mxu3 %v3873_v12 }
 0x1ba   : > { %v955_v21 = vpop.f32.mrf.mxu1 }
 0x1bb   : > { %v956_v24 = vadd.f32 %v955_v21, %v3969_v23  ;;  %v4229_v39 = vpop.f32.mrf.mxu3  ;;  %v4231_v3 = vpop.f32.mrf.mxu0  ;;  %v1626_v62 = vmul.f32 0.05103104, %v1043_v2 }
 0x1bc   : > { %5421 = vst [vmem:[#allocation79_spill] sm:$0xff] %v4229_v39 }
 0x1bd   : > { %5422 = vst [vmem:[#allocation80_spill] sm:$0xff] %v4231_v3 }
 0x1bf   : > { %1535 = vmatmul.bf16.gmra.mxu0 %v3875_v13 }
 0x1c0   : > { %v1044_v7 = vpop.f32.mrf.mxu2 }
 0x1c1   : > { %v1045_v41 = vadd.f32 %v1044_v7, %v956_v24 }
 0x1c2   : > { %v958_v10 = vpop.f32.mrf.mxu1 }
 0x1c3   : > { %v1627_v14 = vmul.f32 0.05103104, %v1045_v41  ;;  %v959_v56 = vadd.f32 %v958_v10, %v3984_v55  ;;  %v4238_v42 = vpop.f32.mrf.mxu3  ;;  %v4240_v38 = vpop.f32.mrf.mxu0 }
 0x1c4   : > { %5424 = vst [vmem:[#allocation82_spill] sm:$0xff] %v4238_v42  ;;  %v5496_v42 = vld [vmem:[#allocation52_spill] sm:$0xff] }
 0x1c5   : > { %1273 = vmatmul.bf16.gmra.mxu1 %v3887_v20  ;;  %v4235_v60 = vpack.c.bf16 %v1627_v14, %v1626_v62  ;;  %5425 = vst [vmem:[#allocation83_spill] sm:$0xff] %v4240_v38  ;;  %v5431_v62 = vld [vmem:[#allocation23_spill] sm:$0xff] }
 0x1c7   : > { %5423 = vst [vmem:[#allocation81_spill] sm:$0xff] %v4235_v60  ;;  %1362 = vmatmul.bf16.gmra.mxu2 %v3847_v34  ;;  %v5450_v60 = vld [vmem:[#allocation25_spill] sm:$0xff] }
 0x1c8   : > { %v1047_v12 = vpop.f32.mrf.mxu2 }
 0x1c9   : > { %v1048_v23 = vadd.f32 %v1047_v12, %v959_v56  ;;  %1451 = vmatmul.bf16.gmra.mxu3 %v3885_v19 }
 0x1ca   : > { %v960_v51 = vpop.f32.mrf.mxu1 }
 0x1cb   : > { %v961_v49 = vadd.f32 %v960_v51, %v3997_v4  ;;  %v4245_v31 = vpop.f32.mrf.mxu3  ;;  %v4247_v6 = vpop.f32.mrf.mxu0  ;;  %v1628_v2 = vmul.f32 0.05103104, %v1048_v23 }
 0x1cc   : > { %5426 = vst [vmem:[#allocation84_spill] sm:$0xff] %v4245_v31  ;;  %v5498_v31 = vld [vmem:[#allocation20_spill] sm:$0xff] }
 0x1cd   : > { %5427 = vst [vmem:[#allocation85_spill] sm:$0xff] %v4247_v6 }
 0x1cf   : > { %1540 = vmatmul.bf16.gmra.mxu0 %v3887_v20 }
 0x1d0   : > { %v1049_v13 = vpop.f32.mrf.mxu2 }
 0x1d1   : > { %v1050_v37 = vadd.f32 %v1049_v13, %v961_v49  ;;  %v5434_v13 = vld [vmem:[#allocation22_spill] sm:$0xff] }
 0x1d2   : > { %v963_v55 = vpop.f32.mrf.mxu1 }
 0x1d3   : > { %v1629_v21 = vmul.f32 0.05103104, %v1050_v37  ;;  %v964_v34 = vadd.f32 %v963_v55, %v3917_v46  ;;  %v4254_v7 = vpop.f32.mrf.mxu3  ;;  %v4256_v41 = vpop.f32.mrf.mxu0 }
 0x1d4   : > { %5429 = vst [vmem:[#allocation87_spill] sm:$0xff] %v4254_v7 }
 0x1d5   : > { %1278 = vmatmul.bf16.gmra.mxu1 %v3899_v27  ;;  %v4251_v24 = vpack.c.bf16 %v1629_v21, %v1628_v2  ;;  %5430 = vst [vmem:[#allocation88_spill] sm:$0xff] %v4256_v41  ;;  %v5497_v41 = vld [vmem:[#allocation53_spill] sm:$0xff] }
 0x1d6   : > { %v1188_v7 = vadd.f32 %v5497_v41, %v5496_v42 }
 0x1d7   : > { %5428 = vst [vmem:[#allocation86_spill] sm:$0xff] %v4251_v24  ;;  %1367 = vmatmul.bf16.gmra.mxu2 %v3770_v28  ;;  %v5436_v28 = vld [vmem:[#allocation24_spill] sm:$0xff] }
 0x1d8   : > { %v1052_v19 = vpop.f32.mrf.mxu2 }
 0x1d9   : > { %v1053_v4 = vadd.f32 %v1052_v19, %v964_v34  ;;  %1456 = vmatmul.bf16.gmra.mxu3 %v3897_v26 }
 0x1da   : > { %v965_v10 = vpop.f32.mrf.mxu1 }
 0x1db   : > { %v966_v14 = vadd.f32 %v965_v10, %v5431_v62  ;;  %v4261_v56 = vpop.f32.mrf.mxu3  ;;  %v4263_v23 = vpop.f32.mrf.mxu0  ;;  %v1630_v51 = vmul.f32 0.05103104, %v1053_v4  ;;  %v5439_v10 = vld [vmem:[#allocation13_spill] sm:$0xff]  ;;  %v5441_v4 = vld [vmem:[#allocation27_spill] sm:$0xff] }
 0x1dc   : > { %5432 = vst [vmem:[#allocation23_spill] sm:$0xff] %v4261_v56  ;;  %v5440_v62 = vld [vmem:[#allocation21_spill] sm:$0xff] }
 0x1dd   : > { %5433 = vst [vmem:[#allocation89_spill] sm:$0xff] %v4263_v23 }
 0x1df   : > { %1545 = vmatmul.bf16.gmra.mxu0 %v3899_v27 }
 0x1e0   : > { %v1054_v20 = vpop.f32.mrf.mxu2 }
 0x1e1   : > { %v1055_v12 = vadd.f32 %v1054_v20, %v966_v14 }
 0x1e2   : > { %v968_v46 = vpop.f32.mrf.mxu1 }
 0x1e3   : > { %v1631_v49 = vmul.f32 0.05103104, %v1055_v12  ;;  %v969_v55 = vadd.f32 %v968_v46, %v5436_v28  ;;  %v4270_v2 = vpop.f32.mrf.mxu3  ;;  %v4272_v34 = vpop.f32.mrf.mxu0 }
 0x1e4   : > { %5437 = vst [vmem:[#allocation24_spill] sm:$0xff] %v4270_v2 }
 0x1e5   : > { %1283 = vmatmul.bf16.gmra.mxu1 %v5434_v13  ;;  %v4267_v37 = vpack.c.bf16 %v1631_v49, %v1630_v51  ;;  %5438 = vst [vmem:[#allocation90_spill] sm:$0xff] %v4272_v34 }
 0x1e7   : > { %5435 = vst [vmem:[#allocation22_spill] sm:$0xff] %v4267_v37  ;;  %1372 = vmatmul.bf16.gmra.mxu2 %v5439_v10  ;;  %v5446_v10 = vld [vmem:[#allocation28_spill] sm:$0xff] }
 0x1e8   : > { %v1057_v26 = vpop.f32.mrf.mxu2 }
 0x1e9   : > { %v1058_v21 = vadd.f32 %v1057_v26, %v969_v55  ;;  %1461 = vmatmul.bf16.gmra.mxu3 %v5440_v62  ;;  %v5444_v55 = vld [vmem:[#allocation26_spill] sm:$0xff] }
 0x1ea   : > { %v970_v19 = vpop.f32.mrf.mxu1 }
 0x1eb   : > { %v971_v14 = vadd.f32 %v970_v19, %v5441_v4  ;;  %v4277_v20 = vpop.f32.mrf.mxu3  ;;  %v4279_v51 = vpop.f32.mrf.mxu0  ;;  %v1632_v49 = vmul.f32 0.05103104, %v1058_v21  ;;  %v5451_v21 = vld [vmem:[#allocation31_spill] sm:$0xff] }
 0x1ec   : > { %5442 = vst [vmem:[#allocation13_spill] sm:$0xff] %v4277_v20 }
 0x1ed   : > { %5443 = vst [vmem:[#allocation21_spill] sm:$0xff] %v4279_v51 }
 0x1ef   : > { %1550 = vmatmul.bf16.gmra.mxu0 %v5434_v13 }
 0x1f0   : > { %v1059_v27 = vpop.f32.mrf.mxu2 }
 0x1f1   : > { %v1060_v12 = vadd.f32 %v1059_v27, %v971_v14  ;;  %v5449_v27 = vld [vmem:[#allocation16_spill] sm:$0xff] }
 0x1f2   : > { %v973_v46 = vpop.f32.mrf.mxu1 }
 0x1f3   : > { %v1633_v28 = vmul.f32 0.05103104, %v1060_v12  ;;  %v974_v37 = vadd.f32 %v973_v46, %v5446_v10  ;;  %v4286_v24 = vpop.f32.mrf.mxu3  ;;  %v4288_v4 = vpop.f32.mrf.mxu0 }
 0x1f4   : > { %5447 = vst [vmem:[#allocation26_spill] sm:$0xff] %v4286_v24 }
 0x1f5   : > { %1288 = vmatmul.bf16.gmra.mxu1 %v5444_v55  ;;  %v4283_v26 = vpack.c.bf16 %v1633_v28, %v1632_v49  ;;  %5448 = vst [vmem:[#allocation28_spill] sm:$0xff] %v4288_v4 }
 0x1f7   : > { %5445 = vst [vmem:[#allocation27_spill] sm:$0xff] %v4283_v26  ;;  %1377 = vmatmul.bf16.gmra.mxu2 %v5449_v27  ;;  %v5456_v27 = vld [vmem:[#allocation32_spill] sm:$0xff] }
 0x1f8   : > { %v1062_v62 = vpop.f32.mrf.mxu2 }
 0x1f9   : > { %v1063_v19 = vadd.f32 %v1062_v62, %v974_v37  ;;  %1466 = vmatmul.bf16.gmra.mxu3 %v5450_v60  ;;  %v5454_v37 = vld [vmem:[#allocation30_spill] sm:$0xff] }
 0x1fa   : > { %v975_v14 = vpop.f32.mrf.mxu1 }
 0x1fb   : > { %v976_v12 = vadd.f32 %v975_v14, %v5451_v21  ;;  %v4293_v18 = vpop.f32.mrf.mxu3  ;;  %v4295_v28 = vpop.f32.mrf.mxu0  ;;  %v1634_v10 = vmul.f32 0.05103104, %v1063_v19 }
 0x1fc   : > { %5452 = vst [vmem:[#allocation16_spill] sm:$0xff] %v4293_v18 }
 0x1fd   : > { %5453 = vst [vmem:[#allocation25_spill] sm:$0xff] %v4295_v28 }
 0x1ff   : > { %1555 = vmatmul.bf16.gmra.mxu0 %v5444_v55 }
 0x200   : > { %v1064_v13 = vpop.f32.mrf.mxu2 }
 0x201   : > { %v1065_v49 = vadd.f32 %v1064_v13, %v976_v12  ;;  %v5459_v13 = vld [vmem:[#allocation19_spill] sm:$0xff] }
 0x202   : > { %v978_v46 = vpop.f32.mrf.mxu1 }
 0x203   : > { %v1635_v26 = vmul.f32 0.05103104, %v1065_v49  ;;  %v979_v63 = vadd.f32 %v978_v46, %v5456_v27  ;;  %v4302_v36 = vpop.f32.mrf.mxu3  ;;  %v4304_v21 = vpop.f32.mrf.mxu0 }
 0x204   : > { %5457 = vst [vmem:[#allocation30_spill] sm:$0xff] %v4302_v36 }
 0x205   : > { %1293 = vmatmul.bf16.gmra.mxu1 %v5454_v37  ;;  %v4299_v62 = vpack.c.bf16 %v1635_v26, %v1634_v10  ;;  %5458 = vst [vmem:[#allocation32_spill] sm:$0xff] %v4304_v21  ;;  %v5502_v21 = vld [vmem:[#allocation15_spill] sm:$0xff] }
 0x207   : > { %5455 = vst [vmem:[#allocation31_spill] sm:$0xff] %v4299_v62  ;;  %1382 = vmatmul.bf16.gmra.mxu2 %v5459_v13 }
 0x208   : > { %v1067_v60 = vpop.f32.mrf.mxu2 }
 0x209   : > { %v1068_v14 = vadd.f32 %v1067_v60, %v979_v63  ;;  %1471 = vmatmul.bf16.gmra.mxu3 %v5460_v45  ;;  %v5463_v63 = vld [vmem:[#allocation34_spill] sm:$0xff]  ;;  %v1171_v45 = vadd.f32 %v4023_v53, %v4017_v33  ;;  %v5473_v53 = vld [vmem:[#allocation33_spill] sm:$0xff] }
 0x20a   : > { %v980_v12 = vpop.f32.mrf.mxu1 }
 0x20b   : > { %v981_v19 = vadd.f32 %v980_v12, %v4010_v47  ;;  %v4311_v10 = vpop.f32.mrf.mxu0  ;;  %v1636_v27 = vmul.f32 0.05103104, %v1068_v14  ;;  %v5466_v47 = vld [vmem:[#allocation38_spill] sm:$0xff]  ;;  %v5467_v12 = vld [vmem:[#allocation39_spill] sm:$0xff] }
 0x20c   : > { %v4309_v49 = vpop.f32.mrf.mxu3  ;;  %5462 = vst [vmem:[#allocation29_spill] sm:$0xff] %v4311_v10  ;;  %v1173_v8 = vadd.f32 %v5467_v12, %v5466_v47  ;;  %v5476_v12 = vld [vmem:[#allocation36_spill] sm:$0xff] }
 0x20d   : > { %5461 = vst [vmem:[#allocation19_spill] sm:$0xff] %v4309_v49 }
 0x20f   : > { %1560 = vmatmul.bf16.gmra.mxu0 %v5454_v37 }
 0x210   : > { %v1069_v55 = vpop.f32.mrf.mxu2 }
 0x211   : > { %v1070_v26 = vadd.f32 %v1069_v55, %v981_v19 }
 0x212   : > { %v1259_v46 = vpop.f32.mrf.mxu1 }
 0x213   : > { %v1637_v62 = vmul.f32 0.05103104, %v1070_v26  ;;  %v4323_v19 = vpop.f32.mrf.mxu0  ;;  %v4326_v14 = vadd.f32 %v1259_v46, %v1171_v45 }
 0x214   : > { %v4319_v13 = vpop.f32.mrf.mxu3  ;;  %5468 = vst [vmem:[#allocation38_spill] sm:$0xff] %v4323_v19 }
 0x215   : > { %1298 = vmatmul.bf16.gmra.mxu1 %v5463_v63  ;;  %v4315_v60 = vpack.c.bf16 %v1637_v62, %v1636_v27  ;;  %5465 = vst [vmem:[#allocation91_spill] sm:$0xff] %v4319_v13 }
 0x216   : > { %5470 = vst [vmem:[#allocation39_spill] sm:$0xff] %v4326_v14 }
 0x217   : > { %5464 = vst [vmem:[#allocation34_spill] sm:$0xff] %v4315_v60  ;;  %1387 = vmatmul.bf16.gmra.mxu2 %v5469_v1  ;;  %v5481_v60 = vld [vmem:[#allocation14_spill] sm:$0xff] }
 0x219   : > { %1476 = vmatmul.bf16.gmra.mxu3 %v5473_v53 }
 0x21a   : > { %v1261_v55 = vpop.f32.mrf.mxu1  ;;  %v4332_v26 = vpop.f32.mrf.mxu2 }
 0x21b   : > { %v4328_v37 = vadd.f32 %v1261_v55, %v1173_v8  ;;  %5472 = vst [vmem:[#allocation92_spill] sm:$0xff] %v4332_v26  ;;  %v5478_v8 = vld [vmem:[#allocation42_spill] sm:$0xff]  ;;  %v1178_v55 = vadd.f32 %v4057_v22, %v4055_v29  ;;  %v5486_v22 = vld [vmem:[#allocation41_spill] sm:$0xff]  ;;  %v5506_v26 = vld [vmem:[#allocation67_spill] sm:$0xff] }
 0x21c   : > { %v4335_v33 = vpop.f32.mrf.mxu3  ;;  %v4337_v27 = vpop.f32.mrf.mxu0  ;;  %v1176_v46 = vadd.f32 %v5478_v8, %v4041_v11  ;;  %v5484_v11 = vld [vmem:[#allocation35_spill] sm:$0xff] }
 0x21d   : > { %5471 = vst [vmem:[#allocation11_spill] sm:$0xff] %v4328_v37  ;;  %v5505_v37 = vld [vmem:[#allocation18_spill] sm:$0xff] }
 0x21e   : > { %5474 = vst [vmem:[#allocation33_spill] sm:$0xff] %v4335_v33 }
 0x21f   : > { %5475 = vst [vmem:[#allocation93_spill] sm:$0xff] %v4337_v27  ;;  %1565 = vmatmul.bf16.gmra.mxu0 %v5463_v63 }
 0x222   : > { %v1264_v47 = vpop.f32.mrf.mxu1  ;;  %v4341_v1 = vpop.f32.mrf.mxu2 }
 0x223   : > { %5477 = vst [vmem:[#allocation36_spill] sm:$0xff] %v4341_v1  ;;  %v4352_v32 = vadd.f32 %v1264_v47, %v1176_v46  ;;  %v5487_v46 = vld [vmem:[#allocation47_spill] sm:$0xff] }
 0x224   : > { %v4345_v45 = vpop.f32.mrf.mxu3  ;;  %v4349_v53 = vpop.f32.mrf.mxu0 }
 0x225   : > { %1303 = vmatmul.bf16.gmra.mxu1 %v5476_v12  ;;  %5479 = vst [vmem:[#allocation42_spill] sm:$0xff] %v4345_v45 }
 0x226   : > { %5480 = vst [vmem:[#allocation94_spill] sm:$0xff] %v4349_v53  ;;  %v1208_v53 = vadd.f32 %v4192_v61, %v4190_v57 }
 0x227   : > { %1392 = vmatmul.bf16.gmra.mxu2 %v5481_v60  ;;  %5482 = vst [vmem:[#allocation14_spill] sm:$0xff] %v4352_v32 }
 0x229   : > { %1481 = vmatmul.bf16.gmra.mxu3 %v5484_v11 }
 0x22a   : > { %v1266_v62 = vpop.f32.mrf.mxu1  ;;  %v4358_v40 = vpop.f32.mrf.mxu2 }
 0x22b   : > { %v4354_v63 = vadd.f32 %v1266_v62, %v1178_v55  ;;  %v1181_v62 = vadd.f32 %v4071_v9, %v4065_v16  ;;  %v1183_v55 = vadd.f32 %v5487_v46, %v4079_v48  ;;  %v5492_v16 = vld [vmem:[#allocation40_spill] sm:$0xff]  ;;  %v5493_v46 = vld [vmem:[#allocation45_spill] sm:$0xff] }
 0x22c   : > { %v4361_v8 = vpop.f32.mrf.mxu3  ;;  %v4363_v58 = vpop.f32.mrf.mxu0 }
 0x22d   : > { %5483 = vst [vmem:[#allocation95_spill] sm:$0xff] %v4354_v63 }
 0x22e   : > { %5485 = vst [vmem:[#allocation35_spill] sm:$0xff] %v4363_v58 }
 0x22f   : > { %1570 = vmatmul.bf16.gmra.mxu0 %v5476_v12 }
 0x232   : > { %v1269_v29 = vpop.f32.mrf.mxu1  ;;  %v4367_v60 = vpop.f32.mrf.mxu2 }
 0x233   : > { %v4378_v38 = vadd.f32 %v1269_v29, %v1181_v62  ;;  %v5495_v29 = vld [vmem:[#allocation50_spill] sm:$0xff] }
 0x234   : > { %v4371_v47 = vpop.f32.mrf.mxu3  ;;  %v4375_v11 = vpop.f32.mrf.mxu0 }
 0x235   : > { %1308 = vmatmul.bf16.gmra.mxu1 %v5486_v22  ;;  %5488 = vst [vmem:[#allocation41_spill] sm:$0xff] %v4375_v11 }
 0x236   : > { %5490 = vst [vmem:[#allocation47_spill] sm:$0xff] %v4378_v38 }
 0x237   : > { %1397 = vmatmul.bf16.gmra.mxu2 %v5489_v43 }
 0x239   : > { %1486 = vmatmul.bf16.gmra.mxu3 %v5492_v16 }
 0x23a   : > { %v1271_v0 = vpop.f32.mrf.mxu1  ;;  %v4384_v3 = vpop.f32.mrf.mxu2 }
 0x23b   : > { %v4380_v12 = vadd.f32 %v1271_v0, %v1183_v55  ;;  %v5494_v0 = vld [vmem:[#allocation48_spill] sm:$0xff] }
 0x23c   : > { %v4387_v9 = vpop.f32.mrf.mxu3  ;;  %v4389_v39 = vpop.f32.mrf.mxu0  ;;  %v1186_v62 = vadd.f32 %v5495_v29, %v5494_v0  ;;  %v5499_v0 = vld [vmem:[#allocation44_spill] sm:$0xff] }
 0x23d   : > { %5491 = vst [vmem:[#allocation17_spill] sm:$0xff] %v4380_v12 }
 0x23f   : > { %1575 = vmatmul.bf16.gmra.mxu0 %v5486_v22 }
 0x242   : > { %v1274_v48 = vpop.f32.mrf.mxu1  ;;  %v4393_v43 = vpop.f32.mrf.mxu2 }
 0x243   : > { %v4404_v34 = vadd.f32 %v1274_v48, %v1186_v62  ;;  %v5501_v62 = vld [vmem:[#allocation12_spill] sm:$0xff] }
 0x244   : > { %v4397_v55 = vpop.f32.mrf.mxu3  ;;  %v4401_v16 = vpop.f32.mrf.mxu0 }
 0x245   : > { %1313 = vmatmul.bf16.gmra.mxu1 %v5493_v46 }
 0x247   : > { %1402 = vmatmul.bf16.gmra.mxu2 %v5498_v31  ;;  %v5500_v31 = vld [vmem:[#allocation49_spill] sm:$0xff] }
 0x249   : > { %1491 = vmatmul.bf16.gmra.mxu3 %v5499_v0 }
 0x24a   : > { %v1276_v6 = vpop.f32.mrf.mxu1  ;;  %v4410_v23 = vpop.f32.mrf.mxu2 }
 0x24b   : > { %v4406_v22 = vadd.f32 %v1276_v6, %v1188_v7 }
 0x24c   : > { %v4413_v29 = vpop.f32.mrf.mxu3  ;;  %v4415_v56 = vpop.f32.mrf.mxu0 }
 0x24f   : > { %1580 = vmatmul.bf16.gmra.mxu0 %v5493_v46 }
 0x252   : > { %v4417_v42 = vpop.f32.mrf.mxu1  ;;  %v4421_v41 = vpop.f32.mrf.mxu2 }
 0x254   : > { %v4423_v6 = vpop.f32.mrf.mxu3  ;;  %v4425_v7 = vpop.f32.mrf.mxu0 }
 0x255   : > { %1318 = vmatmul.bf16.gmra.mxu1 %v5500_v31 }
 0x257   : > { %1407 = vmatmul.bf16.gmra.mxu2 %v5501_v62 }
 0x259   : > { %1496 = vmatmul.bf16.gmra.mxu3 %v4091_v25  ;;  %v5503_v25 = vld [vmem:[#allocation55_spill] sm:$0xff] }
 0x25a   : > { %v4427_v48 = vpop.f32.mrf.mxu1  ;;  %v4430_v0 = vpop.f32.mrf.mxu2 }
 0x25c   : > { %v4433_v2 = vpop.f32.mrf.mxu3  ;;  %v4435_v4 = vpop.f32.mrf.mxu0 }
 0x25f   : > { %1585 = vmatmul.bf16.gmra.mxu0 %v5500_v31  ;;  %v5504_v31 = vld [vmem:[#allocation61_spill] sm:$0xff] }
 0x262   : > { %v1284_v46 = vpop.f32.mrf.mxu1  ;;  %v4439_v24 = vpop.f32.mrf.mxu2 }
 0x264   : > { %v4441_v51 = vpop.f32.mrf.mxu3  ;;  %v4443_v20 = vpop.f32.mrf.mxu0 }
 0x265   : > { %1323 = vmatmul.bf16.gmra.mxu1 %v4117_v59 }
 0x267   : > { %1412 = vmatmul.bf16.gmra.mxu2 %v5502_v21 }
 0x269   : > { %1501 = vmatmul.bf16.gmra.mxu3 %v5503_v25 }
 0x26a   : > { %v1286_v62 = vpop.f32.mrf.mxu1  ;;  %v1373_v36 = vpop.f32.mrf.mxu2 }
 0x26c   : > { %v1462_v28 = vpop.f32.mrf.mxu3  ;;  %v4447_v18 = vpop.f32.mrf.mxu0 }
 0x26f   : > { %1590 = vmatmul.bf16.gmra.mxu0 %v4117_v59  ;;  %v1206_v59 = vadd.f32 %v4183_v5, %v4181_v52  ;;  %v1203_v52 = vadd.f32 %v5506_v26, %v4175_v54 }
 0x272   : > { %v1289_v19 = vpop.f32.mrf.mxu1  ;;  %v1375_v13 = vpop.f32.mrf.mxu2 }
 0x274   : > { %v1464_v10 = vpop.f32.mrf.mxu3  ;;  %v1553_v49 = vpop.f32.mrf.mxu0 }
 0x275   : > { %1328 = vmatmul.bf16.gmra.mxu1 %v5504_v31 }
 0x277   : > { %1417 = vmatmul.bf16.gmra.mxu2 %v5505_v37 }
 0x279   : > { %1506 = vmatmul.bf16.gmra.mxu3 %v4139_v30 }
 0x27a   : > { %v1291_v14 = vpop.f32.mrf.mxu1  ;;  %v1378_v32 = vpop.f32.mrf.mxu2 }
 0x27b   : > { %v1292_v11 = vadd.f32 %v1291_v14, %v1203_v52 }
 0x27c   : > { %v1467_v21 = vpop.f32.mrf.mxu3  ;;  %v1556_v63 = vpop.f32.mrf.mxu0 }
 0x27f   : > { %1595 = vmatmul.bf16.gmra.mxu0 %v5504_v31  ;;  %v1201_v31 = vadd.f32 %v4167_v44, %v4161_v17  ;;  %v5511_v44 = vld [vmem:[#allocation65_spill] sm:$0xff] }
 0x281   : > { %v1290_v58 = vadd.f32 %v1289_v19, %v1201_v31  ;;  %v1468_v19 = vadd.f32 %v1467_v21, %v1378_v32 }
 0x282   : > { %v1294_v25 = vpop.f32.mrf.mxu1  ;;  %v1380_v38 = vpop.f32.mrf.mxu2 }
 0x283   : > { %v1295_v30 = vadd.f32 %v1294_v25, %v1206_v59  ;;  %v5508_v25 = vld [vmem:[#allocation60_spill] sm:$0xff] }
 0x284   : > { %v1469_v12 = vpop.f32.mrf.mxu3  ;;  %v1558_v27 = vpop.f32.mrf.mxu0 }
 0x285   : > { %1333 = vmatmul.bf16.gmra.mxu1 %v4165_v35  ;;  %v1470_v31 = vadd.f32 %v1469_v12, %v1380_v38 }
 0x287   : > { %1422 = vmatmul.bf16.gmra.mxu2 %v3838_v15  ;;  %v1660_v15 = vpack.c.bf16 %v1292_v11, %v1290_v58  ;;  %v1557_v11 = vadd.f32 %v1556_v63, %v1468_v19 }
 0x289   : > { %1511 = vmatmul.bf16.gmra.mxu3 %v4163_v50  ;;  %v5509_v50 = vld [vmem:[#allocation62_spill] sm:$0xff] }
 0x28a   : > { %v1296_v37 = vpop.f32.mrf.mxu1  ;;  %v1383_v33 = vpop.f32.mrf.mxu2  ;;  %v1196_v59 = vadd.f32 %v5509_v50, %v5508_v25  ;;  %v1463_v50 = vadd.f32 %v1462_v28, %v1373_v36  ;;  %v1458_v28 = vadd.f32 %v4433_v2, %v4430_v0  ;;  %v1455_v2 = vadd.f32 %v4423_v6, %v4421_v41 }
 0x28b   : > { %v1297_v45 = vadd.f32 %v1296_v37, %v1208_v53  ;;  %v5510_v37 = vld [vmem:[#allocation64_spill] sm:$0xff] }
 0x28c   : > { %v1472_v5 = vpop.f32.mrf.mxu3  ;;  %v1561_v57 = vpop.f32.mrf.mxu0  ;;  %v1198_v17 = vadd.f32 %v5511_v44, %v5510_v37  ;;  %v1465_v37 = vadd.f32 %v1464_v10, %v1375_v13  ;;  %v5515_v44 = vld [vmem:[#allocation56_spill] sm:$0xff]  ;;  %v1552_v32 = vadd.f32 %v4447_v18, %v1463_v50  ;;  %v1460_v10 = vadd.f32 %v4441_v51, %v4439_v24 }
 0x28d   : > { %v1661_v1 = vpack.c.bf16 %v1297_v45, %v1295_v30  ;;  %v1473_v53 = vadd.f32 %v1472_v5, %v1383_v33  ;;  %v1559_v33 = vadd.f32 %v1558_v27, %v1470_v31  ;;  %v1547_v18 = vadd.f32 %v4435_v4, %v1458_v28 }
 0x28e   : > { %v1287_v26 = vadd.f32 %v1286_v62, %v1198_v17  ;;  %v1554_v38 = vadd.f32 %v1553_v49, %v1465_v37  ;;  %v1549_v49 = vadd.f32 %v4443_v20, %v1460_v10  ;;  %v1544_v51 = vadd.f32 %v4425_v7, %v1455_v2  ;;  %v5547_v10 = vld [vmem:[#allocation11_spill] sm:$0xff]  ;;  %v5550_v2 = vld [vmem:[#allocation37_spill] sm:$0xff] }
 0x28f   : > { %1686 = vmatpush.bf16.xpose.msrb.mxu1 %v1661_v1  ;;  %1600 = vmatmul.bf16.gmra.mxu0 %v4165_v35  ;;  %v1562_v1 = vadd.f32 %v1561_v57, %v1473_v53  ;;  %v1285_v35 = vadd.f32 %v1284_v46, %v1196_v59  ;;  %v5516_v57 = vld [vmem:[#allocation58_spill] sm:$0xff]  ;;  %v1676_v17 = vpack.c.bf16 %v1559_v33, %v1557_v11 }
 0x290   : > { %v1675_v46 = vpack.c.bf16 %v1554_v38, %v1552_v32  ;;  %v1453_v59 = vadd.f32 %v4413_v29, %v4410_v23  ;;  %v1674_v0 = vpack.c.bf16 %v1549_v49, %v1547_v18  ;;  %v1450_v23 = vadd.f32 %v4397_v55, %v4393_v43  ;;  %v5526_v43 = vld [vmem:[#allocation35_spill] sm:$0xff] }
 0x291   : > { %v1659_v5 = vpack.c.bf16 %v1287_v26, %v1285_v35  ;;  %v1443_v7 = vadd.f32 %v4361_v8, %v4358_v40  ;;  %v1445_v26 = vadd.f32 %v4371_v47, %v4367_v60  ;;  %v5531_v40 = vld [vmem:[#allocation92_spill] sm:$0xff]  ;;  %v5532_v8 = vld [vmem:[#allocation33_spill] sm:$0xff]  ;;  %v5534_v47 = vld [vmem:[#allocation42_spill] sm:$0xff] }
 0x292   : > { %v4465_v61 = vpop.f32.mrf.mxu1  ;;  %v1385_v45 = vpop.f32.mrf.mxu2  ;;  %v1542_v24 = vadd.f32 %v4415_v56, %v1453_v59  ;;  %v1539_v56 = vadd.f32 %v4401_v16, %v1450_v23  ;;  %v1438_v19 = vadd.f32 %v5532_v8, %v5531_v40  ;;  %v5533_v60 = vld [vmem:[#allocation36_spill] sm:$0xff]  ;;  %v5552_v8 = vld [vmem:[#allocation46_spill] sm:$0xff] }
 0x293   : > { %5507 = vst [vmem:[#allocation40_spill] sm:$0xff] %v4465_v61  ;;  %v1532_v55 = vadd.f32 %v5526_v43, %v1443_v7  ;;  %v1440_v31 = vadd.f32 %v5534_v47, %v5533_v60  ;;  %v5551_v7 = vld [vmem:[#allocation43_spill] sm:$0xff] }
 0x294   : > { %v1474_v54 = vpop.f32.mrf.mxu3  ;;  %v1563_v30 = vpop.f32.mrf.mxu0  ;;  %v1673_v29 = vpack.c.bf16 %v1544_v51, %v1542_v24 }
 0x295   : > { %v1475_v14 = vadd.f32 %v1474_v54, %v1385_v45  ;;  %v5517_v45 = vld [vmem:[#allocation59_spill] sm:$0xff]  ;;  %v1448_v54 = vadd.f32 %v4387_v9, %v4384_v3  ;;  %v5525_v3 = vpack.c.bf16 %v4406_v22, %v4404_v34  ;;  %v5535_v22 = vld [vmem:[#allocation93_spill] sm:$0xff] }
 0x296   : > { %v1193_v53 = vadd.f32 %v5517_v45, %v5516_v57  ;;  %v1527_v35 = vadd.f32 %v5535_v22, %v1438_v19  ;;  %v5544_v45 = vld [vmem:[#allocation95_spill] sm:$0xff] }
 0x297   : > { %1687 = vmatpush.bf16.xpose.msrb.mxu1 %v1660_v15  ;;  %v1564_v58 = vadd.f32 %v1563_v30, %v1475_v14  ;;  %v5514_v15 = vld [vmem:[#allocation54_spill] sm:$0xff]  ;;  %v1537_v41 = vadd.f32 %v4389_v39, %v1448_v54 }
 0x298   : > { %v1191_v62 = vadd.f32 %v5515_v44, %v5514_v15  ;;  %v1282_v27 = vadd.f32 %v4427_v48, %v1193_v53  ;;  %v5545_v53 = vld [vmem:[#allocation14_spill] sm:$0xff] }
 0x299   : > { %v1677_v25 = vpack.c.bf16 %v1564_v58, %v1562_v1  ;;  %v1672_v9 = vpack.c.bf16 %v1539_v56, %v1537_v41  ;;  %v5527_v1 = vld [vmem:[#allocation41_spill] sm:$0xff]  ;;  %v5536_v58 = vld [vmem:[#allocation94_spill] sm:$0xff] }
 0x29a   : > { %v4472_v52 = vpop.f32.mrf.mxu1  ;;  %v4474_v61 = vpop.f32.mrf.mxu2  ;;  %v1280_v13 = vadd.f32 %v4417_v42, %v1191_v62  ;;  %v1534_v39 = vadd.f32 %v5527_v1, %v1445_v26  ;;  %v1529_v11 = vadd.f32 %v5536_v58, %v1440_v31 }
 0x29b   : > { %5512 = vst [vmem:[#allocation45_spill] sm:$0xff] %v4472_v52  ;;  %2540 = vmatpush.bf16.msrb.mxu3 %v1677_v25  ;;  %v5539_v25 = vld [vmem:[#allocation47_spill] sm:$0xff] }
 0x29c   : > { %5513 = vst [vmem:[#allocation48_spill] sm:$0xff] %v4474_v61  ;;  %v4481_v63 = vpop.f32.mrf.mxu3  ;;  %v4484_v12 = vpop.f32.mrf.mxu0  ;;  %v1658_v21 = vpack.c.bf16 %v1282_v27, %v1280_v13  ;;  %v1671_v34 = vpack.c.bf16 %v1534_v39, %v1532_v55  ;;  %v1670_v37 = vpack.c.bf16 %v1529_v11, %v1527_v35  ;;  %v5548_v13 = vld [vmem:[#allocation39_spill] sm:$0xff] }
 0x29d   : > { %5518 = vst [vmem:[#allocation50_spill] sm:$0xff] %v4481_v63  ;;  %v5553_v11 = vld [vmem:[#allocation51_spill] sm:$0xff]  ;;  %v5562_v63 = vld [vmem:[#allocation32_spill] sm:$0xff] }
 0x29e   : > { %5519 = vst [vmem:[#allocation52_spill] sm:$0xff] %v4484_v12 }
 0x29f   : > { %1688 = vmatpush.bf16.xpose.msrb.mxu1 %v1659_v5  ;;  %2541 = vmatpush.bf16.msrb.mxu3 %v1676_v17  ;;  %v5538_v5 = vld [vmem:[#allocation17_spill] sm:$0xff]  ;;  %v5546_v17 = vpack.c.bf16 %v5544_v45, %v5545_v53  ;;  %v5554_v45 = vld [vmem:[#allocation19_spill] sm:$0xff] }
 0x2a0   : > { %v5540_v50 = vpack.c.bf16 %v5538_v5, %v5539_v25  ;;  %v5555_v53 = vld [vmem:[#allocation29_spill] sm:$0xff] }
 0x2a2   : > { %v4486_v36 = vpop.f32.mrf.mxu1  ;;  %v4495_v48 = vpop.f32.mrf.mxu2 }
 0x2a3   : > { %5520 = vst [vmem:[#allocation53_spill] sm:$0xff] %v4486_v36  ;;  %2542 = vmatpush.bf16.msrb.mxu3 %v1675_v46  ;;  %v5549_v46 = vpack.c.bf16 %v5547_v10, %v5548_v13  ;;  %v5556_v13 = vld [vmem:[#allocation91_spill] sm:$0xff] }
 0x2a4   : > { %5521 = vst [vmem:[#allocation20_spill] sm:$0xff] %v4495_v48  ;;  %v4503_v42 = vpop.f32.mrf.mxu3  ;;  %v4505_v4 = vpop.f32.mrf.mxu0  ;;  %v5561_v48 = vld [vmem:[#allocation30_spill] sm:$0xff] }
 0x2a5   : > { %5522 = vst [vmem:[#allocation44_spill] sm:$0xff] %v4503_v42  ;;  %v1243_v61 = vadd.f32 %v5562_v63, %v5561_v48 }
 0x2a6   : > { %5523 = vst [vmem:[#allocation49_spill] sm:$0xff] %v4505_v4  ;;  %v5558_v4 = vld [vmem:[#allocation57_spill] sm:$0xff] }
 0x2a7   : > { %1689 = vmatpush.bf16.xpose.msrb.mxu1 %v1658_v21  ;;  %2543 = vmatpush.bf16.msrb.mxu3 %v1674_v0 }
 0x2aa   : > { %v4507_v20 = vpop.f32.mrf.mxu1  ;;  %v4515_v6 = vpop.f32.mrf.mxu2 }
 0x2ab   : > { %5524 = vst [vmem:[#allocation12_spill] sm:$0xff] %v4507_v20  ;;  %2544 = vmatpush.bf16.msrb.mxu3 %v1673_v29 }
 0x2ac   : > { %v4526_v14 = vpop.f32.mrf.mxu3  ;;  %v4528_v16 = vpop.f32.mrf.mxu0 }
 0x2ad   : > { %5528 = vst [vmem:[#allocation15_spill] sm:$0xff] %v4526_v14  ;;  %v5569_v14 = vld [vmem:[#allocation24_spill] sm:$0xff] }
 0x2ae   : > { %5529 = vst [vmem:[#allocation55_spill] sm:$0xff] %v4528_v16  ;;  %v5563_v16 = vld [vmem:[#allocation13_spill] sm:$0xff] }
 0x2af   : > { %1690 = vmatpush.bf16.xpose.msrb.mxu1 %v5525_v3  ;;  %2545 = vmatpush.bf16.msrb.mxu3 %v1672_v9 }
 0x2b2   : > { %v4530_v30 = vpop.f32.mrf.mxu1  ;;  %v4538_v33 = vpop.f32.mrf.mxu2 }
 0x2b3   : > { %5530 = vst [vmem:[#allocation61_spill] sm:$0xff] %v4530_v30  ;;  %2546 = vmatpush.bf16.msrb.mxu3 %v1671_v34  ;;  %v5560_v30 = vld [vmem:[#allocation25_spill] sm:$0xff] }
 0x2b4   : > { %5537 = vst [vmem:[#allocation18_spill] sm:$0xff] %v4538_v33  ;;  %v4543_v15 = vpop.f32.mrf.mxu3  ;;  %v4545_v44 = vpop.f32.mrf.mxu0  ;;  %v5567_v33 = vld [vmem:[#allocation23_spill] sm:$0xff] }
 0x2b5   : > { %5541 = vst [vmem:[#allocation67_spill] sm:$0xff] %v4543_v15 }
 0x2b6   : > { %5542 = vst [vmem:[#allocation60_spill] sm:$0xff] %v4545_v44 }
 0x2b7   : > { %1691 = vmatpush.bf16.xpose.msrb.mxu1 %v5540_v50  ;;  %2547 = vmatpush.bf16.msrb.mxu3 %v1670_v37 }
 0x2ba   : > { %v4547_v62 = vpop.f32.mrf.mxu1  ;;  %v4549_v57 = vpop.f32.mrf.mxu2 }
 0x2bb   : > { %5543 = vst [vmem:[#allocation62_spill] sm:$0xff] %v4547_v62 }
 0x2bc   : > { %v4554_v32 = vpop.f32.mrf.mxu3  ;;  %v4556_v38 = vpop.f32.mrf.mxu0 }
 0x2bf   : > { %1692 = vmatpush.bf16.xpose.msrb.mxu1 %v5546_v17  ;;  %v1246_v17 = vadd.f32 %v5555_v53, %v5554_v45 }
 0x2c2   : > { %v4558_v27 = vpop.f32.mrf.mxu1  ;;  %v4560_v28 = vpop.f32.mrf.mxu2 }
 0x2c4   : > { %v4565_v18 = vpop.f32.mrf.mxu3  ;;  %v4567_v49 = vpop.f32.mrf.mxu0 }
 0x2c7   : > { %1693 = vmatpush.bf16.xpose.msrb.mxu1 %v5549_v46  ;;  %v5557_v46 = vld [vmem:[#allocation38_spill] sm:$0xff] }
 0x2ca   : > { %v4569_v21 = vpop.f32.mrf.mxu1  ;;  %v4571_v59 = vpop.f32.mrf.mxu2 }
 0x2cc   : > { %v4574_v0 = vpop.f32.mrf.mxu3  ;;  %v4576_v24 = vpop.f32.mrf.mxu0 }
 0x2ce   : > { %1694 = vmatmul.bf16.vlgmr.msrb.gmra.mxu1 %v5550_v2 }
 0x2d2   : > { %v4578_v51 = vpop.f32.mrf.mxu1  ;;  %v4580_v54 = vpop.f32.mrf.mxu2 }
 0x2d4   : > { %v4582_v23 = vpop.f32.mrf.mxu3  ;;  %v4584_v29 = vpop.f32.mrf.mxu0 }
 0x2da   : > { %v4586_v41 = vpop.f32.mrf.mxu1  ;;  %v4588_v56 = vpop.f32.mrf.mxu2 }
 0x2dc   : > { %v4591_v26 = vpop.f32.mrf.mxu3  ;;  %v4593_v3 = vpop.f32.mrf.mxu0 }
 0x2de   : > { %1699 = vmatmul.bf16.gmra.mxu1 %v5551_v7 }
 0x2e2   : > { %v1324_v9 = vpop.f32.mrf.mxu1  ;;  %v4595_v43 = vpop.f32.mrf.mxu2 }
 0x2e4   : > { %v4597_v55 = vpop.f32.mrf.mxu3  ;;  %v4599_v1 = vpop.f32.mrf.mxu0 }
 0x2ea   : > { %v1326_v39 = vpop.f32.mrf.mxu1  ;;  %v1413_v40 = vpop.f32.mrf.mxu2 }
 0x2ec   : > { %v1502_v19 = vpop.f32.mrf.mxu3  ;;  %v1591_v60 = vpop.f32.mrf.mxu0 }
 0x2ee   : > { %1704 = vmatmul.bf16.gmra.mxu1 %v5552_v8  ;;  %v1248_v8 = vadd.f32 %v5557_v46, %v5556_v13 }
 0x2f2   : > { %v1329_v47 = vpop.f32.mrf.mxu1  ;;  %v1415_v31 = vpop.f32.mrf.mxu2 }
 0x2f4   : > { %v1504_v34 = vpop.f32.mrf.mxu3  ;;  %v1593_v22 = vpop.f32.mrf.mxu0 }
 0x2fa   : > { %v1331_v35 = vpop.f32.mrf.mxu1  ;;  %v1418_v58 = vpop.f32.mrf.mxu2 }
 0x2fb   : > { %v1332_v53 = vadd.f32 %v1331_v35, %v1243_v61 }
 0x2fc   : > { %v1507_v5 = vpop.f32.mrf.mxu3  ;;  %v1596_v25 = vpop.f32.mrf.mxu0 }
 0x2fe   : > { %1709 = vmatmul.bf16.gmra.mxu1 %v5553_v11  ;;  %v5559_v11 = vld [vmem:[#allocation16_spill] sm:$0xff] }
 0x2ff   : > { %v1241_v42 = vadd.f32 %v5560_v30, %v5559_v11 }
 0x301   : > { %v1330_v44 = vadd.f32 %v1329_v47, %v1241_v42 }
 0x302   : > { %v1334_v50 = vpop.f32.mrf.mxu1  ;;  %v1420_v37 = vpop.f32.mrf.mxu2 }
 0x303   : > { %v1335_v52 = vadd.f32 %v1334_v50, %v1246_v17  ;;  %v1668_v13 = vpack.c.bf16 %v1332_v53, %v1330_v44  ;;  %v5564_v50 = vld [vmem:[#allocation21_spill] sm:$0xff] }
 0x304   : > { %v1509_v10 = vpop.f32.mrf.mxu3  ;;  %v1598_v7 = vpop.f32.mrf.mxu0 }
 0x305   : > { %v1510_v61 = vadd.f32 %v1509_v10, %v1420_v37 }
 0x307   : > { %v1599_v47 = vadd.f32 %v1598_v7, %v1510_v61  ;;  %v1498_v7 = vadd.f32 %v4591_v26, %v4588_v56  ;;  %v5573_v56 = vld [vmem:[#allocation85_spill] sm:$0xff] }
 0x30a   : > { %v1336_v2 = vpop.f32.mrf.mxu1  ;;  %v1423_v12 = vpop.f32.mrf.mxu2 }
 0x30b   : > { %v1337_v36 = vadd.f32 %v1336_v2, %v1248_v8  ;;  %v1236_v2 = vadd.f32 %v5564_v50, %v5563_v16  ;;  %v5568_v16 = vld [vmem:[#allocation89_spill] sm:$0xff] }
 0x30c   : > { %v1512_v45 = vpop.f32.mrf.mxu3  ;;  %v1601_v62 = vpop.f32.mrf.mxu0  ;;  %v1231_v50 = vadd.f32 %v5568_v16, %v5567_v33  ;;  %v1500_v33 = vadd.f32 %v4597_v55, %v4595_v43 }
 0x30d   : > { %v1669_v20 = vpack.c.bf16 %v1337_v36, %v1335_v52  ;;  %v5565_v52 = vld [vmem:[#allocation26_spill] sm:$0xff]  ;;  %v5566_v36 = vld [vmem:[#allocation28_spill] sm:$0xff]  ;;  %v1513_v17 = vadd.f32 %v1512_v45, %v1423_v12  ;;  %v1325_v48 = vadd.f32 %v1324_v9, %v1236_v2  ;;  %v5571_v12 = vld [vmem:[#allocation63_spill] sm:$0xff] }
 0x30e   : > { %1714 = vmatmul.bf16.gmra.mxu1 %v5558_v4  ;;  %v1238_v8 = vadd.f32 %v5566_v36, %v5565_v52  ;;  %v5570_v52 = vld [vmem:[#allocation90_spill] sm:$0xff]  ;;  %v5579_v2 = vld [vmem:[#allocation67_spill] sm:$0xff]  ;;  %v5581_v36 = vld [vmem:[#allocation80_spill] sm:$0xff] }
 0x30f   : > { %1775 = vmatpush.bf16.xpose.msrb.mxu2 %v1669_v20  ;;  %v1602_v11 = vadd.f32 %v1601_v62, %v1513_v17  ;;  %v1508_v20 = vadd.f32 %v1507_v5, %v1418_v58  ;;  %v1503_v62 = vadd.f32 %v1502_v19, %v1413_v40  ;;  %v1320_v5 = vadd.f32 %v4578_v51, %v1231_v50  ;;  %v5574_v51 = vld [vmem:[#allocation87_spill] sm:$0xff]  ;;  %v5592_v50 = vld [vmem:[#allocation52_spill] sm:$0xff] }
 0x310   : > { %v1327_v30 = vadd.f32 %v1326_v39, %v1238_v8  ;;  %v1589_v19 = vadd.f32 %v4599_v1, %v1500_v33 }
 0x311   : > { %v1597_v44 = vadd.f32 %v1596_v25, %v1508_v20  ;;  %v1587_v25 = vadd.f32 %v4593_v3, %v1498_v7  ;;  %v5587_v20 = vld [vmem:[#allocation48_spill] sm:$0xff]  ;;  %v5597_v7 = vld [vmem:[#allocation78_spill] sm:$0xff] }
 0x312   : > { %v1425_v46 = vpop.f32.mrf.mxu2  ;;  %v1667_v42 = vpack.c.bf16 %v1327_v30, %v1325_v48  ;;  %v5585_v30 = vld [vmem:[#allocation60_spill] sm:$0xff] }
 0x313   : > { %v1684_v39 = vpack.c.bf16 %v1599_v47, %v1597_v44  ;;  %v1682_v43 = vpack.c.bf16 %v1589_v19, %v1587_v25  ;;  %v5591_v47 = vld [vmem:[#allocation61_spill] sm:$0xff] }
 0x314   : > { %v1514_v4 = vpop.f32.mrf.mxu3  ;;  %v1603_v63 = vpop.f32.mrf.mxu0 }
 0x315   : > { %v1515_v15 = vadd.f32 %v1514_v4, %v1425_v46  ;;  %v1505_v4 = vadd.f32 %v1504_v34, %v1415_v31  ;;  %v5572_v31 = vld [vmem:[#allocation84_spill] sm:$0xff]  ;;  %v5578_v46 = vld [vmem:[#allocation18_spill] sm:$0xff] }
 0x316   : > { %v1226_v26 = vadd.f32 %v5573_v56, %v5572_v31  ;;  %v5575_v34 = vld [vmem:[#allocation88_spill] sm:$0xff]  ;;  %v5601_v31 = vld [vmem:[#allocation69_spill] sm:$0xff]  ;;  %v5602_v56 = vld [vmem:[#allocation70_spill] sm:$0xff] }
 0x317   : > { %1776 = vmatpush.bf16.xpose.msrb.mxu2 %v1668_v13  ;;  %v1604_v35 = vadd.f32 %v1603_v63, %v1515_v15  ;;  %v1233_v13 = vadd.f32 %v5570_v52, %v5569_v14  ;;  %v1592_v15 = vadd.f32 %v1591_v60, %v1503_v62  ;;  %v1594_v58 = vadd.f32 %v1593_v22, %v1505_v4  ;;  %v5586_v63 = vld [vmem:[#allocation62_spill] sm:$0xff] }
 0x318   : > { %v1495_v60 = vadd.f32 %v4582_v23, %v4580_v54  ;;  %v1228_v22 = vadd.f32 %v5575_v34, %v5574_v51  ;;  %v1315_v54 = vadd.f32 %v4558_v27, %v1226_v26  ;;  %v5583_v27 = vld [vmem:[#allocation83_spill] sm:$0xff]  ;;  %v1211_v26 = vadd.f32 %v5602_v56, %v5601_v31  ;;  %v5603_v51 = vld [vmem:[#allocation72_spill] sm:$0xff]  ;;  %v5604_v34 = vld [vmem:[#allocation73_spill] sm:$0xff] }
 0x319   : > { %v1685_v53 = vpack.c.bf16 %v1604_v35, %v1602_v11  ;;  %v1322_v9 = vadd.f32 %v4586_v41, %v1233_v13  ;;  %v1683_v14 = vpack.c.bf16 %v1594_v58, %v1592_v15  ;;  %v1493_v41 = vadd.f32 %v4574_v0, %v4571_v59  ;;  %v5589_v35 = vld [vmem:[#allocation20_spill] sm:$0xff]  ;;  %v5593_v13 = vld [vmem:[#allocation49_spill] sm:$0xff] }
 0x31a   : > { %v1584_v55 = vadd.f32 %v4584_v29, %v1495_v60  ;;  %v1317_v1 = vadd.f32 %v4569_v21, %v1228_v22  ;;  %v1488_v59 = vadd.f32 %v4554_v32, %v4549_v57  ;;  %v1490_v0 = vadd.f32 %v4565_v18, %v4560_v28  ;;  %v5577_v29 = vld [vmem:[#allocation15_spill] sm:$0xff]  ;;  %v5582_v18 = vld [vmem:[#allocation82_spill] sm:$0xff]  ;;  %v5596_v58 = vld [vmem:[#allocation77_spill] sm:$0xff] }
 0x31b   : > { %2629 = vmatpush.bf16.msrb.mxu0 %v1685_v53  ;;  %v1666_v40 = vpack.c.bf16 %v1322_v9, %v1320_v5  ;;  %v1582_v3 = vadd.f32 %v4576_v24, %v1493_v41  ;;  %v5576_v24 = vld [vmem:[#allocation66_spill] sm:$0xff]  ;;  %v1483_v21 = vadd.f32 %v5577_v29, %v4515_v6  ;;  %v1485_v57 = vadd.f32 %v5579_v2, %v5578_v46  ;;  %v5580_v32 = vld [vmem:[#allocation79_spill] sm:$0xff]  ;;  %v5600_v60 = vld [vmem:[#allocation68_spill] sm:$0xff] }
 0x31c   : > { %v1577_v37 = vadd.f32 %v4556_v38, %v1488_v59  ;;  %v1579_v10 = vadd.f32 %v4567_v49, %v1490_v0  ;;  %v1665_v45 = vpack.c.bf16 %v1317_v1, %v1315_v54  ;;  %v1221_v28 = vadd.f32 %v5581_v36, %v5580_v32  ;;  %v5584_v38 = vld [vmem:[#allocation55_spill] sm:$0xff]  ;;  %v5588_v6 = vld [vmem:[#allocation50_spill] sm:$0xff]  ;;  %v5606_v1 = vld [vmem:[#allocation40_spill] sm:$0xff] }
 0x31d   : > { %v1681_v23 = vpack.c.bf16 %v1584_v55, %v1582_v3  ;;  %v1223_v8 = vadd.f32 %v5583_v27, %v5582_v18  ;;  %v1572_v49 = vadd.f32 %v5584_v38, %v1483_v21  ;;  %v1574_v11 = vadd.f32 %v5585_v30, %v1485_v57  ;;  %v5595_v9 = vld [vmem:[#allocation75_spill] sm:$0xff]  ;;  %v5608_v21 = vld [vmem:[#allocation37_spill] sm:$0xff]  ;;  %v5609_v18 = vld [vmem:[#allocation76_spill] sm:$0xff] }
 0x31e   : > { %1719 = vmatmul.bf16.gmra.mxu1 %v5571_v12  ;;  %v1680_v17 = vpack.c.bf16 %v1579_v10, %v1577_v37  ;;  %v1478_v61 = vadd.f32 %v5588_v6, %v5587_v20  ;;  %v1310_v53 = vadd.f32 %v5591_v47, %v1221_v28  ;;  %v1218_v5 = vadd.f32 %v5597_v7, %v5596_v58  ;;  %v5607_v29 = vld [vmem:[#allocation71_spill] sm:$0xff]  ;;  %v5613_v47 = vld [vmem:[#allocation86_spill] sm:$0xff] }
 0x31f   : > { %1777 = vmatpush.bf16.xpose.msrb.mxu2 %v1667_v42  ;;  %2630 = vmatpush.bf16.msrb.mxu0 %v1684_v39  ;;  %v1312_v48 = vadd.f32 %v5586_v63, %v1223_v8  ;;  %v5590_v42 = vld [vmem:[#allocation44_spill] sm:$0xff]  ;;  %v1679_v16 = vpack.c.bf16 %v1574_v11, %v1572_v49  ;;  %v5594_v39 = vld [vmem:[#allocation74_spill] sm:$0xff]  ;;  %v1213_v22 = vadd.f32 %v5604_v34, %v5603_v51  ;;  %v1864_v55 = vlaneseq  ;;  %v5610_v27 = vld [vmem:[#allocation43_spill] sm:$0xff] }
 0x320   : > { %v1480_v44 = vadd.f32 %v5590_v42, %v5589_v35  ;;  %v1567_v52 = vadd.f32 %v5592_v50, %v1478_v61  ;;  %v1216_v15 = vadd.f32 %v5595_v9, %v5594_v39  ;;  %v1300_v59 = vadd.f32 %v5606_v1, %v1211_v26  ;;  %v5611_v63 = vld [vmem:[#allocation81_spill] sm:$0xff]  ;;  %v5617_v9 = vld [vmem:[#allocation27_spill] sm:$0xff]  ;;  %v5619_v58 = vld [vmem:[#allocation34_spill] sm:$0xff] }
 0x321   : > { %v1664_v4 = vpack.c.bf16 %v1312_v48, %v1310_v53  ;;  %v4679_v54 = vshrl.u32 %v1864_v55, 7  ;;  %v5612_v48 = vld [vmem:[#allocation46_spill] sm:$0xff]  ;;  %v5614_v53 = vld [vmem:[#allocation51_spill] sm:$0xff]  ;;  %v5616_v39 = vld [vmem:[#allocation57_spill] sm:$0xff] }
 0x322   : > { %v1569_v62 = vadd.f32 %v5593_v13, %v1480_v44 }
 0x323   : > { %2631 = vmatpush.bf16.msrb.mxu0 %v1683_v14  ;;  %v5598_v14 = vld [vmem:[#allocation12_spill] sm:$0xff]  ;;  %v1867_v57 = vadd.s32 16, %v4679_v54  ;;  %v1868_v28 = vadd.s32 24, %v4679_v54  ;;  %v1869_v38 = vadd.s32 32, %v4679_v54  ;;  %v1870_v11 = vadd.s32 40, %v4679_v54 }
 0x324   : > { %v1678_v33 = vpack.c.bf16 %v1569_v62, %v1567_v52  ;;  %v1307_v25 = vadd.f32 %v5598_v14, %v1218_v5  ;;  %v1871_v61 = vadd.s32 48, %v4679_v54  ;;  %v1872_v44 = vadd.s32 56, %v4679_v54 }
 0x325   : > { %v1873_v52 = vadd.s32 64, %v4679_v54  ;;  %v1874_v51 = vadd.s32 72, %v4679_v54 }
 0x327   : > { %1778 = vmatpush.bf16.xpose.msrb.mxu2 %v1666_v40  ;;  %2632 = vmatpush.bf16.msrb.mxu0 %v1682_v43  ;;  %v5599_v40 = vld [vmem:[#allocation53_spill] sm:$0xff] }
 0x328   : > { %v1305_v19 = vadd.f32 %v5599_v40, %v1216_v15  ;;  %v5605_v43 = vld [vmem:[#allocation45_spill] sm:$0xff]  ;;  %v5618_v15 = vld [vmem:[#allocation31_spill] sm:$0xff] }
 0x329   : > { %v1302_v3 = vadd.f32 %v5605_v43, %v1213_v22 }
 0x32a   : > { %v1663_v41 = vpack.c.bf16 %v1307_v25, %v1305_v19 }
 0x32b   : > { %2633 = vmatpush.bf16.msrb.mxu0 %v1681_v23  ;;  %v1662_v0 = vpack.c.bf16 %v1302_v3, %v1300_v59  ;;  %v4681_v23 = vand.u32 127, %v1864_v55 }
 0x32d   : > { %vm1900_vm0 = vcmp.le.s32.totalorder %v4681_v23, %v4679_v54  ;;  %vm1904_vm2 = vcmp.le.s32.totalorder %v4681_v23, %v1867_v57  ;;  %vm1906_vm3 = vcmp.le.s32.totalorder %v4681_v23, %v1868_v28  ;;  %vm1908_vm4 = vcmp.le.s32.totalorder %v4681_v23, %v1869_v38 }
 0x32e   : > { %1724 = vmatmul.bf16.gmra.mxu1 %v5576_v24  ;;  %vm1910_vm5 = vcmp.le.s32.totalorder %v4681_v23, %v1870_v11  ;;  %vm1912_vm6 = vcmp.le.s32.totalorder %v4681_v23, %v1871_v61  ;;  %vm1914_vm7 = vcmp.le.s32.totalorder %v4681_v23, %v1872_v44  ;;  %vm1916_vm8 = vcmp.le.s32.totalorder %v4681_v23, %v1873_v52 }
 0x32f   : > { %1779 = vmatpush.bf16.xpose.msrb.mxu2 %v1665_v45  ;;  %2634 = vmatpush.bf16.msrb.mxu0 %v1680_v17  ;;  %v1866_v45 = vadd.s32 8, %v4679_v54  ;;  %vm1918_vm9 = vcmp.le.s32.totalorder %v4681_v23, %v1874_v51 }
 0x331   : > { %vm1902_vm1 = vcmp.le.s32.totalorder %v4681_v23, %v1866_v45 }
 0x333   : > { %2635 = vmatpush.bf16.msrb.mxu0 %v1679_v16 }
 0x337   : > { %1780 = vmatpush.bf16.xpose.msrb.mxu2 %v1664_v4  ;;  %2636 = vmatpush.bf16.msrb.mxu0 %v1678_v33  ;;  %v5615_v4 = vld [vmem:[#allocation22_spill] sm:$0xff] }
 0x33e   : > { %1729 = vmatmul.bf16.gmra.mxu1 %v5600_v60 }
 0x33f   : > { %1781 = vmatpush.bf16.xpose.msrb.mxu2 %v1663_v41 }
 0x347   : > { %1782 = vmatpush.bf16.xpose.msrb.mxu2 %v1662_v0 }
 0x34b   : > { %v1695_v37 = vpop.f32.mrf.mxu1 }
 0x34c   : > { %v1964_v10 = vsel %vm1900_vm0, %v1695_v37, -inf }
 0x34d   : > { %2029 = vmax.xlane.f32.xlu0 %v1964_v10 }
 0x34e   : > { %1734 = vmatmul.bf16.gmra.mxu1 %v5607_v29  ;;  %1783 = vmatmul.bf16.vlgmr.msrb.gmra.mxu2 %v5608_v21 }
 0x353   : > { %v1697_v46 = vpop.f32.mrf.mxu1 }
 0x354   : > { %v4689_v2 = vsel %vm1902_vm1, %v1697_v46, -inf }
 0x355   : > { %2032 = vmax.xlane.f32.xlu0 %v4689_v2 }
 0x35b   : > { %v1700_v32 = vpop.f32.mrf.mxu1 }
 0x35c   : > { %v4694_v36 = vsel %vm1904_vm2, %v1700_v32, -inf }
 0x35d   : > { %2035 = vmax.xlane.f32.xlu1 %v4694_v36 }
 0x35e   : > { %1739 = vmatmul.bf16.gmra.mxu1 %v5609_v18  ;;  %1788 = vmatmul.bf16.gmra.mxu2 %v5610_v27 }
 0x363   : > { %v1702_v8 = vpop.f32.mrf.mxu1 }
 0x364   : > { %v4701_v17 = vsel %vm1906_vm3, %v1702_v8, -inf }
 0x365   : > { %2038 = vmax.xlane.f32.xlu1 %v4701_v17 }
 0x36b   : > { %v1705_v49 = vpop.f32.mrf.mxu1 }
 0x36c   : > { %v4706_v30 = vsel %vm1908_vm4, %v1705_v49, -inf }
 0x36d   : > { %2041 = vmax.xlane.f32.xlu2 %v4706_v30 }
 0x36e   : > { %1744 = vmatmul.bf16.gmra.mxu1 %v5611_v63  ;;  %1793 = vmatmul.bf16.gmra.mxu2 %v5612_v48 }
 0x373   : > { %v1707_v20 = vpop.f32.mrf.mxu1 }
 0x374   : > { %v4713_v6 = vsel %vm1910_vm5, %v1707_v20, -inf }
 0x375   : > { %2044 = vmax.xlane.f32.xlu2 %v4713_v6 }
 0x37b   : > { %v1710_v35 = vpop.f32.mrf.mxu1 }
 0x37c   : > { %v4718_v42 = vsel %vm1912_vm6, %v1710_v35, -inf }
 0x37d   : > { %2047 = vmax.xlane.f32.xlu0 %v4718_v42 }
 0x37e   : > { %1749 = vmatmul.bf16.gmra.mxu1 %v5613_v47  ;;  %1798 = vmatmul.bf16.gmra.mxu2 %v5614_v53 }
 0x383   : > { %v1712_v16 = vpop.f32.mrf.mxu1 }
 0x384   : > { %v4725_v50 = vsel %vm1914_vm7, %v1712_v16, -inf }
 0x385   : > { %2050 = vmax.xlane.f32.xlu1 %v4725_v50 }
 0x38b   : > { %v1715_v13 = vpop.f32.mrf.mxu1 }
 0x38c   : > { %v4730_v62 = vsel %vm1916_vm8, %v1715_v13, -inf }
 0x38d   : > { %2053 = vmax.xlane.f32.xlu1 %v4730_v62 }
 0x38e   : > { %1754 = vmatmul.bf16.gmra.mxu1 %v5615_v4  ;;  %1803 = vmatmul.bf16.gmra.mxu2 %v5616_v39 }
 0x393   : > { %v1717_v40 = vpop.f32.mrf.mxu1 }
 0x394   : > { %v4758_v45 = vsel %vm1918_vm9, %v1717_v40, -inf }
 0x39b   : > { %v1720_v22 = vpop.f32.mrf.mxu1 }
 0x39e   : > { %1759 = vmatmul.bf16.gmra.mxu1 %v5617_v9  ;;  %1808 = vmatmul.bf16.gmra.mxu2 %v5571_v12 }
 0x3ae   : > { %1764 = vmatmul.bf16.gmra.mxu1 %v5618_v15  ;;  %1813 = vmatmul.bf16.gmra.mxu2 %v5576_v24 }
 0x3be   : > { %1769 = vmatmul.bf16.gmra.mxu1 %v5619_v58  ;;  %1818 = vmatmul.bf16.gmra.mxu2 %v5600_v60 }
 0x3c0   : > { %v2030_v7 = vpop.xlane.xlu0 %2029 }
 0x3c1   : > { %v2124_v5 = vsub.f32 %v1964_v10, %v2030_v7  ;;  %v2125_v33 = vsub.f32 -inf, %v2030_v7 }
 0x3c3   : > { %v2188_v14 = vmul.f32 1.442695, %v2124_v5  ;;  %v2190_v25 = vmul.f32 1.442695, %v2125_v33 }
 0x3c5   : > { %3313 = vpow2.f32 %v2188_v14 }
 0x3c6   : > { %3315 = vpow2.f32 %v2190_v25 }
 0x3c8   : > { %v2033_v19 = vpop.xlane.xlu0 %2032 }
 0x3c9   : > { %v2126_v41 = vsub.f32 %v4689_v2, %v2033_v19  ;;  %v2127_v12 = vsub.f32 -inf, %v2033_v19 }
 0x3cb   : > { %v4742_v31 = vpop.eup %3313  ;;  %v2192_v56 = vmul.f32 1.442695, %v2126_v41  ;;  %v2194_v24 = vmul.f32 1.442695, %v2127_v12 }
 0x3cc   : > { %v4744_v26 = vpop.eup %3315 }
 0x3cd   : > { %3317 = vpow2.f32 %v2192_v56  ;;  %v2316_v60 = vadd.f32 %v4744_v26, %v4742_v31  ;;  %v1878_v56 = vadd.s32 104, %v4679_v54 }
 0x3ce   : > { %3319 = vpow2.f32 %v2194_v24  ;;  %1823 = vmatmul.bf16.gmra.mxu2 %v5607_v29  ;;  %v1875_v29 = vadd.s32 80, %v4679_v54 }
 0x3cf   : > { %2317 = vadd.xlane.f32.xlu2 %v2316_v60  ;;  %vm1926_vm13 = vcmp.le.s32.totalorder %v4681_v23, %v1878_v56 }
 0x3d0   : > { %v2036_v34 = vpop.xlane.xlu1 %2035  ;;  %vm1920_vm10 = vcmp.le.s32.totalorder %v4681_v23, %v1875_v29 }
 0x3d1   : > { %v2128_v43 = vsub.f32 %v4694_v36, %v2036_v34  ;;  %v2129_v3 = vsub.f32 -inf, %v2036_v34  ;;  %v1784_v55 = vpop.f32.mrf.mxu2  ;;  %v1722_v36 = vpop.f32.mrf.mxu1  ;;  %v4771_v49 = vsel %vm1920_vm10, %v1720_v22, -inf }
 0x3d3   : > { %v4751_v1 = vpop.eup %3317  ;;  %v2196_v59 = vmul.f32 1.442695, %v2128_v43  ;;  %v2198_v0 = vmul.f32 1.442695, %v2129_v3 }
 0x3d4   : > { %v4754_v37 = vpop.eup %3319 }
 0x3d5   : > { %3321 = vpow2.f32 %v2196_v59  ;;  %v2319_v10 = vadd.f32 %v4754_v37, %v4751_v1 }
 0x3d6   : > { %3323 = vpow2.f32 %v2198_v0 }
 0x3d7   : > { %2320 = vadd.xlane.f32.xlu0 %v2319_v10  ;;  %2056 = vmax.xlane.f32.xlu2 %v4758_v45 }
 0x3d8   : > { %v2039_v21 = vpop.xlane.xlu1 %2038 }
 0x3d9   : > { %v2130_v46 = vsub.f32 %v4701_v17, %v2039_v21  ;;  %v2131_v2 = vsub.f32 -inf, %v2039_v21  ;;  %v1786_v57 = vpop.f32.mrf.mxu2  ;;  %v1876_v17 = vadd.s32 88, %v4679_v54 }
 0x3db   : > { %v4763_v32 = vpop.eup %3321  ;;  %v2200_v28 = vmul.f32 1.442695, %v2130_v46  ;;  %v2202_v27 = vmul.f32 1.442695, %v2131_v2  ;;  %vm1922_vm11 = vcmp.le.s32.totalorder %v4681_v23, %v1876_v17 }
 0x3dc   : > { %v4766_v8 = vpop.eup %3323  ;;  %v4783_v13 = vsel %vm1922_vm11, %v1722_v36, -inf }
 0x3dd   : > { %3325 = vpow2.f32 %v2200_v28  ;;  %v2322_v38 = vadd.f32 %v4766_v8, %v4763_v32 }
 0x3de   : > { %3327 = vpow2.f32 %v2202_v27  ;;  %1828 = vmatmul.bf16.gmra.mxu2 %v5609_v18  ;;  %v1725_v18 = vpop.f32.mrf.mxu1 }
 0x3df   : > { %2323 = vadd.xlane.f32.xlu0 %v2322_v38  ;;  %2059 = vmax.xlane.f32.xlu2 %v4771_v49 }
 0x3e0   : > { %v2042_v11 = vpop.xlane.xlu2 %2041 }
 0x3e1   : > { %v2132_v48 = vsub.f32 %v4706_v30, %v2042_v11  ;;  %v2133_v20 = vsub.f32 -inf, %v2042_v11  ;;  %v1789_v61 = vpop.f32.mrf.mxu2  ;;  %v1877_v30 = vadd.s32 96, %v4679_v54 }
 0x3e3   : > { %v4776_v35 = vpop.eup %3325  ;;  %v2204_v44 = vmul.f32 1.442695, %v2132_v48  ;;  %v2206_v53 = vmul.f32 1.442695, %v2133_v20  ;;  %vm1924_vm12 = vcmp.le.s32.totalorder %v4681_v23, %v1877_v30 }
 0x3e4   : > { %v4779_v16 = vpop.eup %3327  ;;  %v4796_v12 = vsel %vm1924_vm12, %v1725_v18, -inf }
 0x3e5   : > { %3329 = vpow2.f32 %v2204_v44  ;;  %v2325_v52 = vadd.f32 %v4779_v16, %v4776_v35 }
 0x3e6   : > { %3331 = vpow2.f32 %v2206_v53 }
 0x3e7   : > { %2326 = vadd.xlane.f32.xlu1 %v2325_v52  ;;  %2062 = vmax.xlane.f32.xlu0 %v4783_v13 }
 0x3e8   : > { %v2045_v39 = vpop.xlane.xlu2 %2044 }
 0x3e9   : > { %v2134_v7 = vsub.f32 %v4713_v6, %v2045_v39  ;;  %v2135_v5 = vsub.f32 -inf, %v2045_v39  ;;  %v1791_v33 = vpop.f32.mrf.mxu2  ;;  %v1727_v6 = vpop.f32.mrf.mxu1 }
 0x3ea   : > { %v4808_v59 = vsel %vm1926_vm13, %v1727_v6, -inf }
 0x3eb   : > { %v4788_v14 = vpop.eup %3329  ;;  %v2208_v25 = vmul.f32 1.442695, %v2134_v7  ;;  %v2210_v40 = vmul.f32 1.442695, %v2135_v5 }
 0x3ec   : > { %v4791_v19 = vpop.eup %3331 }
 0x3ed   : > { %3333 = vpow2.f32 %v2208_v25  ;;  %v2328_v41 = vadd.f32 %v4791_v19, %v4788_v14 }
 0x3ee   : > { %3335 = vpow2.f32 %v2210_v40  ;;  %1833 = vmatmul.bf16.gmra.mxu2 %v5611_v63 }
 0x3ef   : > { %2329 = vadd.xlane.f32.xlu1 %v2328_v41  ;;  %2065 = vmax.xlane.f32.xlu0 %v4796_v12 }
 0x3f0   : > { %v2048_v24 = vpop.xlane.xlu0 %2047 }
 0x3f1   : > { %v2136_v60 = vsub.f32 %v4718_v42, %v2048_v24  ;;  %v2137_v51 = vsub.f32 -inf, %v2048_v24  ;;  %v1794_v34 = vpop.f32.mrf.mxu2  ;;  %v1879_v42 = vadd.s32 112, %v4679_v54  ;;  %v1730_v10 = vpop.f32.mrf.mxu1 }
 0x3f3   : > { %v4801_v22 = vpop.eup %3333  ;;  %v2212_v43 = vmul.f32 1.442695, %v2136_v60  ;;  %v2214_v3 = vmul.f32 1.442695, %v2137_v51  ;;  %vm1928_vm14 = vcmp.le.s32.totalorder %v4681_v23, %v1879_v42  ;;  %v4853_v42 = vadd.s32 128, %v4681_v23 }
 0x3f4   : > { %v4804_v63 = vpop.eup %3335  ;;  %v4821_v38 = vsel %vm1928_vm14, %v1730_v10, -inf }
 0x3f5   : > { %3337 = vpow2.f32 %v2212_v43  ;;  %v2331_v55 = vadd.f32 %v4804_v63, %v4801_v22 }
 0x3f6   : > { %3339 = vpow2.f32 %v2214_v3  ;;  %v1881_v3 = vadd.s32 128, %v4679_v54 }
 0x3f7   : > { %2332 = vadd.xlane.f32.xlu2 %v2331_v55  ;;  %2068 = vmax.xlane.f32.xlu1 %v4808_v59 }
 0x3f8   : > { %v2051_v0 = vpop.xlane.xlu1 %2050  ;;  %vm1933_vm0 = vcmp.le.s32.totalorder %v4853_v42, %v1881_v3 }
 0x3f9   : > { %v2138_v29 = vsub.f32 %v4725_v50, %v2051_v0  ;;  %v2139_v21 = vsub.f32 -inf, %v2051_v0  ;;  %v1796_v46 = vpop.f32.mrf.mxu2  ;;  %v1880_v50 = vadd.s32 120, %v4679_v54  ;;  %v1732_v44 = vpop.f32.mrf.mxu1 }
 0x3fb   : > { %v4813_v2 = vpop.eup %3337  ;;  %v2216_v57 = vmul.f32 1.442695, %v2138_v29  ;;  %v2218_v36 = vmul.f32 1.442695, %v2139_v21  ;;  %vm1930_vm15 = vcmp.le.s32.totalorder %v4681_v23, %v1880_v50 }
 0x3fc   : > { %v4816_v28 = vpop.eup %3339  ;;  %v4833_v30 = vsel %vm1930_vm15, %v1732_v44, -inf }
 0x3fd   : > { %3341 = vpow2.f32 %v2216_v57  ;;  %v2334_v27 = vadd.f32 %v4816_v28, %v4813_v2 }
 0x3fe   : > { %3343 = vpow2.f32 %v2218_v36  ;;  %1838 = vmatmul.bf16.gmra.mxu2 %v5613_v47 }
 0x3ff   : > { %2335 = vadd.xlane.f32.xlu2 %v2334_v27  ;;  %2071 = vmax.xlane.f32.xlu1 %v4821_v38 }
 0x400   : > { %v2054_v17 = vpop.xlane.xlu1 %2053 }
 0x401   : > { %v2140_v11 = vsub.f32 %v4730_v62, %v2054_v17  ;;  %v2141_v48 = vsub.f32 -inf, %v2054_v17  ;;  %v1799_v20 = vpop.f32.mrf.mxu2  ;;  %v4846_v24 = vpop.f32.mrf.mxu1 }
 0x402   : > { %v1882_v20 = vadd.s32 136, %v4679_v54 }
 0x403   : > { %v4826_v61 = vpop.eup %3341  ;;  %v2220_v53 = vmul.f32 1.442695, %v2140_v11  ;;  %v2222_v18 = vmul.f32 1.442695, %v2141_v48 }
 0x404   : > { %v4829_v47 = vpop.eup %3343  ;;  %vm1935_vm1 = vcmp.le.s32.totalorder %v4853_v42, %v1882_v20 }
 0x405   : > { %3345 = vpow2.f32 %v2220_v53  ;;  %v2337_v52 = vadd.f32 %v4829_v47, %v4826_v61 }
 0x406   : > { %3347 = vpow2.f32 %v2222_v18 }
 0x407   : > { %2338 = vadd.xlane.f32.xlu0 %v2337_v52  ;;  %2074 = vmax.xlane.f32.xlu2 %v4833_v30 }
 0x409   : > { %v1801_v62 = vpop.f32.mrf.mxu2  ;;  %v4849_v55 = vpop.f32.mrf.mxu1 }
 0x40b   : > { %v4836_v39 = vpop.eup %3345 }
 0x40c   : > { %v4838_v7 = vpop.eup %3347 }
 0x40d   : > { %v2340_v5 = vadd.f32 %v4838_v7, %v4836_v39 }
 0x40e   : > { %1843 = vmatmul.bf16.gmra.mxu2 %v5615_v4 }
 0x40f   : > { %2341 = vadd.xlane.f32.xlu0 %v2340_v5 }
 0x411   : > { %v1804_v33 = vpop.f32.mrf.mxu2 }
 0x419   : > { %v1806_v25 = vpop.f32.mrf.mxu2 }
 0x41a   : > { %v1883_v25 = vadd.s32 144, %v4679_v54 }
 0x41c   : > { %vm1937_vm2 = vcmp.le.s32.totalorder %v4853_v42, %v1883_v25 }
 0x41e   : > { %1848 = vmatmul.bf16.gmra.mxu2 %v5617_v9 }
 0x421   : > { %v1809_v40 = vpop.f32.mrf.mxu2 }
 0x429   : > { %v1811_v41 = vpop.f32.mrf.mxu2 }
 0x42e   : > { %1853 = vmatmul.bf16.gmra.mxu2 %v5618_v15 }
 0x431   : > { %v1814_v6 = vpop.f32.mrf.mxu2 }
 0x439   : > { %v1816_v56 = vpop.f32.mrf.mxu2 }
 0x43e   : > { %1858 = vmatmul.bf16.gmra.mxu2 %v5619_v58 }
 0x441   : > { %v1819_v60 = vpop.f32.mrf.mxu2 }
 0x442   : > { %v2318_v51 = vpop.xlane.xlu2 %2317 }
 0x443   : > { %3349 = vrcp.f32 %v2318_v51 }
 0x449   : > { %v1821_v34 = vpop.f32.mrf.mxu2  ;;  %v3350_v10 = vpop.eup %3349 }
 0x44a   : > { %v2321_v4 = vpop.xlane.xlu0 %2320  ;;  %v2057_v43 = vpop.xlane.xlu2 %2056  ;;  %v2444_v21 = vmul.f32 %v3350_v10, %v4742_v31  ;;  %v2445_v57 = vmul.f32 %v3350_v10, %v4744_v26 }
 0x44b   : > { %3351 = vrcp.f32 %v2321_v4  ;;  %v2142_v9 = vsub.f32 %v4758_v45, %v2057_v43  ;;  %v2143_v15 = vsub.f32 -inf, %v2057_v43  ;;  %v4868_v26 = vpop.f32.mrf.mxu1 }
 0x44d   : > { %v2224_v58 = vmul.f32 1.442695, %v2142_v9  ;;  %v2226_v0 = vmul.f32 1.442695, %v2143_v15 }
 0x44f   : > { %3353 = vpow2.f32 %v2224_v58 }
 0x450   : > { %3355 = vpow2.f32 %v2226_v0 }
 0x451   : > { %v3352_v29 = vpop.eup %3351  ;;  %v1824_v46 = vpop.f32.mrf.mxu2 }
 0x452   : > { %v2446_v36 = vmul.f32 %v3352_v29, %v4751_v1  ;;  %v2447_v45 = vmul.f32 %v3352_v29, %v4754_v37  ;;  %v4860_v27 = vsel %vm1933_vm0, %v1824_v46, -inf  ;;  %v2324_v23 = vpop.xlane.xlu0 %2323  ;;  %v2060_v50 = vpop.xlane.xlu2 %2059 }
 0x453   : > { %v2144_v17 = vsub.f32 %v4771_v49, %v2060_v50  ;;  %v2145_v11 = vsub.f32 -inf, %v2060_v50  ;;  %v2076_v48 = vmax.f32 %v4846_v24, %v4860_v27  ;;  %3357 = vrcp.f32 %v2324_v23  ;;  %v4885_v43 = vpop.f32.mrf.mxu1 }
 0x454   : > { %v2508_v31 = vpack.c.bf16 %v2446_v36, %v2444_v21  ;;  %v2509_v44 = vpack.c.bf16 %v2447_v45, %v2445_v57  ;;  %v1884_v23 = vadd.s32 152, %v4679_v54 }
 0x455   : > { %v4866_v53 = vpop.eup %3353  ;;  %v2228_v1 = vmul.f32 1.442695, %v2144_v17  ;;  %v2230_v37 = vmul.f32 1.442695, %v2145_v11  ;;  %2077 = vmax.xlane.f32.xlu2 %v2076_v48 }
 0x456   : > { %v4870_v18 = vpop.eup %3355  ;;  %2548 = vmatmul.bf16.vlgmr.msrb.gmra.mxu3 %v2508_v31  ;;  %2637 = vmatmul.bf16.vlgmr.msrb.gmra.mxu0 %v2509_v44  ;;  %vm1939_vm3 = vcmp.le.s32.totalorder %v4853_v42, %v1884_v23 }
 0x457   : > { %3359 = vpow2.f32 %v2228_v1  ;;  %v2343_v49 = vadd.f32 %v4870_v18, %v4866_v53  ;;  %v1885_v1 = vadd.s32 160, %v4679_v54 }
 0x458   : > { %3361 = vpow2.f32 %v2230_v37 }
 0x459   : > { %2344 = vadd.xlane.f32.xlu1 %v2343_v49  ;;  %v1826_v52 = vpop.f32.mrf.mxu2  ;;  %v3358_v56 = vpop.eup %3357  ;;  %vm1941_vm4 = vcmp.le.s32.totalorder %v4853_v42, %v1885_v1 }
 0x45a   : > { %v4875_v62 = vsel %vm1935_vm1, %v1826_v52, -inf  ;;  %v2327_v5 = vpop.xlane.xlu1 %2326  ;;  %v2063_v33 = vpop.xlane.xlu0 %2062  ;;  %v2448_v15 = vmul.f32 %v3358_v56, %v4763_v32  ;;  %v2449_v21 = vmul.f32 %v3358_v56, %v4766_v8 }
 0x45b   : > { %3363 = vrcp.f32 %v2327_v5  ;;  %v2146_v40 = vsub.f32 %v4783_v13, %v2063_v33  ;;  %v2147_v41 = vsub.f32 -inf, %v2063_v33  ;;  %v2079_v6 = vmax.f32 %v4849_v55, %v4875_v62 }
 0x45d   : > { %v4881_v60 = vpop.eup %3359  ;;  %v2232_v51 = vmul.f32 1.442695, %v2146_v40  ;;  %v2234_v34 = vmul.f32 1.442695, %v2147_v41  ;;  %2080 = vmax.xlane.f32.xlu0 %v2079_v6 }
 0x45e   : > { %v4883_v4 = vpop.eup %3361 }
 0x45f   : > { %3365 = vpow2.f32 %v2232_v51  ;;  %v2346_v3 = vadd.f32 %v4883_v4, %v4881_v60 }
 0x460   : > { %3367 = vpow2.f32 %v2234_v34 }
 0x461   : > { %v3364_v13 = vpop.eup %3363  ;;  %2347 = vadd.xlane.f32.xlu1 %v2346_v3  ;;  %v1829_v9 = vpop.f32.mrf.mxu2 }
 0x462   : > { %v4891_v58 = vsel %vm1937_vm2, %v1829_v9, -inf  ;;  %v2330_v0 = vpop.xlane.xlu1 %2329  ;;  %v2066_v10 = vpop.xlane.xlu0 %2065  ;;  %v2450_v29 = vmul.f32 %v3364_v13, %v4776_v35  ;;  %v2451_v46 = vmul.f32 %v3364_v13, %v4779_v16 }
 0x463   : > { %v2148_v57 = vsub.f32 %v4796_v12, %v2066_v10  ;;  %v2149_v36 = vsub.f32 -inf, %v2066_v10  ;;  %v2082_v45 = vmax.f32 %v4868_v26, %v4891_v58  ;;  %3369 = vrcp.f32 %v2330_v0  ;;  %v4907_v16 = vpop.f32.mrf.mxu1 }
 0x464   : > { %v2510_v50 = vpack.c.bf16 %v2450_v29, %v2448_v15  ;;  %v2511_v32 = vpack.c.bf16 %v2451_v46, %v2449_v21  ;;  %v1886_v46 = vadd.s32 168, %v4679_v54 }
 0x465   : > { %v4900_v17 = vpop.eup %3365  ;;  %v2236_v11 = vmul.f32 1.442695, %v2148_v57  ;;  %v2238_v48 = vmul.f32 1.442695, %v2149_v36  ;;  %2083 = vmax.xlane.f32.xlu0 %v2082_v45 }
 0x466   : > { %v4902_v35 = vpop.eup %3367  ;;  %2553 = vmatmul.bf16.gmra.mxu3 %v2510_v50  ;;  %2642 = vmatmul.bf16.gmra.mxu0 %v2511_v32  ;;  %vm1943_vm5 = vcmp.le.s32.totalorder %v4853_v42, %v1886_v46  ;;  %v1889_v46 = vadd.s32 192, %v4679_v54 }
 0x467   : > { %3371 = vpow2.f32 %v2236_v11  ;;  %v2349_v8 = vadd.f32 %v4902_v35, %v4900_v17 }
 0x468   : > { %3373 = vpow2.f32 %v2238_v48  ;;  %v1887_v48 = vadd.s32 176, %v4679_v54  ;;  %vm1949_vm8 = vcmp.le.s32.totalorder %v4853_v42, %v1889_v46 }
 0x469   : > { %2350 = vadd.xlane.f32.xlu2 %v2349_v8  ;;  %v1831_v12 = vpop.f32.mrf.mxu2  ;;  %v3370_v5 = vpop.eup %3369 }
 0x46a   : > { %v4909_v20 = vsel %vm1939_vm3, %v1831_v12, -inf  ;;  %v2333_v31 = vpop.xlane.xlu2 %2332  ;;  %v2069_v44 = vpop.xlane.xlu1 %2068  ;;  %v2452_v51 = vmul.f32 %v3370_v5, %v4788_v14  ;;  %v2453_v15 = vmul.f32 %v3370_v5, %v4791_v19  ;;  %vm1945_vm6 = vcmp.le.s32.totalorder %v4853_v42, %v1887_v48 }
 0x46b   : > { %3375 = vrcp.f32 %v2333_v31  ;;  %v2150_v37 = vsub.f32 %v4808_v59, %v2069_v44  ;;  %v2151_v49 = vsub.f32 -inf, %v2069_v44  ;;  %v2085_v52 = vmax.f32 %v4885_v43, %v4909_v20  ;;  %v4932_v57 = vpop.f32.mrf.mxu1 }
 0x46d   : > { %v4915_v33 = vpop.eup %3371  ;;  %v2240_v25 = vmul.f32 1.442695, %v2150_v37  ;;  %v2242_v40 = vmul.f32 1.442695, %v2151_v49  ;;  %2086 = vmax.xlane.f32.xlu1 %v2085_v52 }
 0x46e   : > { %v4917_v41 = vpop.eup %3373 }
 0x46f   : > { %3377 = vpow2.f32 %v2240_v25  ;;  %v2352_v6 = vadd.f32 %v4917_v41, %v4915_v33 }
 0x470   : > { %3379 = vpow2.f32 %v2242_v40 }
 0x471   : > { %v3376_v59 = vpop.eup %3375  ;;  %2353 = vadd.xlane.f32.xlu2 %v2352_v6  ;;  %v1834_v56 = vpop.f32.mrf.mxu2 }
 0x472   : > { %v4923_v34 = vsel %vm1941_vm4, %v1834_v56, -inf  ;;  %v2336_v3 = vpop.xlane.xlu2 %2335  ;;  %v2072_v13 = vpop.xlane.xlu1 %2071  ;;  %v2454_v9 = vmul.f32 %v3376_v59, %v4801_v22  ;;  %v2455_v0 = vmul.f32 %v3376_v59, %v4804_v63 }
 0x473   : > { %v2152_v10 = vsub.f32 %v4821_v38, %v2072_v13  ;;  %v2153_v29 = vsub.f32 -inf, %v2072_v13  ;;  %v2088_v21 = vmax.f32 %v4907_v16, %v4923_v34  ;;  %3381 = vrcp.f32 %v2336_v3  ;;  %v4951_v5 = vpop.f32.mrf.mxu1 }
 0x474   : > { %v2512_v14 = vpack.c.bf16 %v2454_v9, %v2452_v51  ;;  %v2513_v36 = vpack.c.bf16 %v2455_v0, %v2453_v15  ;;  %v1888_v9 = vadd.s32 184, %v4679_v54 }
 0x475   : > { %v4934_v45 = vpop.eup %3377  ;;  %v2244_v23 = vmul.f32 1.442695, %v2152_v10  ;;  %v2246_v22 = vmul.f32 1.442695, %v2153_v29  ;;  %2089 = vmax.xlane.f32.xlu1 %v2088_v21 }
 0x476   : > { %v4936_v19 = vpop.eup %3379  ;;  %2558 = vmatmul.bf16.gmra.mxu3 %v2512_v14  ;;  %2647 = vmatmul.bf16.gmra.mxu0 %v2513_v36  ;;  %vm1947_vm7 = vcmp.le.s32.totalorder %v4853_v42, %v1888_v9 }
 0x477   : > { %3383 = vpow2.f32 %v2244_v23  ;;  %v2355_v63 = vadd.f32 %v4936_v19, %v4934_v45 }
 0x478   : > { %3385 = vpow2.f32 %v2246_v22 }
 0x479   : > { %2356 = vadd.xlane.f32.xlu0 %v2355_v63  ;;  %v1836_v38 = vpop.f32.mrf.mxu2  ;;  %v3382_v44 = vpop.eup %3381 }
 0x47a   : > { %v4941_v50 = vsel %vm1943_vm5, %v1836_v38, -inf  ;;  %v2339_v32 = vpop.xlane.xlu0 %2338  ;;  %v2075_v11 = vpop.xlane.xlu2 %2074  ;;  %v2456_v6 = vmul.f32 %v3382_v44, %v4813_v2  ;;  %v2457_v51 = vmul.f32 %v3382_v44, %v4816_v28 }
 0x47b   : > { %3387 = vrcp.f32 %v2339_v32  ;;  %v2154_v8 = vsub.f32 %v4833_v30, %v2075_v11  ;;  %v2155_v12 = vsub.f32 -inf, %v2075_v11  ;;  %v2091_v31 = vmax.f32 %v4932_v57, %v4941_v50  ;;  %v4972_v28 = vpop.f32.mrf.mxu1 }
 0x47d   : > { %v4947_v1 = vpop.eup %3383  ;;  %v2248_v37 = vmul.f32 1.442695, %v2154_v8  ;;  %v2250_v49 = vmul.f32 1.442695, %v2155_v12  ;;  %2092 = vmax.xlane.f32.xlu2 %v2091_v31 }
 0x47e   : > { %v4949_v52 = vpop.eup %3385 }
 0x47f   : > { %3389 = vpow2.f32 %v2248_v37  ;;  %v2358_v25 = vadd.f32 %v4949_v52, %v4947_v1 }
 0x480   : > { %3391 = vpow2.f32 %v2250_v49 }
 0x481   : > { %v3388_v30 = vpop.eup %3387  ;;  %2359 = vadd.xlane.f32.xlu0 %v2358_v25  ;;  %v1839_v40 = vpop.f32.mrf.mxu2 }
 0x482   : > { %v4957_v59 = vsel %vm1945_vm6, %v1839_v40, -inf  ;;  %v2458_v56 = vmul.f32 %v3388_v30, %v4826_v61  ;;  %v2459_v3 = vmul.f32 %v3388_v30, %v4829_v47  ;;  %v2342_v63 = vpop.xlane.xlu0 %2341 }
 0x483   : > { %v2094_v13 = vmax.f32 %v4951_v5, %v4957_v59  ;;  %v4980_v36 = vpop.f32.mrf.mxu1  ;;  %3393 = vrcp.f32 %v2342_v63 }
 0x484   : > { %v2514_v15 = vpack.c.bf16 %v2458_v56, %v2456_v6  ;;  %v2515_v0 = vpack.c.bf16 %v2459_v3, %v2457_v51 }
 0x485   : > { %v4965_v10 = vpop.eup %3389  ;;  %2095 = vmax.xlane.f32.xlu2 %v2094_v13 }
 0x486   : > { %v4967_v29 = vpop.eup %3391  ;;  %2563 = vmatmul.bf16.gmra.mxu3 %v2514_v15  ;;  %2652 = vmatmul.bf16.gmra.mxu0 %v2515_v0 }
 0x487   : > { %v2361_v2 = vadd.f32 %v4967_v29, %v4965_v10 }
 0x489   : > { %2362 = vadd.xlane.f32.xlu1 %v2361_v2  ;;  %v1841_v61 = vpop.f32.mrf.mxu2  ;;  %v3394_v30 = vpop.eup %3393 }
 0x48a   : > { %v4974_v47 = vsel %vm1947_vm7, %v1841_v61, -inf  ;;  %v2460_v9 = vmul.f32 %v3394_v30, %v4836_v39  ;;  %v2461_v15 = vmul.f32 %v3394_v30, %v4838_v7 }
 0x48b   : > { %v2097_v21 = vmax.f32 %v4972_v28, %v4974_v47  ;;  %v4988_v44 = vpop.f32.mrf.mxu1 }
 0x48d   : > { %2098 = vmax.xlane.f32.xlu0 %v2097_v21 }
 0x491   : > { %v1844_v14 = vpop.f32.mrf.mxu2 }
 0x492   : > { %v4982_v23 = vsel %vm1949_vm8, %v1844_v14, -inf }
 0x493   : > { %v2100_v22 = vmax.f32 %v4980_v36, %v4982_v23  ;;  %v5005_v14 = vpop.f32.mrf.mxu1 }
 0x495   : > { %2101 = vmax.xlane.f32.xlu0 %v2100_v22 }
 0x499   : > { %v1846_v48 = vpop.f32.mrf.mxu2 }
 0x4a1   : > { %v1849_v13 = vpop.f32.mrf.mxu2 }
 0x4c8   : > { %v2078_v38 = vpop.xlane.xlu2 %2077 }
 0x4c9   : > { %v2156_v32 = vsub.f32 %v4846_v24, %v2078_v38  ;;  %v2157_v11 = vsub.f32 %v4860_v27, %v2078_v38  ;;  %v1890_v27 = vadd.s32 200, %v4679_v54  ;;  %v1891_v38 = vadd.s32 208, %v4679_v54 }
 0x4cb   : > { %v2252_v8 = vmul.f32 1.442695, %v2156_v32  ;;  %v2254_v12 = vmul.f32 1.442695, %v2157_v11  ;;  %vm1951_vm9 = vcmp.le.s32.totalorder %v4853_v42, %v1890_v27  ;;  %vm1953_vm10 = vcmp.le.s32.totalorder %v4853_v42, %v1891_v38 }
 0x4cc   : > { %v2345_v31 = vpop.xlane.xlu1 %2344 }
 0x4cd   : > { %3395 = vpow2.f32 %v2252_v8 }
 0x4ce   : > { %3397 = vpow2.f32 %v2254_v12 }
 0x4cf   : > { %3399 = vrcp.f32 %v2345_v31  ;;  %v1851_v31 = vpop.f32.mrf.mxu2 }
 0x4d0   : > { %v2081_v37 = vpop.xlane.xlu0 %2080 }
 0x4d1   : > { %v2158_v49 = vsub.f32 %v4849_v55, %v2081_v37  ;;  %v2159_v25 = vsub.f32 %v4875_v62, %v2081_v37 }
 0x4d3   : > { %v4992_v24 = vpop.eup %3395  ;;  %v2256_v40 = vmul.f32 1.442695, %v2158_v49  ;;  %v2258_v6 = vmul.f32 1.442695, %v2159_v25  ;;  %v2638_v56 = vpop.f32.mrf.mxu0 }
 0x4d4   : > { %v4995_v51 = vpop.eup %3397  ;;  %v2348_v2 = vpop.xlane.xlu1 %2347 }
 0x4d5   : > { %v3400_v3 = vpop.eup %3399  ;;  %3401 = vpow2.f32 %v2256_v40  ;;  %v2364_v55 = vadd.f32 %v4995_v51, %v4992_v24  ;;  %v5026_v40 = vsel %vm1953_vm10, %v1849_v13, -inf }
 0x4d6   : > { %3403 = vpow2.f32 %v2258_v6  ;;  %v2462_v62 = vmul.f32 %v3400_v3, %v4866_v53  ;;  %v2463_v0 = vmul.f32 %v3400_v3, %v4870_v18  ;;  %v5009_v53 = vsel %vm1951_vm9, %v1846_v48, -inf  ;;  %v5030_v3 = vpop.f32.mrf.mxu1 }
 0x4d7   : > { %2365 = vadd.xlane.f32.xlu1 %v2364_v55  ;;  %3405 = vrcp.f32 %v2348_v2  ;;  %v2103_v48 = vmax.f32 %v4988_v44, %v5009_v53  ;;  %v2106_v13 = vmax.f32 %v5005_v14, %v5026_v40 }
 0x4d8   : > { %v2516_v61 = vpack.c.bf16 %v2462_v62, %v2460_v9  ;;  %v2517_v21 = vpack.c.bf16 %v2463_v0, %v2461_v15  ;;  %v2084_v46 = vpop.xlane.xlu0 %2083  ;;  %v1892_v9 = vadd.s32 216, %v4679_v54 }
 0x4d9   : > { %v2549_v39 = vpop.f32.mrf.mxu3  ;;  %v2160_v22 = vsub.f32 %v4868_v26, %v2084_v46  ;;  %v2161_v63 = vsub.f32 %v4891_v58, %v2084_v46 }
 0x4da   : > { %2568 = vmatmul.bf16.gmra.mxu3 %v2516_v61  ;;  %2657 = vmatmul.bf16.gmra.mxu0 %v2517_v21  ;;  %v2639_v7 = vadd.f32 %v2638_v56, %v2549_v39  ;;  %vm1955_vm11 = vcmp.le.s32.totalorder %v4853_v42, %v1892_v9 }
 0x4db   : > { %v5011_v18 = vpop.eup %3401  ;;  %v2260_v32 = vmul.f32 1.442695, %v2160_v22  ;;  %v2262_v11 = vmul.f32 1.442695, %v2161_v63  ;;  %v2640_v8 = vpop.f32.mrf.mxu0 }
 0x4dc   : > { %v5014_v12 = vpop.eup %3403  ;;  %2718 = vst [vmem:[%s5016_s20] sm:$0xff] %v2639_v7  ;;  %v2351_v26 = vpop.xlane.xlu2 %2350 }
 0x4dd   : > { %3407 = vpow2.f32 %v2260_v32  ;;  %v2367_v58 = vadd.f32 %v5014_v12, %v5011_v18  ;;  %v3406_v27 = vpop.eup %3405  ;;  %v1854_v7 = vpop.f32.mrf.mxu2 }
 0x4de   : > { %3409 = vpow2.f32 %v2262_v11  ;;  %v2465_v21 = vmul.f32 %v3406_v27, %v4883_v4 }
 0x4df   : > { %3411 = vrcp.f32 %v2351_v26  ;;  %2368 = vadd.xlane.f32.xlu2 %v2367_v58  ;;  %2104 = vmax.xlane.f32.xlu1 %v2103_v48 }
 0x4e0   : > { %v2087_v37 = vpop.xlane.xlu1 %2086 }
 0x4e1   : > { %v2551_v49 = vpop.f32.mrf.mxu3  ;;  %v2162_v25 = vsub.f32 %v4885_v43, %v2087_v37  ;;  %v2163_v30 = vsub.f32 %v4909_v20, %v2087_v37  ;;  %v2464_v43 = vmul.f32 %v3406_v27, %v4881_v60 }
 0x4e2   : > { %v2641_v6 = vadd.f32 %v2640_v8, %v2551_v49  ;;  %v1893_v8 = vadd.s32 224, %v4679_v54 }
 0x4e3   : > { %v5028_v56 = vpop.eup %3407  ;;  %v2264_v55 = vmul.f32 1.442695, %v2162_v25  ;;  %v2266_v62 = vmul.f32 1.442695, %v2163_v30  ;;  %v2643_v15 = vpop.f32.mrf.mxu0 }
 0x4e4   : > { %v5033_v0 = vpop.eup %3409  ;;  %2719 = vst [vmem:[%s5016_s20 + $0x8] sm:$0xff] %v2641_v6  ;;  %v2354_v39 = vpop.xlane.xlu2 %2353  ;;  %vm1957_vm12 = vcmp.le.s32.totalorder %v4853_v42, %v1893_v8 }
 0x4e5   : > { %v3412_v2 = vpop.eup %3411  ;;  %3413 = vpow2.f32 %v2264_v55  ;;  %v2370_v20 = vadd.f32 %v5033_v0, %v5028_v56  ;;  %v5064_v55 = vsel %vm1957_vm12, %v1854_v7, -inf }
 0x4e6   : > { %3415 = vpow2.f32 %v2266_v62  ;;  %v2466_v61 = vmul.f32 %v3412_v2, %v4900_v17  ;;  %v2467_v46 = vmul.f32 %v3412_v2, %v4902_v35  ;;  %v5047_v17 = vsel %vm1955_vm11, %v1851_v31, -inf  ;;  %v1856_v2 = vpop.f32.mrf.mxu2 }
 0x4e7   : > { %2371 = vadd.xlane.f32.xlu2 %v2370_v20  ;;  %2107 = vmax.xlane.f32.xlu1 %v2106_v13  ;;  %3417 = vrcp.f32 %v2354_v39  ;;  %v2109_v31 = vmax.f32 %v5030_v3, %v5047_v17 }
 0x4e8   : > { %v2518_v22 = vpack.c.bf16 %v2466_v61, %v2464_v43  ;;  %v2519_v60 = vpack.c.bf16 %v2467_v46, %v2465_v21  ;;  %v2090_v63 = vpop.xlane.xlu1 %2089  ;;  %v1894_v43 = vadd.s32 232, %v4679_v54 }
 0x4e9   : > { %v2554_v38 = vpop.f32.mrf.mxu3  ;;  %v2164_v32 = vsub.f32 %v4907_v16, %v2090_v63  ;;  %v2165_v11 = vsub.f32 %v4923_v34, %v2090_v63  ;;  %v5055_v16 = vpop.f32.mrf.mxu1 }
 0x4ea   : > { %2573 = vmatmul.bf16.gmra.mxu3 %v2518_v22  ;;  %2662 = vmatmul.bf16.gmra.mxu0 %v2519_v60  ;;  %v2644_v4 = vadd.f32 %v2643_v15, %v2554_v38  ;;  %v2112_v39 = vmax.f32 %v5055_v16, %v5064_v55  ;;  %vm1959_vm13 = vcmp.le.s32.totalorder %v4853_v42, %v1894_v43 }
 0x4eb   : > { %v5049_v35 = vpop.eup %3413  ;;  %v2268_v26 = vmul.f32 1.442695, %v2164_v32  ;;  %v2270_v58 = vmul.f32 1.442695, %v2165_v11  ;;  %v2645_v48 = vpop.f32.mrf.mxu0 }
 0x4ec   : > { %v5052_v37 = vpop.eup %3415  ;;  %2720 = vst [vmem:[%s5016_s20 + $0x10] sm:$0xff] %v2644_v4  ;;  %v2357_v49 = vpop.xlane.xlu0 %2356 }
 0x4ed   : > { %3419 = vpow2.f32 %v2268_v26  ;;  %v2373_v34 = vadd.f32 %v5052_v37, %v5049_v35  ;;  %v3418_v9 = vpop.eup %3417  ;;  %v5085_v26 = vsel %vm1959_vm13, %v1856_v2, -inf }
 0x4ee   : > { %3421 = vpow2.f32 %v2270_v58  ;;  %v2469_v60 = vmul.f32 %v3418_v9, %v4917_v41  ;;  %v1895_v58 = vadd.s32 240, %v4679_v54 }
 0x4ef   : > { %3423 = vrcp.f32 %v2357_v49  ;;  %2374 = vadd.xlane.f32.xlu0 %v2373_v34  ;;  %2110 = vmax.xlane.f32.xlu2 %v2109_v31 }
 0x4f0   : > { %v2093_v25 = vpop.xlane.xlu2 %2092  ;;  %vm1961_vm14 = vcmp.le.s32.totalorder %v4853_v42, %v1895_v58 }
 0x4f1   : > { %v2556_v30 = vpop.f32.mrf.mxu3  ;;  %v2166_v27 = vsub.f32 %v4932_v57, %v2093_v25  ;;  %v2167_v6 = vsub.f32 %v4941_v50, %v2093_v25  ;;  %v2468_v57 = vmul.f32 %v3418_v9, %v4915_v33  ;;  %v5080_v7 = vpop.f32.mrf.mxu1 }
 0x4f2   : > { %v2646_v62 = vadd.f32 %v2645_v48, %v2556_v30  ;;  %v1859_v25 = vpop.f32.mrf.mxu2  ;;  %v2115_v30 = vmax.f32 %v5080_v7, %v5085_v26 }
 0x4f3   : > { %v5066_v15 = vpop.eup %3419  ;;  %v2272_v20 = vmul.f32 1.442695, %v2166_v27  ;;  %v2274_v13 = vmul.f32 1.442695, %v2167_v6  ;;  %v2648_v61 = vpop.f32.mrf.mxu0 }
 0x4f4   : > { %v5069_v21 = vpop.eup %3421  ;;  %2721 = vst [vmem:[%s5016_s20 + $0x18] sm:$0xff] %v2646_v62  ;;  %v2360_v33 = vpop.xlane.xlu0 %2359 }
 0x4f5   : > { %v3424_v46 = vpop.eup %3423  ;;  %3425 = vpow2.f32 %v2272_v20  ;;  %v2376_v50 = vadd.f32 %v5069_v21, %v5066_v15  ;;  %v5102_v20 = vsel %vm1961_vm14, %v1859_v25, -inf }
 0x4f6   : > { %3427 = vpow2.f32 %v2274_v13  ;;  %v2470_v22 = vmul.f32 %v3424_v46, %v4934_v45  ;;  %v2471_v63 = vmul.f32 %v3424_v46, %v4936_v19  ;;  %v1896_v46 = vadd.s32 248, %v4679_v54 }
 0x4f7   : > { %2377 = vadd.xlane.f32.xlu0 %v2376_v50  ;;  %2113 = vmax.xlane.f32.xlu2 %v2112_v39  ;;  %3429 = vrcp.f32 %v2360_v33 }
 0x4f8   : > { %v2520_v38 = vpack.c.bf16 %v2470_v22, %v2468_v57  ;;  %v2521_v32 = vpack.c.bf16 %v2471_v63, %v2469_v60  ;;  %v2096_v11 = vpop.xlane.xlu2 %2095  ;;  %vm1963_vm15 = vcmp.le.s32.totalorder %v4853_v42, %v1896_v46 }
 0x4f9   : > { %v2559_v4 = vpop.f32.mrf.mxu3  ;;  %v2168_v8 = vsub.f32 %v4951_v5, %v2096_v11  ;;  %v2169_v45 = vsub.f32 %v4957_v59, %v2096_v11  ;;  %v5100_v43 = vpop.f32.mrf.mxu1 }
 0x4fa   : > { %2578 = vmatmul.bf16.gmra.mxu3 %v2520_v38  ;;  %2667 = vmatmul.bf16.gmra.mxu0 %v2521_v32  ;;  %v2649_v41 = vadd.f32 %v2648_v61, %v2559_v4  ;;  %v2118_v60 = vmax.f32 %v5100_v43, %v5102_v20  ;;  %v1861_v38 = vpop.f32.mrf.mxu2 }
 0x4fb   : > { %v5087_v19 = vpop.eup %3425  ;;  %v2276_v48 = vmul.f32 1.442695, %v2168_v8  ;;  %v2278_v49 = vmul.f32 1.442695, %v2169_v45  ;;  %v2650_v5 = vpop.f32.mrf.mxu0 }
 0x4fc   : > { %v5090_v34 = vpop.eup %3427  ;;  %2722 = vst [vmem:[%s5016_s20 + $0x20] sm:$0xff] %v2649_v41  ;;  %v2363_v31 = vpop.xlane.xlu1 %2362 }
 0x4fd   : > { %3431 = vpow2.f32 %v2276_v48  ;;  %v2379_v59 = vadd.f32 %v5090_v34, %v5087_v19  ;;  %v3430_v2 = vpop.eup %3429 }
 0x4fe   : > { %3433 = vpow2.f32 %v2278_v49  ;;  %v2473_v54 = vmul.f32 %v3430_v2, %v4949_v52 }
 0x4ff   : > { %3435 = vrcp.f32 %v2363_v31  ;;  %2380 = vadd.xlane.f32.xlu1 %v2379_v59  ;;  %2116 = vmax.xlane.f32.xlu0 %v2115_v30 }
 0x500   : > { %v2099_v27 = vpop.xlane.xlu0 %2098 }
 0x501   : > { %v2561_v6 = vpop.f32.mrf.mxu3  ;;  %v2170_v9 = vsub.f32 %v4972_v28, %v2099_v27  ;;  %v2171_v62 = vsub.f32 %v4974_v47, %v2099_v27  ;;  %v2472_v28 = vmul.f32 %v3430_v2, %v4947_v1  ;;  %v5127_v49 = vpop.f32.mrf.mxu1 }
 0x502   : > { %v2651_v13 = vadd.f32 %v2650_v5, %v2561_v6 }
 0x503   : > { %v5104_v61 = vpop.eup %3431  ;;  %v2280_v57 = vmul.f32 1.442695, %v2170_v9  ;;  %v2282_v50 = vmul.f32 1.442695, %v2171_v62  ;;  %v2653_v32 = vpop.f32.mrf.mxu0 }
 0x504   : > { %v5107_v39 = vpop.eup %3433  ;;  %2723 = vst [vmem:[%s5016_s20 + $0x28] sm:$0xff] %v2651_v13 }
 0x505   : > { %v3436_v22 = vpop.eup %3435  ;;  %3437 = vpow2.f32 %v2280_v57  ;;  %v2382_v47 = vadd.f32 %v5107_v39, %v5104_v61 }
 0x506   : > { %3439 = vpow2.f32 %v2282_v50  ;;  %v2474_v63 = vmul.f32 %v3436_v22, %v4965_v10  ;;  %v2475_v33 = vmul.f32 %v3436_v22, %v4967_v29  ;;  %v5121_v10 = vsel %vm1963_vm15, %v1861_v38, -inf }
 0x507   : > { %2383 = vadd.xlane.f32.xlu1 %v2382_v47  ;;  %2119 = vmax.xlane.f32.xlu0 %v2118_v60 }
 0x508   : > { %v2522_v1 = vpack.c.bf16 %v2474_v63, %v2472_v28  ;;  %v2523_v11 = vpack.c.bf16 %v2475_v33, %v2473_v54  ;;  %v2102_v4 = vpop.xlane.xlu0 %2101 }
 0x509   : > { %v2564_v8 = vpop.f32.mrf.mxu3  ;;  %v2172_v45 = vsub.f32 %v4980_v36, %v2102_v4  ;;  %v2173_v41 = vsub.f32 %v4982_v23, %v2102_v4  ;;  %v2121_v23 = vmax.f32 %v5127_v49, %v5121_v10 }
 0x50a   : > { %2583 = vmatmul.bf16.gmra.mxu3 %v2522_v1  ;;  %2672 = vmatmul.bf16.gmra.mxu0 %v2523_v11  ;;  %v2654_v52 = vadd.f32 %v2653_v32, %v2564_v8 }
 0x50b   : > { %v5123_v29 = vpop.eup %3437  ;;  %v2284_v42 = vmul.f32 1.442695, %v2172_v45  ;;  %v2286_v58 = vmul.f32 1.442695, %v2173_v41  ;;  %v2655_v31 = vpop.f32.mrf.mxu0 }
 0x50c   : > { %v5125_v48 = vpop.eup %3439  ;;  %2724 = vst [vmem:[%s5016_s20 + $0x30] sm:$0xff] %v2654_v52 }
 0x50d   : > { %3441 = vpow2.f32 %v2284_v42  ;;  %v2385_v36 = vadd.f32 %v5125_v48, %v5123_v29 }
 0x50e   : > { %3443 = vpow2.f32 %v2286_v58 }
 0x50f   : > { %2386 = vadd.xlane.f32.xlu2 %v2385_v36  ;;  %2122 = vmax.xlane.f32.xlu1 %v2121_v23 }
 0x511   : > { %v2566_v25 = vpop.f32.mrf.mxu3 }
 0x512   : > { %v2656_v5 = vadd.f32 %v2655_v31, %v2566_v25 }
 0x513   : > { %v5134_v59 = vpop.eup %3441 }
 0x514   : > { %v5136_v30 = vpop.eup %3443  ;;  %2725 = vst [vmem:[%s5016_s20 + $0x38] sm:$0xff] %v2656_v5 }
 0x515   : > { %v2388_v27 = vadd.f32 %v5136_v30, %v5134_v59 }
 0x517   : > { %2389 = vadd.xlane.f32.xlu2 %v2388_v27 }
 0x54a   : > { %v2366_v6 = vpop.xlane.xlu1 %2365 }
 0x54b   : > { %3445 = vrcp.f32 %v2366_v6 }
 0x551   : > { %v3446_v50 = vpop.eup %3445 }
 0x552   : > { %v2369_v9 = vpop.xlane.xlu2 %2368  ;;  %v2105_v62 = vpop.xlane.xlu1 %2104  ;;  %v2476_v63 = vmul.f32 %v3446_v50, %v4992_v24  ;;  %v2477_v33 = vmul.f32 %v3446_v50, %v4995_v51 }
 0x553   : > { %3447 = vrcp.f32 %v2369_v9  ;;  %v2174_v2 = vsub.f32 %v4988_v44, %v2105_v62  ;;  %v2175_v13 = vsub.f32 %v5009_v53, %v2105_v62 }
 0x555   : > { %v2288_v46 = vmul.f32 1.442695, %v2174_v2  ;;  %v2290_v57 = vmul.f32 1.442695, %v2175_v13 }
 0x557   : > { %3449 = vpow2.f32 %v2288_v46  ;;  %v2658_v22 = vpop.f32.mrf.mxu0 }
 0x558   : > { %3451 = vpow2.f32 %v2290_v57 }
 0x559   : > { %v3448_v28 = vpop.eup %3447 }
 0x55a   : > { %v2372_v47 = vpop.xlane.xlu2 %2371  ;;  %v2108_v60 = vpop.xlane.xlu1 %2107  ;;  %v2478_v54 = vmul.f32 %v3448_v28, %v5011_v18  ;;  %v2479_v38 = vmul.f32 %v3448_v28, %v5014_v12 }
 0x55b   : > { %v2176_v44 = vsub.f32 %v5005_v14, %v2108_v60  ;;  %v2177_v53 = vsub.f32 %v5026_v40, %v2108_v60 }
 0x55c   : > { %v2524_v32 = vpack.c.bf16 %v2478_v54, %v2476_v63  ;;  %v2525_v1 = vpack.c.bf16 %v2479_v38, %v2477_v33 }
 0x55d   : > { %v5149_v11 = vpop.eup %3449  ;;  %v2569_v4 = vpop.f32.mrf.mxu3  ;;  %v2292_v8 = vmul.f32 1.442695, %v2176_v44  ;;  %v2294_v45 = vmul.f32 1.442695, %v2177_v53 }
 0x55e   : > { %v5151_v41 = vpop.eup %3451  ;;  %v2659_v24 = vadd.f32 %v2658_v22, %v2569_v4  ;;  %2588 = vmatmul.bf16.gmra.mxu3 %v2524_v32  ;;  %2677 = vmatmul.bf16.gmra.mxu0 %v2525_v1 }
 0x55f   : > { %3453 = vpow2.f32 %v2292_v8  ;;  %v2660_v51 = vpop.f32.mrf.mxu0  ;;  %v2391_v18 = vadd.f32 %v5151_v41, %v5149_v11 }
 0x560   : > { %2726 = vst [vmem:[%s5016_s20 + $0x40] sm:$0xff] %v2659_v24  ;;  %3455 = vpow2.f32 %v2294_v45 }
 0x561   : > { %3457 = vrcp.f32 %v2372_v47  ;;  %2392 = vadd.xlane.f32.xlu0 %v2391_v18 }
 0x562   : > { %v2375_v14 = vpop.xlane.xlu0 %2374  ;;  %v2111_v12 = vpop.xlane.xlu2 %2110 }
 0x563   : > { %3459 = vrcp.f32 %v2375_v14  ;;  %v2178_v40 = vsub.f32 %v5030_v3, %v2111_v12  ;;  %v2179_v52 = vsub.f32 %v5047_v17, %v2111_v12 }
 0x565   : > { %v5158_v42 = vpop.eup %3453  ;;  %v2571_v58 = vpop.f32.mrf.mxu3  ;;  %v2296_v36 = vmul.f32 1.442695, %v2178_v40  ;;  %v2298_v23 = vmul.f32 1.442695, %v2179_v52 }
 0x566   : > { %v5160_v31 = vpop.eup %3455  ;;  %v2661_v25 = vadd.f32 %v2660_v51, %v2571_v58 }
 0x567   : > { %v3458_v5 = vpop.eup %3457  ;;  %3461 = vpow2.f32 %v2296_v36  ;;  %v2663_v27 = vpop.f32.mrf.mxu0  ;;  %v2394_v6 = vadd.f32 %v5160_v31, %v5158_v42 }
 0x568   : > { %2727 = vst [vmem:[%s5016_s20 + $0x48] sm:$0xff] %v2661_v25  ;;  %3463 = vpow2.f32 %v2298_v23  ;;  %v2480_v62 = vmul.f32 %v3458_v5, %v5028_v56  ;;  %v2481_v13 = vmul.f32 %v3458_v5, %v5033_v0 }
 0x569   : > { %v3460_v9 = vpop.eup %3459  ;;  %2395 = vadd.xlane.f32.xlu1 %v2394_v6 }
 0x56a   : > { %v2378_v3 = vpop.xlane.xlu0 %2377  ;;  %v2114_v17 = vpop.xlane.xlu2 %2113  ;;  %v2482_v2 = vmul.f32 %v3460_v9, %v5049_v35  ;;  %v2483_v46 = vmul.f32 %v3460_v9, %v5052_v37 }
 0x56b   : > { %v2180_v57 = vsub.f32 %v5055_v16, %v2114_v17  ;;  %v2181_v50 = vsub.f32 %v5064_v55, %v2114_v17 }
 0x56c   : > { %v2526_v22 = vpack.c.bf16 %v2482_v2, %v2480_v62  ;;  %v2527_v28 = vpack.c.bf16 %v2483_v46, %v2481_v13 }
 0x56d   : > { %v5171_v47 = vpop.eup %3461  ;;  %v2574_v60 = vpop.f32.mrf.mxu3  ;;  %v2300_v63 = vmul.f32 1.442695, %v2180_v57  ;;  %v2302_v54 = vmul.f32 1.442695, %v2181_v50 }
 0x56e   : > { %v5173_v33 = vpop.eup %3463  ;;  %v2664_v56 = vadd.f32 %v2663_v27, %v2574_v60  ;;  %2593 = vmatmul.bf16.gmra.mxu3 %v2526_v22  ;;  %2682 = vmatmul.bf16.gmra.mxu0 %v2527_v28 }
 0x56f   : > { %3465 = vpow2.f32 %v2300_v63  ;;  %v2665_v0 = vpop.f32.mrf.mxu0  ;;  %v2397_v35 = vadd.f32 %v5173_v33, %v5171_v47 }
 0x570   : > { %2728 = vst [vmem:[%s5016_s20 + $0x50] sm:$0xff] %v2664_v56  ;;  %3467 = vpow2.f32 %v2302_v54 }
 0x571   : > { %3469 = vrcp.f32 %v2378_v3  ;;  %2398 = vadd.xlane.f32.xlu2 %v2397_v35 }
 0x572   : > { %v2381_v37 = vpop.xlane.xlu1 %2380  ;;  %v2117_v16 = vpop.xlane.xlu0 %2116 }
 0x573   : > { %3471 = vrcp.f32 %v2381_v37  ;;  %v2182_v55 = vsub.f32 %v5080_v7, %v2117_v16  ;;  %v2183_v38 = vsub.f32 %v5085_v26, %v2117_v16 }
 0x575   : > { %v5180_v44 = vpop.eup %3465  ;;  %v2576_v53 = vpop.f32.mrf.mxu3  ;;  %v2304_v32 = vmul.f32 1.442695, %v2182_v55  ;;  %v2306_v1 = vmul.f32 1.442695, %v2183_v38 }
 0x576   : > { %v5182_v4 = vpop.eup %3467  ;;  %v2666_v8 = vadd.f32 %v2665_v0, %v2576_v53 }
 0x577   : > { %v3470_v45 = vpop.eup %3469  ;;  %3473 = vpow2.f32 %v2304_v32  ;;  %v2668_v24 = vpop.f32.mrf.mxu0  ;;  %v2400_v51 = vadd.f32 %v5182_v4, %v5180_v44 }
 0x578   : > { %2729 = vst [vmem:[%s5016_s20 + $0x58] sm:$0xff] %v2666_v8  ;;  %3475 = vpow2.f32 %v2306_v1  ;;  %v2484_v14 = vmul.f32 %v3470_v45, %v5066_v15  ;;  %v2485_v40 = vmul.f32 %v3470_v45, %v5069_v21 }
 0x579   : > { %v3472_v18 = vpop.eup %3471  ;;  %2401 = vadd.xlane.f32.xlu0 %v2400_v51 }
 0x57a   : > { %v2384_v7 = vpop.xlane.xlu1 %2383  ;;  %v2120_v26 = vpop.xlane.xlu0 %2119  ;;  %v2486_v12 = vmul.f32 %v3472_v18, %v5087_v19  ;;  %v2487_v52 = vmul.f32 %v3472_v18, %v5090_v34 }
 0x57b   : > { %v2184_v58 = vsub.f32 %v5100_v43, %v2120_v26  ;;  %v2185_v36 = vsub.f32 %v5102_v20, %v2120_v26 }
 0x57c   : > { %v2528_v23 = vpack.c.bf16 %v2486_v12, %v2484_v14  ;;  %v2529_v25 = vpack.c.bf16 %v2487_v52, %v2485_v40 }
 0x57d   : > { %v5193_v5 = vpop.eup %3473  ;;  %v2579_v27 = vpop.f32.mrf.mxu3  ;;  %v2308_v6 = vmul.f32 1.442695, %v2184_v58  ;;  %v2310_v9 = vmul.f32 1.442695, %v2185_v36 }
 0x57e   : > { %v5195_v3 = vpop.eup %3475  ;;  %v2669_v15 = vadd.f32 %v2668_v24, %v2579_v27  ;;  %2598 = vmatmul.bf16.gmra.mxu3 %v2528_v23  ;;  %2687 = vmatmul.bf16.gmra.mxu0 %v2529_v25 }
 0x57f   : > { %3477 = vpow2.f32 %v2308_v6  ;;  %v2403_v21 = vadd.f32 %v5195_v3, %v5193_v5  ;;  %v2670_v19 = vpop.f32.mrf.mxu0 }
 0x580   : > { %2730 = vst [vmem:[%s5016_s20 + $0x60] sm:$0xff] %v2669_v15  ;;  %3479 = vpow2.f32 %v2310_v9 }
 0x581   : > { %3481 = vrcp.f32 %v2384_v7  ;;  %2404 = vadd.xlane.f32.xlu1 %v2403_v21 }
 0x582   : > { %v2387_v34 = vpop.xlane.xlu2 %2386  ;;  %v2123_v43 = vpop.xlane.xlu1 %2122 }
 0x583   : > { %3483 = vrcp.f32 %v2387_v34  ;;  %v2186_v20 = vsub.f32 %v5127_v49, %v2123_v43  ;;  %v2187_v17 = vsub.f32 %v5121_v10, %v2123_v43 }
 0x585   : > { %v5202_v62 = vpop.eup %3477  ;;  %v2581_v2 = vpop.f32.mrf.mxu3  ;;  %v2312_v13 = vmul.f32 1.442695, %v2186_v20  ;;  %v2314_v46 = vmul.f32 1.442695, %v2187_v17 }
 0x586   : > { %v5204_v57 = vpop.eup %3479  ;;  %v2671_v50 = vadd.f32 %v2670_v19, %v2581_v2 }
 0x587   : > { %v3482_v22 = vpop.eup %3481  ;;  %3485 = vpow2.f32 %v2312_v13  ;;  %v2406_v28 = vadd.f32 %v5204_v57, %v5202_v62  ;;  %v2673_v56 = vpop.f32.mrf.mxu0 }
 0x588   : > { %2731 = vst [vmem:[%s5016_s20 + $0x68] sm:$0xff] %v2671_v50  ;;  %3487 = vpow2.f32 %v2314_v46  ;;  %v2488_v10 = vmul.f32 %v3482_v22, %v5104_v61  ;;  %v2489_v63 = vmul.f32 %v3482_v22, %v5107_v39 }
 0x589   : > { %v3484_v60 = vpop.eup %3483  ;;  %2407 = vadd.xlane.f32.xlu2 %v2406_v28 }
 0x58a   : > { %v2490_v49 = vmul.f32 %v3484_v60, %v5123_v29  ;;  %v2491_v54 = vmul.f32 %v3484_v60, %v5125_v48  ;;  %v2390_v53 = vpop.xlane.xlu2 %2389 }
 0x58b   : > { %3489 = vrcp.f32 %v2390_v53 }
 0x58c   : > { %v2530_v0 = vpack.c.bf16 %v2490_v49, %v2488_v10  ;;  %v2531_v35 = vpack.c.bf16 %v2491_v54, %v2489_v63 }
 0x58d   : > { %v5213_v37 = vpop.eup %3485  ;;  %v2584_v16 = vpop.f32.mrf.mxu3 }
 0x58e   : > { %v5215_v55 = vpop.eup %3487  ;;  %v2674_v38 = vadd.f32 %v2673_v56, %v2584_v16  ;;  %2603 = vmatmul.bf16.gmra.mxu3 %v2530_v0  ;;  %2692 = vmatmul.bf16.gmra.mxu0 %v2531_v35 }
 0x58f   : > { %v2409_v61 = vadd.f32 %v5215_v55, %v5213_v37  ;;  %v2675_v39 = vpop.f32.mrf.mxu0 }
 0x590   : > { %2732 = vst [vmem:[%s5016_s20 + $0x70] sm:$0xff] %v2674_v38 }
 0x591   : > { %2410 = vadd.xlane.f32.xlu0 %v2409_v61  ;;  %v3490_v1 = vpop.eup %3489 }
 0x592   : > { %v2492_v24 = vmul.f32 %v3490_v1, %v5134_v59  ;;  %v2493_v18 = vmul.f32 %v3490_v1, %v5136_v30 }
 0x595   : > { %v2586_v29 = vpop.f32.mrf.mxu3 }
 0x596   : > { %v2676_v48 = vadd.f32 %v2675_v39, %v2586_v29 }
 0x598   : > { %2733 = vst [vmem:[%s5016_s20 + $0x78] sm:$0xff] %v2676_v48 }
 0x5d4   : > { %v2393_v32 = vpop.xlane.xlu0 %2392 }
 0x5d5   : > { %3491 = vrcp.f32 %v2393_v32 }
 0x5db   : > { %v3492_v8 = vpop.eup %3491  ;;  %v2678_v45 = vpop.f32.mrf.mxu0 }
 0x5dc   : > { %v2494_v51 = vmul.f32 %v3492_v8, %v5149_v11  ;;  %v2495_v7 = vmul.f32 %v3492_v8, %v5151_v41  ;;  %v2396_v12 = vpop.xlane.xlu1 %2395 }
 0x5dd   : > { %3493 = vrcp.f32 %v2396_v12 }
 0x5de   : > { %v2532_v26 = vpack.c.bf16 %v2494_v51, %v2492_v24  ;;  %v2533_v14 = vpack.c.bf16 %v2495_v7, %v2493_v18 }
 0x5e0   : > { %2608 = vmatmul.bf16.gmra.mxu3 %v2532_v26  ;;  %2697 = vmatmul.bf16.gmra.mxu0 %v2533_v14 }
 0x5e1   : > { %v2589_v40 = vpop.f32.mrf.mxu3 }
 0x5e2   : > { %v2679_v52 = vadd.f32 %v2678_v45, %v2589_v40 }
 0x5e3   : > { %v2680_v58 = vpop.f32.mrf.mxu0  ;;  %v3494_v59 = vpop.eup %3493 }
 0x5e4   : > { %2734 = vst [vmem:[%s5016_s20 + $0x80] sm:$0xff] %v2679_v52  ;;  %v2399_v36 = vpop.xlane.xlu2 %2398  ;;  %v2496_v41 = vmul.f32 %v3494_v59, %v5158_v42  ;;  %v2497_v6 = vmul.f32 %v3494_v59, %v5160_v31 }
 0x5e5   : > { %3495 = vrcp.f32 %v2399_v36 }
 0x5e9   : > { %v2591_v23 = vpop.f32.mrf.mxu3 }
 0x5ea   : > { %v2681_v11 = vadd.f32 %v2680_v58, %v2591_v23 }
 0x5eb   : > { %v3496_v25 = vpop.eup %3495  ;;  %v2683_v30 = vpop.f32.mrf.mxu0 }
 0x5ec   : > { %2735 = vst [vmem:[%s5016_s20 + $0x88] sm:$0xff] %v2681_v11  ;;  %v2498_v27 = vmul.f32 %v3496_v25, %v5171_v47  ;;  %v2499_v9 = vmul.f32 %v3496_v25, %v5173_v33  ;;  %v2402_v19 = vpop.xlane.xlu0 %2401 }
 0x5ed   : > { %3497 = vrcp.f32 %v2402_v19 }
 0x5ee   : > { %v2534_v15 = vpack.c.bf16 %v2498_v27, %v2496_v41  ;;  %v2535_v21 = vpack.c.bf16 %v2499_v9, %v2497_v6 }
 0x5f0   : > { %2613 = vmatmul.bf16.gmra.mxu3 %v2534_v15  ;;  %2702 = vmatmul.bf16.gmra.mxu0 %v2535_v21 }
 0x5f1   : > { %v2594_v34 = vpop.f32.mrf.mxu3 }
 0x5f2   : > { %v2684_v43 = vadd.f32 %v2683_v30, %v2594_v34 }
 0x5f3   : > { %v2685_v20 = vpop.f32.mrf.mxu0  ;;  %v3498_v42 = vpop.eup %3497 }
 0x5f4   : > { %2736 = vst [vmem:[%s5016_s20 + $0x90] sm:$0xff] %v2684_v43  ;;  %v2405_v17 = vpop.xlane.xlu1 %2404  ;;  %v2500_v33 = vmul.f32 %v3498_v42, %v5180_v44  ;;  %v2501_v50 = vmul.f32 %v3498_v42, %v5182_v4 }
 0x5f5   : > { %3499 = vrcp.f32 %v2405_v17 }
 0x5f9   : > { %v2596_v2 = vpop.f32.mrf.mxu3 }
 0x5fa   : > { %v2686_v47 = vadd.f32 %v2685_v20, %v2596_v2 }
 0x5fb   : > { %v3500_v31 = vpop.eup %3499  ;;  %v2688_v13 = vpop.f32.mrf.mxu0 }
 0x5fc   : > { %2737 = vst [vmem:[%s5016_s20 + $0x98] sm:$0xff] %v2686_v47  ;;  %v2502_v46 = vmul.f32 %v3500_v31, %v5193_v5  ;;  %v2503_v22 = vmul.f32 %v3500_v31, %v5195_v3  ;;  %v2408_v10 = vpop.xlane.xlu2 %2407 }
 0x5fd   : > { %3501 = vrcp.f32 %v2408_v10 }
 0x5fe   : > { %v2536_v28 = vpack.c.bf16 %v2502_v46, %v2500_v33  ;;  %v2537_v60 = vpack.c.bf16 %v2503_v22, %v2501_v50 }
 0x600   : > { %2618 = vmatmul.bf16.gmra.mxu3 %v2536_v28  ;;  %2707 = vmatmul.bf16.gmra.mxu0 %v2537_v60 }
 0x601   : > { %v2599_v49 = vpop.f32.mrf.mxu3 }
 0x602   : > { %v2689_v63 = vadd.f32 %v2688_v13, %v2599_v49 }
 0x603   : > { %v2690_v56 = vpop.f32.mrf.mxu0  ;;  %v3502_v44 = vpop.eup %3501 }
 0x604   : > { %2738 = vst [vmem:[%s5016_s20 + $0xa0] sm:$0xff] %v2689_v63  ;;  %v2411_v54 = vpop.xlane.xlu0 %2410  ;;  %v2504_v3 = vmul.f32 %v3502_v44, %v5202_v62  ;;  %v2505_v16 = vmul.f32 %v3502_v44, %v5204_v57 }
 0x605   : > { %3503 = vrcp.f32 %v2411_v54 }
 0x609   : > { %v2601_v5 = vpop.f32.mrf.mxu3 }
 0x60a   : > { %v2691_v0 = vadd.f32 %v2690_v56, %v2601_v5 }
 0x60b   : > { %v3504_v4 = vpop.eup %3503  ;;  %v2693_v29 = vpop.f32.mrf.mxu0 }
 0x60c   : > { %2739 = vst [vmem:[%s5016_s20 + $0xa8] sm:$0xff] %v2691_v0  ;;  %v2506_v35 = vmul.f32 %v3504_v4, %v5213_v37  ;;  %v2507_v38 = vmul.f32 %v3504_v4, %v5215_v55 }
 0x60e   : > { %v2538_v61 = vpack.c.bf16 %v2506_v35, %v2504_v3  ;;  %v2539_v39 = vpack.c.bf16 %v2507_v38, %v2505_v16 }
 0x610   : > { %2623 = vmatmul.bf16.gmra.mxu3 %v2538_v61  ;;  %2712 = vmatmul.bf16.gmra.mxu0 %v2539_v39 }
 0x611   : > { %v2604_v48 = vpop.f32.mrf.mxu3 }
 0x612   : > { %v2694_v53 = vadd.f32 %v2693_v29, %v2604_v48 }
 0x613   : > { %v2695_v32 = vpop.f32.mrf.mxu0 }
 0x614   : > { %2740 = vst [vmem:[%s5016_s20 + $0xb0] sm:$0xff] %v2694_v53 }
 0x619   : > { %v2606_v1 = vpop.f32.mrf.mxu3 }
 0x61a   : > { %v2696_v62 = vadd.f32 %v2695_v32, %v2606_v1 }
 0x61c   : > { %2741 = vst [vmem:[%s5016_s20 + $0xb8] sm:$0xff] %v2696_v62 }
 0x65d   : > { %v2698_v37 = vpop.f32.mrf.mxu0 }
 0x663   : > { %v2609_v57 = vpop.f32.mrf.mxu3 }
 0x664   : > { %v2699_v8 = vadd.f32 %v2698_v37, %v2609_v57 }
 0x665   : > { %v2700_v55 = vpop.f32.mrf.mxu0 }
 0x666   : > { %2742 = vst [vmem:[%s5016_s20 + $0xc0] sm:$0xff] %v2699_v8 }
 0x66b   : > { %v2611_v45 = vpop.f32.mrf.mxu3 }
 0x66c   : > { %v2701_v24 = vadd.f32 %v2700_v55, %v2611_v45 }
 0x66d   : > { %v2703_v51 = vpop.f32.mrf.mxu0 }
 0x66e   : > { %2743 = vst [vmem:[%s5016_s20 + $0xc8] sm:$0xff] %v2701_v24 }
 0x673   : > { %v2614_v18 = vpop.f32.mrf.mxu3 }
 0x674   : > { %v2704_v7 = vadd.f32 %v2703_v51, %v2614_v18 }
 0x675   : > { %v2705_v26 = vpop.f32.mrf.mxu0 }
 0x676   : > { %2744 = vst [vmem:[%s5016_s20 + $0xd0] sm:$0xff] %v2704_v7 }
 0x67b   : > { %v2616_v14 = vpop.f32.mrf.mxu3 }
 0x67c   : > { %v2706_v12 = vadd.f32 %v2705_v26, %v2616_v14 }
 0x67d   : > { %v2708_v40 = vpop.f32.mrf.mxu0 }
 0x67e   : > { %2745 = vst [vmem:[%s5016_s20 + $0xd8] sm:$0xff] %v2706_v12 }
 0x683   : > { %v2619_v52 = vpop.f32.mrf.mxu3 }
 0x684   : > { %v2709_v58 = vadd.f32 %v2708_v40, %v2619_v52 }
 0x685   : > { %v2710_v36 = vpop.f32.mrf.mxu0 }
 0x686   : > { %2746 = vst [vmem:[%s5016_s20 + $0xe0] sm:$0xff] %v2709_v58 }
 0x68b   : > { %v2621_v59 = vpop.f32.mrf.mxu3 }
 0x68c   : > { %v2711_v23 = vadd.f32 %v2710_v36, %v2621_v59 }
 0x68d   : > { %v2713_v11 = vpop.f32.mrf.mxu0 }
 0x68e   : > { %2747 = vst [vmem:[%s5016_s20 + $0xe8] sm:$0xff] %v2711_v23 }
 0x693   : > { %v2624_v25 = vpop.f32.mrf.mxu3 }
 0x694   : > { %v2714_v30 = vadd.f32 %v2713_v11, %v2624_v25 }
 0x695   : > { %v2715_v41 = vpop.f32.mrf.mxu0 }
 0x696   : > { %2748 = vst [vmem:[%s5016_s20 + $0xf0] sm:$0xff] %v2714_v30 }
 0x69b   : > { %v2626_v27 = vpop.f32.mrf.mxu3 }
 0x69c   : > { %v2716_v6 = vadd.f32 %v2715_v41, %v2626_v27 }
 0x69e   : > { %2749 = vst [vmem:[%s5016_s20 + $0xf8] sm:$0xff] %v2716_v6 }
 0x69f   : > { %3592 = shalt.err (!%p3589_p10)
}
 0x6a0   : > { %s3642_s5 = smov 128   ;;  %s3643_s6 = smov 8  }
 0x6a1   : > { %3256 = dma.vmem_to_hbm [thread:$0]  (%p3726_p7), %s2764_s21, 4096, %s2766_s22, %s2751_s24, %s3642_s5, %s3642_s5, %s3643_s6  }
 0x6a2 PF: > { %s2780_s7 = sand.u32 1, %s3623_s9   ;;  %p5620_p12 = scmp.ge.s32.totalorder %s3635_s12, 2 }
 0x6a3   : > { %s2781_s17 = scalar_lea.sflag [#allocation4], %s2780_s7 }
 0x6a4   : > { %p3267_p13 = pnand %p5620_p12, %p3694_p6 }
 0x6a6   : > { %p3268_p0 = pneg %p3267_p13 }
 0x6a8   : > { %3618 = dma.done.wait (%p3268_p0), %s2781_s17, 4096  }
 0x6a9   : > { %3620 = vsyncadd (%p3268_p0), %s2781_s17, 4294963200  ;;  %p16_p3 = scmp.ge.s32.totalorder %s3712_s23, 4   ;;  %s5621_s9 = smov %s3627_s10 }
 0x6aa   : > { %s5622_s10 = smov %s3631_s11  ;;  %s5623_s11 = smov %s3722_s28 }
 0x6ab   : > { %s5624_s12 = smov %s3712_s23  ;;  %18 = sbr.rel (!%p16_p3) target bundleno = 6 (0x6), region = 77 }
 0x6b0   :  { %2787 = vsyncpa [#allocation3], 1 }
 0x6b1   :  { %2789 = vsyncpa [#allocation3 + $0x1], 1 }
 0x6b2   :  { %2790 = vsyncpa [#allocation6], 1 }
 0x6b3   :  { %2791 = vsyncpa [#allocation4], 1 }
 0x6b4   :  { %2793 = vsyncpa [#allocation4 + $0x1], 1 }

</bundles_post_ra>
